<compile_context>
chip_gen: v6e
topology: v6e:2x2x1
jax: 0.10.0
libtpu: 0.0.40
codegen_flags: <defaults>
</compile_context>

<pallas_src>
import functools
import math

import jax
import jax.numpy as jnp
from jax import lax
from jax.experimental import pallas as pl
from jax.experimental.pallas import tpu as pltpu

# ---------------- model config (stand-in for global_config / layer_config) ---
MSG_EMBED_SIZE = 128      # global_config['msg_embed_size']
MAX_N_MSGS = 16           # global_config['max_n_msgs']
MAX_N_DAYS = 4            # global_config['max_n_days']
NUM_HEADS = 4             # layer_config['num_of_head']
FNN_SIZE = 256            # global_config['fnn_size']
STOCK_EMBED_SIZE = 128    # global_config['stock_embed_size']
N_ENCODER_LAYERS = 2      # layer_config['n_encoder_layers']
BATCH = 2
LN_EPS = 1e-6
NEG_INF = -1e9            # matches `mask * -1000000000.0` in the module
MAX_ROWS_PER_STEP = 512


def _seq_tile(nbd, m, max_rows=MAX_ROWS_PER_STEP):
    """Sequences per grid step: largest divisor of nbd whose row count fits
    max_rows, preferring >=2 grid steps so v7x's second TensorCore has work."""
    divs = [s for s in range(1, nbd + 1)
            if nbd % s == 0 and s * m <= max_rows and (s * m) % 8 == 0]
    if not divs:
        return nbd
    pref = [s for s in divs if nbd // s >= 2]
    return max(pref) if pref else max(divs)


def _torch_layernorm(y, g, b, eps):
    # Matches the module's custom LayerNorm: unbiased std (N-1), eps added to std.
    mean = jnp.mean(y, axis=-1, keepdims=True)
    diff = y - mean
    var = jnp.sum(diff * diff, axis=-1, keepdims=True) / (y.shape[-1] - 1)
    return g * diff / (jnp.sqrt(var) + eps) + b


# ----------------------------- fused encoder kernel ---------------------------
def _encoder_kernel(x_ref, mask_ref,
                    wqkv_ref, bqkv_ref, wo_ref, bo_ref, ln1w_ref, ln1b_ref,
                    w1_ref, b1_ref, w2_ref, b2_ref, ln2w_ref, ln2b_ref,
                    o_ref, xc_ref, *, n_heads, d_k, n_layers, eps):
    l = pl.program_id(1)

    # Load the activation into the VMEM carry on the first layer of each tile.
    @pl.when(l == 0)
    def _():
        xc_ref[...] = x_ref[...].astype(jnp.float32)

    x = xc_ref[...]                               # (R, E) f32, R = seq_tile * M
    add_mask = mask_ref[0]                        # (R, R) additive (0 / -1e9)
    e_dim = x.shape[-1]
    scale = 1.0 / math.sqrt(d_k)

    # ---- multi-head self-attention (fused QKV projection) -------------------
    qkv = jnp.dot(x, wqkv_ref[0], preferred_element_type=jnp.float32) + bqkv_ref[0]

    head_outs = []
    for h in range(n_heads):                      # static unroll, H = 4
        q_h = qkv[:, h * d_k:(h + 1) * d_k]
        k_h = qkv[:, e_dim + h * d_k:e_dim + (h + 1) * d_k]
        v_h = qkv[:, 2 * e_dim + h * d_k:2 * e_dim + (h + 1) * d_k]
        s = lax.dot_general(q_h, k_h, (((1,), (1,)), ((), ())),
                            preferred_element_type=jnp.float32) * scale
        s = s + add_mask
        m = jnp.max(s, axis=-1, keepdims=True)
        p = jnp.exp(s - m)
        p = p * pl.reciprocal(jnp.sum(p, axis=-1, keepdims=True), approx=True)
        head_outs.append(jnp.dot(p, v_h, preferred_element_type=jnp.float32))
    attn = jnp.concatenate(head_outs, axis=-1)    # lane-dense (R, E)

    # ---- output projection + AddNorm (dropout = identity) -------------------
    y = jnp.dot(attn, wo_ref[0], preferred_element_type=jnp.float32) + bo_ref[0]
    x = x + _torch_layernorm(y, ln1w_ref[0], ln1b_ref[0], eps)

    # ---- position-wise FFN + AddNorm -----------------------------------------
    h1 = jnp.maximum(
        jnp.dot(x, w1_ref[0], preferred_element_type=jnp.float32) + b1_ref[0], 0.0)
    y2 = jnp.dot(h1, w2_ref[0], preferred_element_type=jnp.float32) + b2_ref[0]
    x = x + _torch_layernorm(y2, ln2w_ref[0], ln2b_ref[0], eps)

    xc_ref[...] = x
    o_ref[...] = x.astype(o_ref.dtype)            # final write (last layer) wins


def fused_encoder(x_rows, combined_mask, sp, *, n_layers, n_heads, d_k):
    rows, e_dim = x_rows.shape
    n_tiles, r, _ = combined_mask.shape
    f_dim = sp["w1"].shape[-1]

    kern = functools.partial(_encoder_kernel, n_heads=n_heads, d_k=d_k,
                             n_layers=n_layers, eps=LN_EPS)

    def wspec(*shape):  # weight stacked over layers; selected by layer index l
        return pl.BlockSpec((1,) + tuple(shape), lambda t, l: (l, 0, 0))

    grid_spec = pltpu.PrefetchScalarGridSpec(
        num_scalar_prefetch=0,
        grid=(n_tiles, n_layers),
        in_specs=[
            pl.BlockSpec((r, e_dim), lambda t, l: (t, 0)),
            pl.BlockSpec((1, r, r), lambda t, l: (t, 0, 0)),
            wspec(e_dim, 3 * e_dim), wspec(1, 3 * e_dim),
            wspec(e_dim, e_dim), wspec(1, e_dim), wspec(1, e_dim), wspec(1, e_dim),
            wspec(e_dim, f_dim), wspec(1, f_dim),
            wspec(f_dim, e_dim), wspec(1, e_dim), wspec(1, e_dim), wspec(1, e_dim),
        ],
        out_specs=pl.BlockSpec((r, e_dim), lambda t, l: (t, 0)),
        scratch_shapes=[pltpu.VMEM((r, e_dim), jnp.float32)],
    )
    return pl.pallas_call(
        kern,
        out_shape=jax.ShapeDtypeStruct((rows, e_dim), x_rows.dtype),
        grid_spec=grid_spec,
        compiler_params=pltpu.CompilerParams(
            dimension_semantics=("parallel", "arbitrary")),
    )(x_rows, combined_mask,
      sp["w_qkv"], sp["b_qkv"], sp["w_o"], sp["b_o"], sp["ln1_w"], sp["ln1_b"],
      sp["w1"], sp["b1"], sp["w2"], sp["b2"], sp["ln2_w"], sp["ln2_b"])


# ----------------------------- fused tail kernel ------------------------------
def _tail_kernel(t_ref, qday_ref, days_ref, w_ref, b_ref, o_ref, *, scale):
    del t_ref                                      # consumed by the index_maps
    q = qday_ref[0, 0]                             # (M, E)  day T-1
    days = days_ref[0]                             # (D, M, E)
    s = jnp.sum(days * q, axis=2)                  # (D, M)
    s = jnp.sum(s, axis=1, keepdims=True) * scale  # (D, 1)
    m = jnp.max(s, axis=0, keepdims=True)
    p = jnp.exp(s - m)
    p = p * pl.reciprocal(jnp.sum(p, axis=0, keepdims=True), approx=True)
    pooled = jnp.sum(p[:, :, None] * days, axis=0)                     # (M, E)
    out = jnp.tanh(jnp.dot(pooled, w_ref[...],
                           preferred_element_type=jnp.float32) + b_ref[...])
    o_ref[...] = out[None].astype(o_ref.dtype)


def fused_tail(days4, T, w_stock, b_stock):
    b_sz, d_sz, m_sz, e_dim = days4.shape
    s_out = w_stock.shape[1]
    kern = functools.partial(_tail_kernel, scale=1.0 / math.sqrt(m_sz * e_dim))

    grid_spec = pltpu.PrefetchScalarGridSpec(
        num_scalar_prefetch=1,                     # T lives in SMEM
        grid=(b_sz,),
        in_specs=[
            # day T[b]-1 gathered directly by the index_map (no XLA gather)
            pl.BlockSpec((1, 1, m_sz, e_dim), lambda b, t_ref: (b, t_ref[b] - 1, 0, 0)),
            pl.BlockSpec((1, d_sz, m_sz, e_dim), lambda b, t_ref: (b, 0, 0, 0)),
            pl.BlockSpec((e_dim, s_out), lambda b, t_ref: (0, 0)),
            pl.BlockSpec((1, s_out), lambda b, t_ref: (0, 0)),
        ],
        out_specs=pl.BlockSpec((1, m_sz, s_out), lambda b, t_ref: (b, 0, 0)),
    )
    return pl.pallas_call(
        kern,
        out_shape=jax.ShapeDtypeStruct((b_sz, m_sz, s_out), days4.dtype),
        grid_spec=grid_spec,
        compiler_params=pltpu.CompilerParams(dimension_semantics=("parallel",)),
    )(T, days4, days4, w_stock, b_stock.reshape(1, s_out))


# ----------------------------- full forward -----------------------------------
def _stack_layers(layers):
    st = lambda name: jnp.stack([lp[name] for lp in layers])
    return dict(
        w_qkv=st("w_qkv"), b_qkv=st("b_qkv")[:, None, :],
        w_o=st("w_o"), b_o=st("b_o")[:, None, :],
        ln1_w=st("ln1_w")[:, None, :], ln1_b=st("ln1_b")[:, None, :],
        w1=st("w1"), b1=st("b1")[:, None, :],
        w2=st("w2"), b2=st("b2")[:, None, :],
        ln2_w=st("ln2_w")[:, None, :], ln2_b=st("ln2_b")[:, None, :],
    )


def msg_encoder_forward(msg_embed, T, mask, params):
    """msg_embed: (B, D, M, E) f32; T: (B,) int32 in [1, D]; mask: (B, D, M) bool (True = masked)."""
    b_sz, d_sz, m_sz, e_dim = msg_embed.shape
    nbd = b_sz * d_sz
    seq_tile = _seq_tile(nbd, m_sz)
    n_tiles = nbd // seq_tile
    r = seq_tile * m_sz

    x_rows = msg_embed.reshape(nbd * m_sz, e_dim)

    # Combined additive mask per tile: per-key message mask + block-diagonal
    # cross-sequence mask (so several sequences share one lane-dense row tile).
    if mask is not None:
        key_add = mask.reshape(nbd, m_sz).astype(jnp.float32) * NEG_INF
    else:
        key_add = jnp.zeros((nbd, m_sz), jnp.float32)
    key_add_t = key_add.reshape(n_tiles, r)
    seq_id = jnp.arange(r, dtype=jnp.int32) // m_sz
    cross = jnp.where(seq_id[:, None] == seq_id[None, :], 0.0, NEG_INF)
    combined_mask = cross[None, :, :] + key_add_t[:, None, :]       # (n_tiles, R, R)

    sp = _stack_layers(params["layers"])
    x_rows = fused_encoder(x_rows, combined_mask, sp,
                           n_layers=len(params["layers"]),
                           n_heads=NUM_HEADS, d_k=e_dim // NUM_HEADS)

    days4 = x_rows.reshape(b_sz, d_sz, m_sz, e_dim)
    return fused_tail(days4, T.astype(jnp.int32),
                      params["w_stock"], params["b_stock"])


# ----------------------------- synthetic params & reference -------------------
def _linear_params(key, fan_in, fan_out):
    kw, kb = jax.random.split(key)
    bound = 1.0 / math.sqrt(fan_in)
    w = jax.random.uniform(kw, (fan_in, fan_out), minval=-bound, maxval=bound, dtype=jnp.float32)
    b = jax.random.uniform(kb, (fan_out,), minval=-bound, maxval=bound, dtype=jnp.float32)
    return w, b


def init_params(key):
    layers = []
    for i in range(N_ENCODER_LAYERS):
        k = jax.random.fold_in(key, i)
        kq, kk, kv, ko, k1, k2 = jax.random.split(k, 6)
        wq, bq = _linear_params(kq, MSG_EMBED_SIZE, MSG_EMBED_SIZE)
        wk, bk = _linear_params(kk, MSG_EMBED_SIZE, MSG_EMBED_SIZE)
        wv, bv = _linear_params(kv, MSG_EMBED_SIZE, MSG_EMBED_SIZE)
        wo, bo = _linear_params(ko, MSG_EMBED_SIZE, MSG_EMBED_SIZE)
        w1, b1 = _linear_params(k1, MSG_EMBED_SIZE, FNN_SIZE)
        w2, b2 = _linear_params(k2, FNN_SIZE, MSG_EMBED_SIZE)
        layers.append(dict(
            w_qkv=jnp.concatenate([wq, wk, wv], axis=1),
            b_qkv=jnp.concatenate([bq, bk, bv], axis=0),
            w_o=wo, b_o=bo, w1=w1, b1=b1, w2=w2, b2=b2,
            ln1_w=jnp.ones((MSG_EMBED_SIZE,), jnp.float32),
            ln1_b=jnp.zeros((MSG_EMBED_SIZE,), jnp.float32),
            ln2_w=jnp.ones((MSG_EMBED_SIZE,), jnp.float32),
            ln2_b=jnp.zeros((MSG_EMBED_SIZE,), jnp.float32),
        ))
    k_st = jax.random.fold_in(key, 1000)
    w_stock, b_stock = _linear_params(k_st, MSG_EMBED_SIZE, STOCK_EMBED_SIZE)
    return dict(layers=layers, w_stock=w_stock, b_stock=b_stock)


def _layer_norm_ref(x, w, b, eps=LN_EPS):
    mean = x.mean(-1, keepdims=True)
    std = jnp.std(x, axis=-1, keepdims=True, ddof=1)
    return w * (x - mean) / (std + eps) + b


def reference_forward(msg_embed, T, mask, params):
    B, D, M, E = msg_embed.shape
    H = NUM_HEADS
    dk = E // H
    nbd = B * D
    mask4 = None if mask is None else mask.astype(jnp.float32).reshape(nbd, 1, 1, M)
    x = msg_embed.reshape(nbd, M, E)
    for lp in params["layers"]:
        qkv = x @ lp["w_qkv"] + lp["b_qkv"]
        q, k, v = jnp.split(qkv, 3, axis=-1)

        def heads(t):
            return t.reshape(nbd, M, H, dk).transpose(0, 2, 1, 3)

        q, k, v = heads(q), heads(k), heads(v)
        scores = q @ jnp.swapaxes(k, -1, -2) / math.sqrt(dk)
        if mask4 is not None:
            scores = scores + mask4 * NEG_INF
        p = jax.nn.softmax(scores, axis=-1)
        att = (p @ v).transpose(0, 2, 1, 3).reshape(nbd, M, E)
        y = att @ lp["w_o"] + lp["b_o"]
        x = x + _layer_norm_ref(y, lp["ln1_w"], lp["ln1_b"])
        y = jnp.maximum(x @ lp["w1"] + lp["b1"], 0.0) @ lp["w2"] + lp["b2"]
        x = x + _layer_norm_ref(y, lp["ln2_w"], lp["ln2_b"])
    dim = M * E
    days = x.reshape(B, D, dim)
    q_day = days[jnp.arange(B), T - 1][:, None, :]
    s = q_day @ jnp.swapaxes(days, -1, -2) / math.sqrt(dim)
    p = jax.nn.softmax(s, axis=-1)
    pooled = (p @ days).reshape(B, M, E)
    return jnp.tanh(pooled @ params["w_stock"] + params["b_stock"])


# ----------------------------- demo / check -----------------------------------
if __name__ == "__main__":
    key = jax.random.PRNGKey(0)
    k_x, k_mask, k_T, k_par = jax.random.split(key, 4)

    msg_embed = jax.random.normal(
        k_x, (BATCH, MAX_N_DAYS, MAX_N_MSGS, MSG_EMBED_SIZE), dtype=jnp.float32)
    n_valid = jax.random.randint(k_mask, (BATCH, MAX_N_DAYS), 4, MAX_N_MSGS + 1)
    mask = jnp.arange(MAX_N_MSGS)[None, None, :] >= n_valid[:, :, None]   # True = masked
    T = jax.random.randint(k_T, (BATCH,), 1, MAX_N_DAYS + 1).astype(jnp.int32)
    params = init_params(k_par)

    fwd = jax.jit(msg_encoder_forward)
    out = jax.block_until_ready(fwd(msg_embed, T, mask, params))

    with jax.default_matmul_precision("float32"):
        ref = jax.block_until_ready(jax.jit(reference_forward)(msg_embed, T, mask, params))

    assert out.shape == (BATCH, MAX_N_MSGS, STOCK_EMBED_SIZE), out.shape
    assert bool(jnp.all(jnp.isfinite(out)))
    max_err = float(jnp.max(jnp.abs(out - ref)))
    assert max_err < 5e-2, f"max abs err vs reference: {max_err}"
    print("KERNEL_OK")
</pallas_src>

<mosaic_0001>
module attributes {stable_mosaic.version = 11 : i64} {
  func.func @_tail_kernel(%arg0: i32, %arg1: memref<2xi32, #tpu.memory_space<smem>>, %arg2: memref<1x1x16x128xf32, #tpu.memory_space<vmem>>, %arg3: memref<1x4x16x128xf32, #tpu.memory_space<vmem>>, %arg4: memref<128x128xf32, #tpu.memory_space<vmem>>, %arg5: memref<1x128xf32, #tpu.memory_space<vmem>>, %arg6: memref<1x16x128xf32, #tpu.memory_space<vmem>>) attributes {dimension_semantics = [#tpu.dimension_semantics<parallel>], iteration_bounds = array<i64: 2>, scalar_prefetch = 1 : i64, scratch_operands = 0 : i64, tpu.core_type = #tpu.core_type<tc>, window_params = [{transform_indices = @transform_0, window_bounds = array<i64: 1, 1, 16, 128>}, {transform_indices = @transform_1, window_bounds = array<i64: 1, 4, 16, 128>}, {pipeline_mode = #tpu.pipeline_mode<synchronous>, transform_indices = @transform_2, window_bounds = array<i64: 128, 128>}, {pipeline_mode = #tpu.pipeline_mode<synchronous>, transform_indices = @transform_3, window_bounds = array<i64: 1, 128>}, {transform_indices = @transform_4, window_bounds = array<i64: 1, 16, 128>}]} {
    %c0 = arith.constant 0 : index
    %c0_0 = arith.constant 0 : index
    %c0_1 = arith.constant 0 : index
    %c0_2 = arith.constant 0 : index
    %0 = vector.load %arg2[%c0, %c0_0, %c0_1, %c0_2] : memref<1x1x16x128xf32, #tpu.memory_space<vmem>>, vector<1x1x16x128xf32>
    %1 = vector.shape_cast %0 : vector<1x1x16x128xf32> to vector<16x128xf32>
    %c0_3 = arith.constant 0 : index
    %c0_4 = arith.constant 0 : index
    %c0_5 = arith.constant 0 : index
    %c0_6 = arith.constant 0 : index
    %2 = vector.load %arg3[%c0_3, %c0_4, %c0_5, %c0_6] : memref<1x4x16x128xf32, #tpu.memory_space<vmem>>, vector<1x4x16x128xf32>
    %3 = vector.shape_cast %2 : vector<1x4x16x128xf32> to vector<4x16x128xf32>
    %4 = vector.shape_cast %1 : vector<16x128xf32> to vector<1x16x128xf32>
    %5 = vector.broadcast %4 : vector<1x16x128xf32> to vector<4x16x128xf32>
    %6 = arith.mulf %3, %5 : vector<4x16x128xf32>
    %cst = arith.constant dense<0.000000e+00> : vector<4x16xf32>
    %7 = vector.multi_reduction <add>, %6, %cst [2] : vector<4x16x128xf32> to vector<4x16xf32>
    %cst_7 = arith.constant dense<0.000000e+00> : vector<4xf32>
    %8 = vector.multi_reduction <add>, %7, %cst_7 [1] : vector<4x16xf32> to vector<4xf32>
    %9 = vector.shape_cast %8 : vector<4xf32> to vector<4x1xf32>
    %cst_8 = arith.constant 0.0220970865 : f32
    %10 = vector.broadcast %cst_8 : f32 to vector<4x1xf32>
    %11 = arith.mulf %9, %10 : vector<4x1xf32>
    %cst_9 = arith.constant dense<0xFF800000> : vector<1xf32>
    %12 = vector.multi_reduction <maximumf>, %11, %cst_9 [0] : vector<4x1xf32> to vector<1xf32>
    %13 = vector.shape_cast %12 : vector<1xf32> to vector<1x1xf32>
    %14 = vector.broadcast %13 : vector<1x1xf32> to vector<4x1xf32>
    %15 = arith.subf %11, %14 : vector<4x1xf32>
    %16 = math.exp %15 : vector<4x1xf32>
    %cst_10 = arith.constant dense<0.000000e+00> : vector<1xf32>
    %17 = vector.multi_reduction <add>, %16, %cst_10 [0] : vector<4x1xf32> to vector<1xf32>
    %18 = vector.shape_cast %17 : vector<1xf32> to vector<1x1xf32>
    %19 = tpu.reciprocal %18 {approx = true} : vector<1x1xf32> -> vector<1x1xf32>
    %20 = vector.broadcast %19 : vector<1x1xf32> to vector<4x1xf32>
    %21 = arith.mulf %16, %20 : vector<4x1xf32>
    %22 = vector.shape_cast %21 : vector<4x1xf32> to vector<4x1x1xf32>
    %23 = vector.broadcast %22 : vector<4x1x1xf32> to vector<4x16x128xf32>
    %24 = arith.mulf %23, %3 : vector<4x16x128xf32>
    %cst_11 = arith.constant dense<0.000000e+00> : vector<16x128xf32>
    %25 = vector.multi_reduction <add>, %24, %cst_11 [0] : vector<4x16x128xf32> to vector<16x128xf32>
    %c0_12 = arith.constant 0 : index
    %c0_13 = arith.constant 0 : index
    %26 = vector.load %arg4[%c0_12, %c0_13] : memref<128x128xf32, #tpu.memory_space<vmem>>, vector<128x128xf32>
    %cst_14 = arith.constant dense<0.000000e+00> : vector<16x128xf32>
    %27 = tpu.matmul %25, %26, %cst_14 {dimension_numbers = #tpu.dot_dimension_numbers<[1], [0], [0], [1], [0, 0, 1, 1], [], []>} : vector<16x128xf32>, vector<128x128xf32>, vector<16x128xf32> -> vector<16x128xf32>
    %c0_15 = arith.constant 0 : index
    %c0_16 = arith.constant 0 : index
    %28 = vector.load %arg5[%c0_15, %c0_16] : memref<1x128xf32, #tpu.memory_space<vmem>>, vector<1x128xf32>
    %29 = vector.broadcast %28 : vector<1x128xf32> to vector<16x128xf32>
    %30 = arith.addf %27, %29 : vector<16x128xf32>
    %31 = math.tanh %30 : vector<16x128xf32>
    %32 = vector.shape_cast %31 : vector<16x128xf32> to vector<1x16x128xf32>
    %c0_17 = arith.constant 0 : index
    %c0_18 = arith.constant 0 : index
    %c0_19 = arith.constant 0 : index
    %33 = vector.load %arg6[%c0_17, %c0_18, %c0_19] : memref<1x16x128xf32, #tpu.memory_space<vmem>>, vector<1x16x128xf32>
    tpu.vector_store %arg6[%c0_17, %c0_18, %c0_19], %32 {strides = array<i32>} : memref<1x16x128xf32, #tpu.memory_space<vmem>>, vector<1x16x128xf32>,
    return
  }
  func.func @transform_0(%arg0: i32, %arg1: memref<2xi32, #tpu.memory_space<smem>>) -> (i32, i32, i32, i32) {
    %0 = arith.index_cast %arg0 : i32 to index
    %1 = memref.load %arg1[%0] : memref<2xi32, #tpu.memory_space<smem>>
    %c1_i32 = arith.constant 1 : i32
    %2 = arith.subi %1, %c1_i32 : i32
    %c0_i32 = arith.constant 0 : i32
    %c0_i32_0 = arith.constant 0 : i32
    %c0_i32_1 = arith.constant 0 : i32
    return %arg0, %2, %c0_i32, %c0_i32_0 : i32, i32, i32, i32
  }
  func.func @transform_1(%arg0: i32, %arg1: memref<2xi32, #tpu.memory_space<smem>>) -> (i32, i32, i32, i32) {
    %c0_i32 = arith.constant 0 : i32
    %c0_i32_0 = arith.constant 0 : i32
    %c0_i32_1 = arith.constant 0 : i32
    %c0_i32_2 = arith.constant 0 : i32
    return %arg0, %c0_i32, %c0_i32_0, %c0_i32_1 : i32, i32, i32, i32
  }
  func.func @transform_2(%arg0: i32, %arg1: memref<2xi32, #tpu.memory_space<smem>>) -> (i32, i32) {
    %c0_i32 = arith.constant 0 : i32
    %c0_i32_0 = arith.constant 0 : i32
    %c0_i32_1 = arith.constant 0 : i32
    return %c0_i32, %c0_i32_0 : i32, i32
  }
  func.func @transform_3(%arg0: i32, %arg1: memref<2xi32, #tpu.memory_space<smem>>) -> (i32, i32) {
    %c0_i32 = arith.constant 0 : i32
    %c0_i32_0 = arith.constant 0 : i32
    %c0_i32_1 = arith.constant 0 : i32
    return %c0_i32, %c0_i32_0 : i32, i32
  }
  func.func @transform_4(%arg0: i32, %arg1: memref<2xi32, #tpu.memory_space<smem>>) -> (i32, i32, i32) {
    %c0_i32 = arith.constant 0 : i32
    %c0_i32_0 = arith.constant 0 : i32
    %c0_i32_1 = arith.constant 0 : i32
    return %arg0, %c0_i32, %c0_i32_0 : i32, i32, i32
  }
}

module attributes {stable_mosaic.version = 11 : i64} {
  func.func @_encoder_kernel(%arg0: i32, %arg1: i32, %arg2: memref<64x128xf32, #tpu.memory_space<vmem>>, %arg3: memref<1x64x64xf32, #tpu.memory_space<vmem>>, %arg4: memref<1x128x384xf32, #tpu.memory_space<vmem>>, %arg5: memref<1x1x384xf32, #tpu.memory_space<vmem>>, %arg6: memref<1x128x128xf32, #tpu.memory_space<vmem>>, %arg7: memref<1x1x128xf32, #tpu.memory_space<vmem>>, %arg8: memref<1x1x128xf32, #tpu.memory_space<vmem>>, %arg9: memref<1x1x128xf32, #tpu.memory_space<vmem>>, %arg10: memref<1x128x256xf32, #tpu.memory_space<vmem>>, %arg11: memref<1x1x256xf32, #tpu.memory_space<vmem>>, %arg12: memref<1x256x128xf32, #tpu.memory_space<vmem>>, %arg13: memref<1x1x128xf32, #tpu.memory_space<vmem>>, %arg14: memref<1x1x128xf32, #tpu.memory_space<vmem>>, %arg15: memref<1x1x128xf32, #tpu.memory_space<vmem>>, %arg16: memref<64x128xf32, #tpu.memory_space<vmem>>, %arg17: memref<64x128xf32, #tpu.memory_space<vmem>>) attributes {dimension_semantics = [#tpu.dimension_semantics<parallel>, #tpu.dimension_semantics<arbitrary>], iteration_bounds = array<i64: 2, 2>, scalar_prefetch = 0 : i64, scratch_operands = 1 : i64, tpu.core_type = #tpu.core_type<tc>, window_params = [{transform_indices = @transform_0, window_bounds = array<i64: 64, 128>}, {transform_indices = @transform_1, window_bounds = array<i64: 1, 64, 64>}, {transform_indices = @transform_2, window_bounds = array<i64: 1, 128, 384>}, {transform_indices = @transform_3, window_bounds = array<i64: 1, 1, 384>}, {transform_indices = @transform_4, window_bounds = array<i64: 1, 128, 128>}, {transform_indices = @transform_5, window_bounds = array<i64: 1, 1, 128>}, {transform_indices = @transform_6, window_bounds = array<i64: 1, 1, 128>}, {transform_indices = @transform_7, window_bounds = array<i64: 1, 1, 128>}, {transform_indices = @transform_8, window_bounds = array<i64: 1, 128, 256>}, {transform_indices = @transform_9, window_bounds = array<i64: 1, 1, 256>}, {transform_indices = @transform_10, window_bounds = array<i64: 1, 256, 128>}, {transform_indices = @transform_11, window_bounds = array<i64: 1, 1, 128>}, {transform_indices = @transform_12, window_bounds = array<i64: 1, 1, 128>}, {transform_indices = @transform_13, window_bounds = array<i64: 1, 1, 128>}, {transform_indices = @transform_14, window_bounds = array<i64: 64, 128>}]} {
    %c0_i32 = arith.constant 0 : i32
    %0 = arith.cmpi eq, %arg1, %c0_i32 : i32
    %1 = arith.extui %0 : i1 to i32
    %c0_i32_0 = arith.constant 0 : i32
    %2 = arith.cmpi ne, %1, %c0_i32_0 : i32
    scf.if %2 {
      %c0_79 = arith.constant 0 : index
      %c0_80 = arith.constant 0 : index
      %161 = vector.load %arg2[%c0_79, %c0_80] : memref<64x128xf32, #tpu.memory_space<vmem>>, vector<64x128xf32>
      %c0_81 = arith.constant 0 : index
      %c0_82 = arith.constant 0 : index
      %162 = vector.load %arg17[%c0_81, %c0_82] : memref<64x128xf32, #tpu.memory_space<vmem>>, vector<64x128xf32>
      tpu.vector_store %arg17[%c0_81, %c0_82], %161 {strides = array<i32>} : memref<64x128xf32, #tpu.memory_space<vmem>>, vector<64x128xf32>,
    } else {
    }
    %c0 = arith.constant 0 : index
    %c0_1 = arith.constant 0 : index
    %3 = vector.load %arg17[%c0, %c0_1] : memref<64x128xf32, #tpu.memory_space<vmem>>, vector<64x128xf32>
    %c0_2 = arith.constant 0 : index
    %c0_3 = arith.constant 0 : index
    %c0_4 = arith.constant 0 : index
    %4 = vector.load %arg3[%c0_2, %c0_3, %c0_4] : memref<1x64x64xf32, #tpu.memory_space<vmem>>, vector<1x64x64xf32>
    %5 = vector.shape_cast %4 : vector<1x64x64xf32> to vector<64x64xf32>
    %c0_5 = arith.constant 0 : index
    %c0_6 = arith.constant 0 : index
    %c0_7 = arith.constant 0 : index
    %6 = vector.load %arg4[%c0_5, %c0_6, %c0_7] : memref<1x128x384xf32, #tpu.memory_space<vmem>>, vector<1x128x384xf32>
    %7 = vector.shape_cast %6 : vector<1x128x384xf32> to vector<128x384xf32>
    %cst = arith.constant dense<0.000000e+00> : vector<64x384xf32>
    %8 = tpu.matmul %3, %7, %cst {dimension_numbers = #tpu.dot_dimension_numbers<[1], [0], [0], [1], [0, 0, 1, 1], [], []>} : vector<64x128xf32>, vector<128x384xf32>, vector<64x384xf32> -> vector<64x384xf32>
    %c0_8 = arith.constant 0 : index
    %c0_9 = arith.constant 0 : index
    %c0_10 = arith.constant 0 : index
    %9 = vector.load %arg5[%c0_8, %c0_9, %c0_10] : memref<1x1x384xf32, #tpu.memory_space<vmem>>, vector<1x1x384xf32>
    %10 = vector.shape_cast %9 : vector<1x1x384xf32> to vector<1x384xf32>
    %11 = vector.broadcast %10 : vector<1x384xf32> to vector<64x384xf32>
    %12 = arith.addf %8, %11 : vector<64x384xf32>
    %13 = vector.extract_strided_slice %12 {offsets = [0, 0], sizes = [64, 32], strides = [1, 1]} : vector<64x384xf32> to vector<64x32xf32>
    %14 = vector.extract_strided_slice %12 {offsets = [0, 128], sizes = [64, 32], strides = [1, 1]} : vector<64x384xf32> to vector<64x32xf32>
    %15 = vector.extract_strided_slice %12 {offsets = [0, 256], sizes = [64, 32], strides = [1, 1]} : vector<64x384xf32> to vector<64x32xf32>
    %cst_11 = arith.constant dense<0.000000e+00> : vector<64x64xf32>
    %16 = tpu.matmul %13, %14, %cst_11 {dimension_numbers = #tpu.dot_dimension_numbers<[1], [1], [0], [0], [0, 0, 1, 0], [], []>} : vector<64x32xf32>, vector<64x32xf32>, vector<64x64xf32> -> vector<64x64xf32>
    %cst_12 = arith.constant 0.176776692 : f32
    %17 = vector.broadcast %cst_12 : f32 to vector<64x64xf32>
    %18 = arith.mulf %16, %17 : vector<64x64xf32>
    %19 = arith.addf %18, %5 : vector<64x64xf32>
    %cst_13 = arith.constant dense<0xFF800000> : vector<64xf32>
    %20 = vector.multi_reduction <maximumf>, %19, %cst_13 [1] : vector<64x64xf32> to vector<64xf32>
    %21 = vector.shape_cast %20 : vector<64xf32> to vector<64x1xf32>
    %22 = vector.broadcast %21 : vector<64x1xf32> to vector<64x64xf32>
    %23 = arith.subf %19, %22 : vector<64x64xf32>
    %24 = math.exp %23 : vector<64x64xf32>
    %cst_14 = arith.constant dense<0.000000e+00> : vector<64xf32>
    %25 = vector.multi_reduction <add>, %24, %cst_14 [1] : vector<64x64xf32> to vector<64xf32>
    %26 = vector.shape_cast %25 : vector<64xf32> to vector<64x1xf32>
    %27 = tpu.reciprocal %26 {approx = true} : vector<64x1xf32> -> vector<64x1xf32>
    %28 = vector.broadcast %27 : vector<64x1xf32> to vector<64x64xf32>
    %29 = arith.mulf %24, %28 : vector<64x64xf32>
    %cst_15 = arith.constant dense<0.000000e+00> : vector<64x32xf32>
    %30 = tpu.matmul %29, %15, %cst_15 {dimension_numbers = #tpu.dot_dimension_numbers<[1], [0], [0], [1], [0, 0, 1, 1], [], []>} : vector<64x64xf32>, vector<64x32xf32>, vector<64x32xf32> -> vector<64x32xf32>
    %31 = vector.extract_strided_slice %12 {offsets = [0, 32], sizes = [64, 32], strides = [1, 1]} : vector<64x384xf32> to vector<64x32xf32>
    %32 = vector.extract_strided_slice %12 {offsets = [0, 160], sizes = [64, 32], strides = [1, 1]} : vector<64x384xf32> to vector<64x32xf32>
    %33 = vector.extract_strided_slice %12 {offsets = [0, 288], sizes = [64, 32], strides = [1, 1]} : vector<64x384xf32> to vector<64x32xf32>
    %cst_16 = arith.constant dense<0.000000e+00> : vector<64x64xf32>
    %34 = tpu.matmul %31, %32, %cst_16 {dimension_numbers = #tpu.dot_dimension_numbers<[1], [1], [0], [0], [0, 0, 1, 0], [], []>} : vector<64x32xf32>, vector<64x32xf32>, vector<64x64xf32> -> vector<64x64xf32>
    %cst_17 = arith.constant 0.176776692 : f32
    %35 = vector.broadcast %cst_17 : f32 to vector<64x64xf32>
    %36 = arith.mulf %34, %35 : vector<64x64xf32>
    %37 = arith.addf %36, %5 : vector<64x64xf32>
    %cst_18 = arith.constant dense<0xFF800000> : vector<64xf32>
    %38 = vector.multi_reduction <maximumf>, %37, %cst_18 [1] : vector<64x64xf32> to vector<64xf32>
    %39 = vector.shape_cast %38 : vector<64xf32> to vector<64x1xf32>
    %40 = vector.broadcast %39 : vector<64x1xf32> to vector<64x64xf32>
    %41 = arith.subf %37, %40 : vector<64x64xf32>
    %42 = math.exp %41 : vector<64x64xf32>
    %cst_19 = arith.constant dense<0.000000e+00> : vector<64xf32>
    %43 = vector.multi_reduction <add>, %42, %cst_19 [1] : vector<64x64xf32> to vector<64xf32>
    %44 = vector.shape_cast %43 : vector<64xf32> to vector<64x1xf32>
    %45 = tpu.reciprocal %44 {approx = true} : vector<64x1xf32> -> vector<64x1xf32>
    %46 = vector.broadcast %45 : vector<64x1xf32> to vector<64x64xf32>
    %47 = arith.mulf %42, %46 : vector<64x64xf32>
    %cst_20 = arith.constant dense<0.000000e+00> : vector<64x32xf32>
    %48 = tpu.matmul %47, %33, %cst_20 {dimension_numbers = #tpu.dot_dimension_numbers<[1], [0], [0], [1], [0, 0, 1, 1], [], []>} : vector<64x64xf32>, vector<64x32xf32>, vector<64x32xf32> -> vector<64x32xf32>
    %49 = vector.extract_strided_slice %12 {offsets = [0, 64], sizes = [64, 32], strides = [1, 1]} : vector<64x384xf32> to vector<64x32xf32>
    %50 = vector.extract_strided_slice %12 {offsets = [0, 192], sizes = [64, 32], strides = [1, 1]} : vector<64x384xf32> to vector<64x32xf32>
    %51 = vector.extract_strided_slice %12 {offsets = [0, 320], sizes = [64, 32], strides = [1, 1]} : vector<64x384xf32> to vector<64x32xf32>
    %cst_21 = arith.constant dense<0.000000e+00> : vector<64x64xf32>
    %52 = tpu.matmul %49, %50, %cst_21 {dimension_numbers = #tpu.dot_dimension_numbers<[1], [1], [0], [0], [0, 0, 1, 0], [], []>} : vector<64x32xf32>, vector<64x32xf32>, vector<64x64xf32> -> vector<64x64xf32>
    %cst_22 = arith.constant 0.176776692 : f32
    %53 = vector.broadcast %cst_22 : f32 to vector<64x64xf32>
    %54 = arith.mulf %52, %53 : vector<64x64xf32>
    %55 = arith.addf %54, %5 : vector<64x64xf32>
    %cst_23 = arith.constant dense<0xFF800000> : vector<64xf32>
    %56 = vector.multi_reduction <maximumf>, %55, %cst_23 [1] : vector<64x64xf32> to vector<64xf32>
    %57 = vector.shape_cast %56 : vector<64xf32> to vector<64x1xf32>
    %58 = vector.broadcast %57 : vector<64x1xf32> to vector<64x64xf32>
    %59 = arith.subf %55, %58 : vector<64x64xf32>
    %60 = math.exp %59 : vector<64x64xf32>
    %cst_24 = arith.constant dense<0.000000e+00> : vector<64xf32>
    %61 = vector.multi_reduction <add>, %60, %cst_24 [1] : vector<64x64xf32> to vector<64xf32>
    %62 = vector.shape_cast %61 : vector<64xf32> to vector<64x1xf32>
    %63 = tpu.reciprocal %62 {approx = true} : vector<64x1xf32> -> vector<64x1xf32>
    %64 = vector.broadcast %63 : vector<64x1xf32> to vector<64x64xf32>
    %65 = arith.mulf %60, %64 : vector<64x64xf32>
    %cst_25 = arith.constant dense<0.000000e+00> : vector<64x32xf32>
    %66 = tpu.matmul %65, %51, %cst_25 {dimension_numbers = #tpu.dot_dimension_numbers<[1], [0], [0], [1], [0, 0, 1, 1], [], []>} : vector<64x64xf32>, vector<64x32xf32>, vector<64x32xf32> -> vector<64x32xf32>
    %67 = vector.extract_strided_slice %12 {offsets = [0, 96], sizes = [64, 32], strides = [1, 1]} : vector<64x384xf32> to vector<64x32xf32>
    %68 = vector.extract_strided_slice %12 {offsets = [0, 224], sizes = [64, 32], strides = [1, 1]} : vector<64x384xf32> to vector<64x32xf32>
    %69 = vector.extract_strided_slice %12 {offsets = [0, 352], sizes = [64, 32], strides = [1, 1]} : vector<64x384xf32> to vector<64x32xf32>
    %cst_26 = arith.constant dense<0.000000e+00> : vector<64x64xf32>
    %70 = tpu.matmul %67, %68, %cst_26 {dimension_numbers = #tpu.dot_dimension_numbers<[1], [1], [0], [0], [0, 0, 1, 0], [], []>} : vector<64x32xf32>, vector<64x32xf32>, vector<64x64xf32> -> vector<64x64xf32>
    %cst_27 = arith.constant 0.176776692 : f32
    %71 = vector.broadcast %cst_27 : f32 to vector<64x64xf32>
    %72 = arith.mulf %70, %71 : vector<64x64xf32>
    %73 = arith.addf %72, %5 : vector<64x64xf32>
    %cst_28 = arith.constant dense<0xFF800000> : vector<64xf32>
    %74 = vector.multi_reduction <maximumf>, %73, %cst_28 [1] : vector<64x64xf32> to vector<64xf32>
    %75 = vector.shape_cast %74 : vector<64xf32> to vector<64x1xf32>
    %76 = vector.broadcast %75 : vector<64x1xf32> to vector<64x64xf32>
    %77 = arith.subf %73, %76 : vector<64x64xf32>
    %78 = math.exp %77 : vector<64x64xf32>
    %cst_29 = arith.constant dense<0.000000e+00> : vector<64xf32>
    %79 = vector.multi_reduction <add>, %78, %cst_29 [1] : vector<64x64xf32> to vector<64xf32>
    %80 = vector.shape_cast %79 : vector<64xf32> to vector<64x1xf32>
    %81 = tpu.reciprocal %80 {approx = true} : vector<64x1xf32> -> vector<64x1xf32>
    %82 = vector.broadcast %81 : vector<64x1xf32> to vector<64x64xf32>
    %83 = arith.mulf %78, %82 : vector<64x64xf32>
    %cst_30 = arith.constant dense<0.000000e+00> : vector<64x32xf32>
    %84 = tpu.matmul %83, %69, %cst_30 {dimension_numbers = #tpu.dot_dimension_numbers<[1], [0], [0], [1], [0, 0, 1, 1], [], []>} : vector<64x64xf32>, vector<64x32xf32>, vector<64x32xf32> -> vector<64x32xf32>
    %85 = tpu.concatenate %30, %48, %66, %84 in 1 : vector<64x32xf32>, vector<64x32xf32>, vector<64x32xf32>, vector<64x32xf32> -> vector<64x128xf32>
    %c0_31 = arith.constant 0 : index
    %c0_32 = arith.constant 0 : index
    %c0_33 = arith.constant 0 : index
    %86 = vector.load %arg6[%c0_31, %c0_32, %c0_33] : memref<1x128x128xf32, #tpu.memory_space<vmem>>, vector<1x128x128xf32>
    %87 = vector.shape_cast %86 : vector<1x128x128xf32> to vector<128x128xf32>
    %cst_34 = arith.constant dense<0.000000e+00> : vector<64x128xf32>
    %88 = tpu.matmul %85, %87, %cst_34 {dimension_numbers = #tpu.dot_dimension_numbers<[1], [0], [0], [1], [0, 0, 1, 1], [], []>} : vector<64x128xf32>, vector<128x128xf32>, vector<64x128xf32> -> vector<64x128xf32>
    %c0_35 = arith.constant 0 : index
    %c0_36 = arith.constant 0 : index
    %c0_37 = arith.constant 0 : index
    %89 = vector.load %arg7[%c0_35, %c0_36, %c0_37] : memref<1x1x128xf32, #tpu.memory_space<vmem>>, vector<1x1x128xf32>
    %90 = vector.shape_cast %89 : vector<1x1x128xf32> to vector<1x128xf32>
    %91 = vector.broadcast %90 : vector<1x128xf32> to vector<64x128xf32>
    %92 = arith.addf %88, %91 : vector<64x128xf32>
    %c0_38 = arith.constant 0 : index
    %c0_39 = arith.constant 0 : index
    %c0_40 = arith.constant 0 : index
    %93 = vector.load %arg8[%c0_38, %c0_39, %c0_40] : memref<1x1x128xf32, #tpu.memory_space<vmem>>, vector<1x1x128xf32>
    %94 = vector.shape_cast %93 : vector<1x1x128xf32> to vector<1x128xf32>
    %c0_41 = arith.constant 0 : index
    %c0_42 = arith.constant 0 : index
    %c0_43 = arith.constant 0 : index
    %95 = vector.load %arg9[%c0_41, %c0_42, %c0_43] : memref<1x1x128xf32, #tpu.memory_space<vmem>>, vector<1x1x128xf32>
    %96 = vector.shape_cast %95 : vector<1x1x128xf32> to vector<1x128xf32>
    %cst_44 = arith.constant dense<0.000000e+00> : vector<64xf32>
    %97 = vector.multi_reduction <add>, %92, %cst_44 [1] : vector<64x128xf32> to vector<64xf32>
    %98 = vector.shape_cast %97 : vector<64xf32> to vector<64x1xf32>
    %cst_45 = arith.constant 1.280000e+02 : f32
    %99 = vector.broadcast %cst_45 : f32 to vector<64x1xf32>
    %100 = arith.divf %98, %99 : vector<64x1xf32>
    %101 = vector.broadcast %100 : vector<64x1xf32> to vector<64x128xf32>
    %102 = arith.subf %92, %101 : vector<64x128xf32>
    %103 = arith.mulf %102, %102 : vector<64x128xf32>
    %cst_46 = arith.constant dense<0.000000e+00> : vector<64xf32>
    %104 = vector.multi_reduction <add>, %103, %cst_46 [1] : vector<64x128xf32> to vector<64xf32>
    %105 = vector.shape_cast %104 : vector<64xf32> to vector<64x1xf32>
    %cst_47 = arith.constant 1.270000e+02 : f32
    %106 = vector.broadcast %cst_47 : f32 to vector<64x1xf32>
    %107 = arith.divf %105, %106 : vector<64x1xf32>
    %108 = vector.broadcast %94 : vector<1x128xf32> to vector<64x128xf32>
    %109 = arith.mulf %108, %102 : vector<64x128xf32>
    %110 = math.sqrt %107 : vector<64x1xf32>
    %cst_48 = arith.constant 9.99999997E-7 : f32
    %111 = vector.broadcast %cst_48 : f32 to vector<64x1xf32>
    %112 = arith.addf %110, %111 : vector<64x1xf32>
    %113 = vector.broadcast %112 : vector<64x1xf32> to vector<64x128xf32>
    %114 = arith.divf %109, %113 : vector<64x128xf32>
    %115 = vector.broadcast %96 : vector<1x128xf32> to vector<64x128xf32>
    %116 = arith.addf %114, %115 : vector<64x128xf32>
    %117 = arith.addf %3, %116 : vector<64x128xf32>
    %c0_49 = arith.constant 0 : index
    %c0_50 = arith.constant 0 : index
    %c0_51 = arith.constant 0 : index
    %118 = vector.load %arg10[%c0_49, %c0_50, %c0_51] : memref<1x128x256xf32, #tpu.memory_space<vmem>>, vector<1x128x256xf32>
    %119 = vector.shape_cast %118 : vector<1x128x256xf32> to vector<128x256xf32>
    %cst_52 = arith.constant dense<0.000000e+00> : vector<64x256xf32>
    %120 = tpu.matmul %117, %119, %cst_52 {dimension_numbers = #tpu.dot_dimension_numbers<[1], [0], [0], [1], [0, 0, 1, 1], [], []>} : vector<64x128xf32>, vector<128x256xf32>, vector<64x256xf32> -> vector<64x256xf32>
    %c0_53 = arith.constant 0 : index
    %c0_54 = arith.constant 0 : index
    %c0_55 = arith.constant 0 : index
    %121 = vector.load %arg11[%c0_53, %c0_54, %c0_55] : memref<1x1x256xf32, #tpu.memory_space<vmem>>, vector<1x1x256xf32>
    %122 = vector.shape_cast %121 : vector<1x1x256xf32> to vector<1x256xf32>
    %123 = vector.broadcast %122 : vector<1x256xf32> to vector<64x256xf32>
    %124 = arith.addf %120, %123 : vector<64x256xf32>
    %cst_56 = arith.constant 0.000000e+00 : f32
    %125 = vector.broadcast %cst_56 : f32 to vector<64x256xf32>
    %126 = arith.maximumf %124, %125 : vector<64x256xf32>
    %c0_57 = arith.constant 0 : index
    %c0_58 = arith.constant 0 : index
    %c0_59 = arith.constant 0 : index
    %127 = vector.load %arg12[%c0_57, %c0_58, %c0_59] : memref<1x256x128xf32, #tpu.memory_space<vmem>>, vector<1x256x128xf32>
    %128 = vector.shape_cast %127 : vector<1x256x128xf32> to vector<256x128xf32>
    %cst_60 = arith.constant dense<0.000000e+00> : vector<64x128xf32>
    %129 = tpu.matmul %126, %128, %cst_60 {dimension_numbers = #tpu.dot_dimension_numbers<[1], [0], [0], [1], [0, 0, 1, 1], [], []>} : vector<64x256xf32>, vector<256x128xf32>, vector<64x128xf32> -> vector<64x128xf32>
    %c0_61 = arith.constant 0 : index
    %c0_62 = arith.constant 0 : index
    %c0_63 = arith.constant 0 : index
    %130 = vector.load %arg13[%c0_61, %c0_62, %c0_63] : memref<1x1x128xf32, #tpu.memory_space<vmem>>, vector<1x1x128xf32>
    %131 = vector.shape_cast %130 : vector<1x1x128xf32> to vector<1x128xf32>
    %132 = vector.broadcast %131 : vector<1x128xf32> to vector<64x128xf32>
    %133 = arith.addf %129, %132 : vector<64x128xf32>
    %c0_64 = arith.constant 0 : index
    %c0_65 = arith.constant 0 : index
    %c0_66 = arith.constant 0 : index
    %134 = vector.load %arg14[%c0_64, %c0_65, %c0_66] : memref<1x1x128xf32, #tpu.memory_space<vmem>>, vector<1x1x128xf32>
    %135 = vector.shape_cast %134 : vector<1x1x128xf32> to vector<1x128xf32>
    %c0_67 = arith.constant 0 : index
    %c0_68 = arith.constant 0 : index
    %c0_69 = arith.constant 0 : index
    %136 = vector.load %arg15[%c0_67, %c0_68, %c0_69] : memref<1x1x128xf32, #tpu.memory_space<vmem>>, vector<1x1x128xf32>
    %137 = vector.shape_cast %136 : vector<1x1x128xf32> to vector<1x128xf32>
    %cst_70 = arith.constant dense<0.000000e+00> : vector<64xf32>
    %138 = vector.multi_reduction <add>, %133, %cst_70 [1] : vector<64x128xf32> to vector<64xf32>
    %139 = vector.shape_cast %138 : vector<64xf32> to vector<64x1xf32>
    %cst_71 = arith.constant 1.280000e+02 : f32
    %140 = vector.broadcast %cst_71 : f32 to vector<64x1xf32>
    %141 = arith.divf %139, %140 : vector<64x1xf32>
    %142 = vector.broadcast %141 : vector<64x1xf32> to vector<64x128xf32>
    %143 = arith.subf %133, %142 : vector<64x128xf32>
    %144 = arith.mulf %143, %143 : vector<64x128xf32>
    %cst_72 = arith.constant dense<0.000000e+00> : vector<64xf32>
    %145 = vector.multi_reduction <add>, %144, %cst_72 [1] : vector<64x128xf32> to vector<64xf32>
    %146 = vector.shape_cast %145 : vector<64xf32> to vector<64x1xf32>
    %cst_73 = arith.constant 1.270000e+02 : f32
    %147 = vector.broadcast %cst_73 : f32 to vector<64x1xf32>
    %148 = arith.divf %146, %147 : vector<64x1xf32>
    %149 = vector.broadcast %135 : vector<1x128xf32> to vector<64x128xf32>
    %150 = arith.mulf %149, %143 : vector<64x128xf32>
    %151 = math.sqrt %148 : vector<64x1xf32>
    %cst_74 = arith.constant 9.99999997E-7 : f32
    %152 = vector.broadcast %cst_74 : f32 to vector<64x1xf32>
    %153 = arith.addf %151, %152 : vector<64x1xf32>
    %154 = vector.broadcast %153 : vector<64x1xf32> to vector<64x128xf32>
    %155 = arith.divf %150, %154 : vector<64x128xf32>
    %156 = vector.broadcast %137 : vector<1x128xf32> to vector<64x128xf32>
    %157 = arith.addf %155, %156 : vector<64x128xf32>
    %158 = arith.addf %117, %157 : vector<64x128xf32>
    %c0_75 = arith.constant 0 : index
    %c0_76 = arith.constant 0 : index
    %159 = vector.load %arg17[%c0_75, %c0_76] : memref<64x128xf32, #tpu.memory_space<vmem>>, vector<64x128xf32>
    tpu.vector_store %arg17[%c0_75, %c0_76], %158 {strides = array<i32>} : memref<64x128xf32, #tpu.memory_space<vmem>>, vector<64x128xf32>,
    %c0_77 = arith.constant 0 : index
    %c0_78 = arith.constant 0 : index
    %160 = vector.load %arg16[%c0_77, %c0_78] : memref<64x128xf32, #tpu.memory_space<vmem>>, vector<64x128xf32>
    tpu.vector_store %arg16[%c0_77, %c0_78], %158 {strides = array<i32>} : memref<64x128xf32, #tpu.memory_space<vmem>>, vector<64x128xf32>,
    return
  }
  func.func @transform_0(%arg0: i32, %arg1: i32) -> (i32, i32) {
    %c0_i32 = arith.constant 0 : i32
    %c0_i32_0 = arith.constant 0 : i32
    return %arg0, %c0_i32 : i32, i32
  }
  func.func @transform_1(%arg0: i32, %arg1: i32) -> (i32, i32, i32) {
    %c0_i32 = arith.constant 0 : i32
    %c0_i32_0 = arith.constant 0 : i32
    %c0_i32_1 = arith.constant 0 : i32
    return %arg0, %c0_i32, %c0_i32_0 : i32, i32, i32
  }
  func.func @transform_2(%arg0: i32, %arg1: i32) -> (i32, i32, i32) {
    %c0_i32 = arith.constant 0 : i32
    %c0_i32_0 = arith.constant 0 : i32
    %c0_i32_1 = arith.constant 0 : i32
    return %arg1, %c0_i32, %c0_i32_0 : i32, i32, i32
  }
  func.func @transform_3(%arg0: i32, %arg1: i32) -> (i32, i32, i32) {
    %c0_i32 = arith.constant 0 : i32
    %c0_i32_0 = arith.constant 0 : i32
    %c0_i32_1 = arith.constant 0 : i32
    return %arg1, %c0_i32, %c0_i32_0 : i32, i32, i32
  }
  func.func @transform_4(%arg0: i32, %arg1: i32) -> (i32, i32, i32) {
    %c0_i32 = arith.constant 0 : i32
    %c0_i32_0 = arith.constant 0 : i32
    %c0_i32_1 = arith.constant 0 : i32
    return %arg1, %c0_i32, %c0_i32_0 : i32, i32, i32
  }
  func.func @transform_5(%arg0: i32, %arg1: i32) -> (i32, i32, i32) {
    %c0_i32 = arith.constant 0 : i32
    %c0_i32_0 = arith.constant 0 : i32
    %c0_i32_1 = arith.constant 0 : i32
    return %arg1, %c0_i32, %c0_i32_0 : i32, i32, i32
  }
  func.func @transform_6(%arg0: i32, %arg1: i32) -> (i32, i32, i32) {
    %c0_i32 = arith.constant 0 : i32
    %c0_i32_0 = arith.constant 0 : i32
    %c0_i32_1 = arith.constant 0 : i32
    return %arg1, %c0_i32, %c0_i32_0 : i32, i32, i32
  }
  func.func @transform_7(%arg0: i32, %arg1: i32) -> (i32, i32, i32) {
    %c0_i32 = arith.constant 0 : i32
    %c0_i32_0 = arith.constant 0 : i32
    %c0_i32_1 = arith.constant 0 : i32
    return %arg1, %c0_i32, %c0_i32_0 : i32, i32, i32
  }
  func.func @transform_8(%arg0: i32, %arg1: i32) -> (i32, i32, i32) {
    %c0_i32 = arith.constant 0 : i32
    %c0_i32_0 = arith.constant 0 : i32
    %c0_i32_1 = arith.constant 0 : i32
    return %arg1, %c0_i32, %c0_i32_0 : i32, i32, i32
  }
  func.func @transform_9(%arg0: i32, %arg1: i32) -> (i32, i32, i32) {
    %c0_i32 = arith.constant 0 : i32
    %c0_i32_0 = arith.constant 0 : i32
    %c0_i32_1 = arith.constant 0 : i32
    return %arg1, %c0_i32, %c0_i32_0 : i32, i32, i32
  }
  func.func @transform_10(%arg0: i32, %arg1: i32) -> (i32, i32, i32) {
    %c0_i32 = arith.constant 0 : i32
    %c0_i32_0 = arith.constant 0 : i32
    %c0_i32_1 = arith.constant 0 : i32
    return %arg1, %c0_i32, %c0_i32_0 : i32, i32, i32
  }
  func.func @transform_11(%arg0: i32, %arg1: i32) -> (i32, i32, i32) {
    %c0_i32 = arith.constant 0 : i32
    %c0_i32_0 = arith.constant 0 : i32
    %c0_i32_1 = arith.constant 0 : i32
    return %arg1, %c0_i32, %c0_i32_0 : i32, i32, i32
  }
  func.func @transform_12(%arg0: i32, %arg1: i32) -> (i32, i32, i32) {
    %c0_i32 = arith.constant 0 : i32
    %c0_i32_0 = arith.constant 0 : i32
    %c0_i32_1 = arith.constant 0 : i32
    return %arg1, %c0_i32, %c0_i32_0 : i32, i32, i32
  }
  func.func @transform_13(%arg0: i32, %arg1: i32) -> (i32, i32, i32) {
    %c0_i32 = arith.constant 0 : i32
    %c0_i32_0 = arith.constant 0 : i32
    %c0_i32_1 = arith.constant 0 : i32
    return %arg1, %c0_i32, %c0_i32_0 : i32, i32, i32
  }
  func.func @transform_14(%arg0: i32, %arg1: i32) -> (i32, i32) {
    %c0_i32 = arith.constant 0 : i32
    %c0_i32_0 = arith.constant 0 : i32
    return %arg0, %c0_i32 : i32, i32
  }
}

</mosaic_0001>

<bundles_post_ra>
// kernel: msg_encoder_forward.3
= control target key start
LH: loop header
LB: loop body
LE: loop exit
PB: predicated region body
PF: predicated region fallthrough
CT: control target
= control target key end

     0   :  { %s1037_s0 = inlined_call_operand.vmem [shape: s32[2], index: 0, kind: input, shape index: {}]   ;;  %s1038_s1 = inlined_call_operand.vmem [shape: f32[2,4,16,128], index: 1, kind: input, shape index: {}, may-alias: {1,2}]   ;;  %s1039_s2 = inlined_call_operand.vmem [shape: f32[2,4,16,128], index: 2, kind: input, shape index: {}, may-alias: {1,2}]   ;;  %s1040_s3 = inlined_call_operand.vmem [shape: f32[128,128], index: 3, kind: input, shape index: {}]   ;;  %s1041_s4 = inlined_call_operand.vmem [shape: f32[1,128], index: 4, kind: input, shape index: {}]   ;;  %s1042_s5 = inlined_call_operand.hbm [shape: f32[2,16,128], index: 5, kind: output, shape index: {}]  }
   0x1   :  { %s10_s20 = sshll.u32 %s1037_s0, 4  ;;  %s11_s20 = int_to_ptr.vmem [resolvable:$true] %s10_s20 }
   0x2   :  { %s723_s21 = scalar_lea.vmem %s11_s20, 16  ;;  %p728_p1 = scmp.lt.s32.totalorder %s11_s20, %s11_s20 }
   0x3   :  { %p724_p0 = scmp.ne.s32.totalorder %s11_s20, %s723_s21  ;;  %p729_p2 = scmp.lt.s32.totalorder %s723_s21, %s723_s21 }
   0x5   :  { %p730_p3 = por %p729_p2, %p728_p1 }
   0x7   :  { %p731_p4 = pnand %p730_p3, %p724_p0 }
   0x9   :  { %734 = shalt.err (!%p731_p4)  }
   0xa   :  { %s799_s22 = smov [#allocation3]  }
   0xb   :  { %13 = dma.vmem_to_smem %s11_s20, 16, %s799_s22, [#allocation2] }
   0xc   :  { %777 = dma.done.wait [#allocation2], 16 }
   0xd   :  { %778 = vsyncadd [#allocation2], 4294967280 }
   0xe   :  { %15 = sfence }
   0xf   :  { %16 = vsyncpa [#allocation5], 0 }
  0x10   :  { %18 = vsyncpa [#allocation5 + $0x1], 0  ;;  %s836_s23 = smov 0   ;;  %s838_s24 = smov 0  }
  0x11   :  { %s840_s0 = smov 0   ;;  %s842_s25 = smov 0  }
  0x12 LB: > { %s857_s26 = sadd.s32 4294967295, %s797_s25   ;;  %s599_s27 = sadd.s32 4294967294, %s797_s25   ;;  %s797_s25 = sphi %s842_s25, %s1048_s25   ;;  %s793_s0 = sphi %s840_s0, %s1047_s0   ;;  %s789_s24 = sphi %s838_s24, %s1046_s24   ;;  %s785_s23 = sphi %s836_s23, %s1045_s23  }
  0x13   : > { %s861_s28 = sadd.s32 1, %s797_s25   ;;  %s131_s29 = sadd.s32 1, %s793_s0 }
  0x14   : > { %s128_s30 = ssub.s32 %s797_s25, %s861_s28  ;;  %p141_p5 = scmp.ne.s32.totalorder %s793_s0, %s789_s24 }
  0x15   : > { %p129_p6 = scmp.eq.s32.totalorder %s128_s30, 0  ;;  %p142_p7 = scmp.eq.s32.totalorder %s857_s26, 1 }
  0x16   : > { %p147_p8 = scmp.ne.s32.totalorder %s789_s24, %s785_s23  ;;  %p148_p9 = scmp.eq.s32.totalorder %s599_s27, 1 }
  0x17   : > { %s872_s6 = scalar_select %p129_p6, %s793_s0, %s131_s29  }
  0x18   : > { %p874_p10 = por %p142_p7, %p141_p5  ;;  %p878_p11 = por %p148_p9, %p147_p8 }
  0x19   : > { %p604_p12 = scmp.ge.s32.totalorder %s797_s25, 1  ;;  %p196_p13 = scmp.lt.s32.totalorder %s797_s25, 3 }
  0x1b   : > { %p197_p0 = pnand %p604_p12, %p196_p13 }
  0x1c   : > { %s233_s9 = sld [smem:[#allocation3 + %s857_s26]] (!%p197_p0)  ;;  %p235_p1 = scmp.lt.s32.totalorder (!%p197_p0), %s857_s26, 1 }
  0x1d   : > { %200 = sbr.rel (%p197_p0) target bundleno = 637 (0x27d), region = 36  ;;  %s230_s27 = sand.u32 (!%p197_p0), 1, %s789_s24  }
  0x1e   : > { %s605_s29 = sshll.u32 (!%p197_p0), %s230_s27, 4  ;;  %s619_s30 = sshll.u32 (!%p197_p0), %s857_s26, 8 }
  0x1f   : > { %s997_s14 = scalar_lea.sflag (!%p197_p0), [#allocation5], %s230_s27 }
  0x22   : > { %s236_s10 = scalar_select %p235_p1, %s857_s26, 1  ;;  %v293_v18 = vlaneseq  ;;  %vm304_vm0 = vcmask 130112   ;;  %vm333_vm1 = vcmask 1041409   ;;  %vm335_vm2 = vcmask 1042434   ;;  %v415_v48 = vld [vmem:[%s1040_s3 + $0x78] sm:$0xff]  ;;  %v414_v49 = vld [vmem:[%s1040_s3 + $0x70] sm:$0xff] }
  0x23   : > { %s606_s11 = sadd.s32 4294967295, %s233_s9  ;;  %vm337_vm3 = vcmask 1043459   ;;  %vm340_vm4 = vcmask 125952   ;;  %638 = vmatprep.subr.mxu0 %v415_v48  ;;  %v413_v50 = vld [vmem:[%s1040_s3 + $0x68] sm:$0xff]  ;;  %v412_v51 = vld [vmem:[%s1040_s3 + $0x60] sm:$0xff]  ;;  %v411_v52 = vld [vmem:[%s1040_s3 + $0x58] sm:$0xff] }
  0x24   : > { %p237_p2 = scmp.lt.s32.totalorder %s606_s11, 3  ;;  %s618_s12 = sshll.u32 %s236_s10, 6  ;;  %v294_v19 = vand.u32 127, %v293_v18  ;;  %v917_v23 = vshrl.u32 %v293_v18, 7  ;;  %639 = vmatpush3.msra.mxu0 %v415_v48  ;;  %v410_v53 = vld [vmem:[%s1040_s3 + $0x50] sm:$0xff]  ;;  %v409_v54 = vld [vmem:[%s1040_s3 + $0x48] sm:$0xff] }
  0x25   : > { %s608_s13 = sshll.u32 %s236_s10, 3  ;;  %s250_s16 = scalar_lea.vmem %s1039_s2, %s618_s12  ;;  %640 = vmatprep.subr.mxu0 %v414_v49  ;;  %v408_v55 = vld [vmem:[%s1040_s3 + $0x40] sm:$0xff]  ;;  %v407_v56 = vld [vmem:[%s1040_s3 + $0x38] sm:$0xff]  ;;  %v406_v57 = vld [vmem:[%s1040_s3 + $0x30] sm:$0xff]  ;;  %vm345_vm5 = vcmask 1043456  }
  0x26   : > { %s1050_s11 = smov (!%p237_p2, %s606_s11), 3  ;;  %v890_v0 = vld [vmem:[%s250_s16 + $0x10] sm:$0xff]  ;;  %v892_v1 = vld [vmem:[%s250_s16] sm:$0xff]  ;;  %v897_v2 = vld [vmem:[%s250_s16 + $0x18] sm:$0xff]  ;;  %v299_v20 = vadd.s32 4294967288, %v294_v19  ;;  %v297_v27 = vsub.s32 %v294_v19, %v917_v23  ;;  %641 = vmatpush3.msra.mxu0 %v414_v49  ;;  %s232_s9 = scalar_lea.vmem [#allocation4], %s605_s29 }
  0x27   : > { %s607_s17 = sshll.u32 %s1050_s11, 1  ;;  %v899_v5 = vld [vmem:[%s250_s16 + $0x8] sm:$0xff]  ;;  %v907_v11 = vld [vmem:[%s250_s16 + $0x20] sm:$0xff]  ;;  %v911_v14 = vld [vmem:[%s250_s16 + $0x38] sm:$0xff]  ;;  %642 = vmatprep.subr.mxu0 %v413_v50  ;;  %s516_s10 = sshll.u32 %s232_s9, 4  ;;  %s995_s10 = int_to_ptr.vmem [resolvable:$true] %s516_s10 }
  0x28   : > { %s241_s18 = sadd.s32 %s608_s13, %s607_s17  ;;  %v905_v10 = vld [vmem:[%s250_s16 + $0x28] sm:$0xff]  ;;  %v913_v15 = vld [vmem:[%s250_s16 + $0x30] sm:$0xff]  ;;  %v302_v24 = vsub.s32 %v299_v20, %v917_v23  ;;  %643 = vmatpush3.msra.mxu0 %v413_v50  ;;  %v404_v59 = vld [vmem:[%s1040_s3 + $0x20] sm:$0xff]  ;;  %s993_s13 = scalar_lea.hbm %s1042_s5, %s619_s30 }
  0x29   : > { %s609_s19 = sshll.u32 %s241_s18, 3  ;;  %644 = vmatprep.subr.mxu0 %v412_v51  ;;  %v405_v58 = vld [vmem:[%s1040_s3 + $0x28] sm:$0xff]  ;;  %v403_v60 = vld [vmem:[%s1040_s3 + $0x18] sm:$0xff]  ;;  %v402_v61 = vld [vmem:[%s1040_s3 + $0x10] sm:$0xff]  ;;  %s735_s15 = scalar_lea.vmem %s995_s10, 256 }
  0x2a   : > { %s243_s22 = scalar_lea.vmem %s1038_s1, %s609_s19  ;;  %645 = vmatpush3.msra.mxu0 %v412_v51  ;;  %v401_v62 = vld [vmem:[%s1040_s3 + $0x8] sm:$0xff]  ;;  %v400_v63 = vld [vmem:[%s1040_s3] sm:$0xff]  ;;  %p736_p3 = scmp.ne.s32.totalorder %s995_s10, %s735_s15 }
  0x2b   : > { %v251_v3 = vld [vmem:[%s243_s22] sm:$0xff]  ;;  %v252_v4 = vld [vmem:[%s243_s22 + $0x8] sm:$0xff]  ;;  %646 = vmatprep.subr.mxu0 %v411_v52  ;;  %s800_s26 = smov [#allocation4]  }
  0x2c   : > { %v263_v6 = vmul.f32 %v890_v0, %v251_v3  ;;  %v261_v7 = vmul.f32 %v892_v1, %v251_v3  ;;  %v264_v8 = vmul.f32 %v897_v2, %v252_v4  ;;  %v262_v9 = vmul.f32 %v899_v5, %v252_v4  ;;  %647 = vmatpush3.msra.mxu0 %v411_v52  ;;  %p737_p4 = pnand %p736_p3, %p874_p10  ;;  %s739_s16 = sshll.u32 %s800_s26, 4  ;;  %s740_s16 = int_to_ptr.vmem [resolvable:$false] %s739_s16 }
  0x2d   : > { %v266_v12 = vmul.f32 %v905_v10, %v252_v4  ;;  %v265_v13 = vmul.f32 %v907_v11, %v251_v3  ;;  %v268_v16 = vmul.f32 %v911_v14, %v252_v4  ;;  %v267_v17 = vmul.f32 %v913_v15, %v251_v3  ;;  %648 = vmatprep.subr.mxu0 %v410_v53  ;;  %s741_s17 = scalar_lea.vmem %s740_s16, 512  ;;  %p742_p6 = scmp.lt.s32.totalorder %s995_s10, %s740_s16 }
  0x2e   : > { %273 = vadd.xlane.f32.xlu1 %v263_v6  ;;  %269 = vadd.xlane.f32.xlu0 %v261_v7  ;;  %p738_p5 = pneg %p737_p4  ;;  %p743_p7 = scmp.lt.s32.totalorder %s741_s17, %s735_s15 }
  0x2f   : > { %649 = vmatpush3.msra.mxu0 %v410_v53 }
  0x30   : > { %650 = vmatprep.subr.mxu0 %v409_v54  ;;  %p744_p8 = por %p743_p7, %p742_p6 }
  0x31   : > { %651 = vmatpush3.msra.mxu0 %v409_v54 }
  0x32   : > { %275 = vadd.xlane.f32.xlu1 %v264_v8  ;;  %271 = vadd.xlane.f32.xlu0 %v262_v9  ;;  %p745_p9 = pnand %p744_p8, %p738_p5 }
  0x33   : > { %652 = vmatprep.subr.mxu0 %v408_v55 }
  0x34   : > { %653 = vmatpush3.msra.mxu0 %v408_v55 }
  0x35   : > { %654 = vmatprep.subr.mxu0 %v407_v56 }
  0x36   : > { %279 = vadd.xlane.f32.xlu1 %v266_v12  ;;  %277 = vadd.xlane.f32.xlu0 %v265_v13 }
  0x37   : > { %655 = vmatpush3.msra.mxu0 %v407_v56 }
  0x38   : > { %656 = vmatprep.subr.mxu0 %v406_v57 }
  0x39   : > { %657 = vmatpush3.msra.mxu0 %v406_v57 }
  0x3a   : > { %283 = vadd.xlane.f32.xlu1 %v268_v16  ;;  %281 = vadd.xlane.f32.xlu0 %v267_v17 }
  0x3b   : > { %658 = vmatprep.subr.mxu0 %v405_v58 }
  0x3c   : > { %659 = vmatpush3.msra.mxu0 %v405_v58 }
  0x3d   : > { %660 = vmatprep.subr.mxu0 %v404_v59 }
  0x3e   : > { %661 = vmatpush3.msra.mxu0 %v404_v59 }
  0x3f   : > { %662 = vmatprep.subr.mxu0 %v403_v60 }
  0x40   : > { %663 = vmatpush3.msra.mxu0 %v403_v60 }
  0x41   : > { %664 = vmatprep.subr.mxu0 %v402_v61 }
  0x42   : > { %665 = vmatpush3.msra.mxu0 %v402_v61 }
  0x43   : > { %666 = vmatprep.subr.mxu0 %v401_v62 }
  0x44   : > { %667 = vmatpush3.msra.mxu0 %v401_v62 }
  0x45   : > { %668 = vmatprep.subr.mxu0 %v400_v63 }
  0x46   : > { %669 = vmatpush3.msra.mxu0 %v400_v63 }
  0xb7   : > { %v274_v21 = vpop.xlane.xlu1 %273  ;;  %v270_v22 = vpop.xlane.xlu0 %269 }
  0xb8   : > { %v309_v32 = vrot.slane %v274_v21, %v297_v27  ;;  %v298_v33 = vrot.slane %v270_v22, %v297_v27 }
  0xbb   : > { %v276_v25 = vpop.xlane.xlu1 %275  ;;  %v272_v26 = vpop.xlane.xlu0 %271 }
  0xbc   : > { %v313_v28 = vrot.slane %v276_v25, %v302_v24  ;;  %v303_v29 = vrot.slane %v272_v26, %v302_v24 }
  0xbe   : > { %v314_v36 = vsel %vm304_vm0, %v313_v28, %v309_v32  ;;  %v305_v37 = vsel %vm304_vm0, %v303_v29, %v298_v33  ;;  %v368_v28 = vsub.s32 0, %v917_v23  ;;  %v372_v29 = vsub.s32 1, %v917_v23 }
  0xbf   : > { %v280_v30 = vpop.xlane.xlu1 %279  ;;  %v278_v31 = vpop.xlane.xlu0 %277  ;;  %v334_v43 = vsel %vm333_vm1, %v314_v36, %v305_v37  ;;  %v380_v33 = vsub.s32 3, %v917_v23 }
  0xc0   : > { %v322_v34 = vrot.slane %v280_v30, %v302_v24  ;;  %v318_v35 = vrot.slane %v278_v31, %v297_v27  ;;  %v376_v30 = vsub.s32 2, %v917_v23 }
  0xc2   : > { %v323_v38 = vsel %vm304_vm0, %v322_v34, %v318_v35 }
  0xc3   : > { %v284_v39 = vpop.xlane.xlu1 %283  ;;  %v282_v40 = vpop.xlane.xlu0 %281  ;;  %v336_v45 = vsel %vm335_vm2, %v323_v38, %v334_v43 }
  0xc4   : > { %v331_v41 = vrot.slane %v284_v39, %v302_v24  ;;  %v327_v42 = vrot.slane %v282_v40, %v297_v27 }
  0xc6   : > { %v332_v44 = vsel %vm304_vm0, %v331_v41, %v327_v42 }
  0xc7   : > { %v338_v46 = vsel %vm337_vm3, %v332_v44, %v336_v45 }
  0xc8   : > { %v341_v47 = vsel %vm340_vm4, %v338_v46, 0.0 }
  0xc9   : > { %342 = vadd.xlane.f32.xlu0 %v341_v47 }
 0x152   : > { %v343_v3 = vpop.xlane.xlu0 %342 }
 0x153   : > { %v344_v4 = vmul.f32 0.022097087, %v343_v3 }
 0x155   : > { %v346_v6 = vsel %vm345_vm5, %v344_v4, -inf }
 0x156   : > { %v347_v7 = vrot.slane %v346_v6, 4 }
 0x158   : > { %v348_v8 = vmax.f32 %v346_v6, %v347_v7 }
 0x15a   : > { %v349_v9 = vrot.slane %v348_v8, 2 }
 0x15c   : > { %v350_v12 = vmax.f32 %v348_v8, %v349_v9 }
 0x15e   : > { %v351_v13 = vrot.slane %v350_v12, 1 }
 0x160   : > { %v352_v16 = vmax.f32 %v350_v12, %v351_v13 }
 0x162   : > { %v353_v17 = vsub.f32 %v344_v4, %v352_v16 }
 0x164   : > { %v354_v18 = vmul.f32 1.442695, %v353_v17 }
 0x166   : > { %715 = vpow2.f32 %v354_v18 }
 0x173   : > { %v716_v19 = vpop.eup %715 }
 0x174   : > { %v356_v20 = vsel %vm345_vm5, %v716_v19, 0.0 }
 0x175   : > { %v357_v21 = vrot.slane %v356_v20, 4 }
 0x177   : > { %v358_v22 = vadd.f32 %v357_v21, %v356_v20 }
 0x179   : > { %v359_v24 = vrot.slane %v358_v22, 2 }
 0x17b   : > { %v360_v25 = vadd.f32 %v359_v24, %v358_v22 }
 0x17d   : > { %v361_v26 = vrot.slane %v360_v25, 1 }
 0x17f   : > { %v362_v27 = vadd.f32 %v361_v26, %v360_v25 }
 0x181   : > { %717 = vrcp.f32 %v362_v27 }
 0x18e   : > { %v718_v31 = vpop.eup %717 }
 0x18f   : > { %v364_v32 = vmul.f32 %v718_v31, %v716_v19 }
 0x191   : > { %v369_v34 = vrot.slane %v364_v32, %v368_v28  ;;  %v373_v35 = vrot.slane %v364_v32, %v372_v29  ;;  %v377_v36 = vrot.slane %v364_v32, %v376_v30  ;;  %v381_v37 = vrot.slane %v364_v32, %v380_v33 }
 0x193   : > { %v386_v38 = vmul.f32 %v369_v34, %v892_v1  ;;  %v388_v39 = vmul.f32 %v373_v35, %v890_v0  ;;  %v387_v40 = vmul.f32 %v369_v34, %v899_v5  ;;  %v389_v41 = vmul.f32 %v373_v35, %v897_v2  ;;  %v612_v2 = vld [vmem:[%s1041_s4] ss:$0 sm:$0xff] }
 0x194   : > { %v390_v42 = vmul.f32 %v377_v36, %v907_v11  ;;  %v391_v44 = vmul.f32 %v377_v36, %v905_v10  ;;  %v392_v23 = vmul.f32 %v381_v37, %v913_v15  ;;  %v393_v47 = vmul.f32 %v381_v37, %v911_v14 }
 0x195   : > { %v394_v43 = vadd.f32 %v388_v39, %v386_v38  ;;  %v397_v45 = vadd.f32 %v389_v41, %v387_v40 }
 0x197   : > { %v395_v46 = vadd.f32 %v394_v43, %v390_v42  ;;  %v398_v1 = vadd.f32 %v397_v45, %v391_v44 }
 0x199   : > { %v396_v48 = vadd.f32 %v395_v46, %v392_v23  ;;  %v399_v0 = vadd.f32 %v398_v1, %v393_v47 }
 0x19b   : > { %670 = vmatprep.mubr.f32.mxu0 %v396_v48 }
 0x19c   : > { %671 = vmatmul.mubr.f32.vlgmr.msra.gmra.mxu0 %v399_v0 }
 0x25c   : > { %v672_v5 = vpop.f32.mrf.mxu0 }
 0x25d   : > { %v495_v11 = vadd.f32 %v672_v5, %v612_v2 }
 0x25e   : > { %v489_v10 = vpop.f32.mrf.mxu0 }
 0x25f   : > { %719 = vtanh.f32 %v495_v11  ;;  %v490_v49 = vadd.f32 %v612_v2, %v489_v10 }
 0x261   : > { %721 = vtanh.f32 %v490_v49 }
 0x26c   : > { %v720_v14 = vpop.eup %719 }
 0x26d   : > { %501 = vst [vmem:[%s232_s9 + $0x8] sm:$0xff] %v720_v14 }
 0x26e   : > { %v722_v15 = vpop.eup %721 }
 0x26f   : > { %500 = vst [vmem:[%s232_s9] sm:$0xff] %v722_v15 }
 0x270   : > { %748 = shalt.err (!%p745_p9)
}
 0x271   : > { %s749_s18 = scalar_lea.hbm %s993_s13, 256  ;;  %s753_s21 = scalar_lea.hbm %s1042_s5, 512 }
 0x272   : > { %p750_p12 = scmp.ne.s32.totalorder %s993_s13, %s749_s18  ;;  %p754_p1 = scmp.lt.s32.totalorder %s993_s13, %s1042_s5 }
 0x273   : > { %p755_p2 = scmp.lt.s32.totalorder %s753_s21, %s749_s18 }
 0x274   : > { %p751_p13 = pnand %p750_p12, %p874_p10 }
 0x275   : > { %p756_p3 = por %p755_p2, %p754_p1 }
 0x276   : > { %p752_p0 = pneg %p751_p13 }
 0x278   : > { %p757_p4 = pnand %p756_p3, %p752_p0 }
 0x27a   : > { %760 = shalt.err (!%p757_p4)
}
 0x27b   : > { %s801_s29 = smov 128   ;;  %s802_s30 = smov 8  }
 0x27c   : > { %673 = dma.vmem_to_hbm [thread:$0]  (%p874_p10), %s995_s10, 256, %s993_s13, %s997_s14, %s801_s29, %s801_s29, %s802_s30  }
 0x27d PF: > { %p679_p5 = scmp.ge.s32.totalorder %s797_s25, 2  ;;  %s531_s9 = sand.u32 1, %s785_s23  }
 0x27e   : > { %s532_s11 = scalar_lea.sflag [#allocation5], %s531_s9 }
 0x27f   : > { %p676_p6 = pnand %p679_p5, %p878_p11 }
 0x281   : > { %p677_p7 = pneg %p676_p6 }
 0x283   : > { %780 = dma.done.wait (%p677_p7), %s532_s11, 256  }
 0x284   : > { %782 = vsyncadd (%p677_p7), %s532_s11, 4294967040  ;;  %p21_p8 = scmp.ge.s32.totalorder %s861_s28, 4   ;;  %s1045_s23 = smov %s789_s24 }
 0x285   : > { %s1046_s24 = smov %s793_s0  ;;  %s1047_s0 = smov %s872_s6 }
 0x286   : > { %s1048_s25 = smov %s861_s28  ;;  %23 = sbr.rel (!%p21_p8) target bundleno = 18 (0x12), region = 74 }
 0x28b   :  { %537 = vsyncpa [#allocation5], 1 }
 0x28c   :  { %539 = vsyncpa [#allocation5 + $0x1], 1 }

// kernel: msg_encoder_forward.2
= control target key start
LH: loop header
LB: loop body
LE: loop exit
PB: predicated region body
PF: predicated region fallthrough
CT: control target
= control target key end

     0   :  { %s4953_s29 = smov 0   ;;  %s4955_s30 = smov 0   ;;  %s6351_s0 = inlined_call_operand.vmem [shape: f32[128,128], index: 0, kind: input, shape index: {}]   ;;  %s6352_s1 = inlined_call_operand.vmem [shape: f32[2,64,64], index: 1, kind: input, shape index: {}]   ;;  %s6353_s2 = inlined_call_operand.vmem [shape: f32[2,128,384], index: 2, kind: input, shape index: {}]   ;;  %s6354_s3 = inlined_call_operand.vmem [shape: f32[2,1,384], index: 3, kind: input, shape index: {}]   ;;  %s6355_s4 = inlined_call_operand.vmem [shape: f32[2,128,128], index: 4, kind: input, shape index: {}]   ;;  %s6356_s5 = inlined_call_operand.vmem [shape: f32[2,1,128], index: 5, kind: input, shape index: {}]   ;;  %s6357_s6 = inlined_call_operand.vmem [shape: f32[2,1,128], index: 6, kind: input, shape index: {}]   ;;  %s6358_s7 = inlined_call_operand.vmem [shape: f32[2,1,128], index: 7, kind: input, shape index: {}]   ;;  %s6359_s8 = inlined_call_operand.vmem [shape: f32[2,128,256], index: 8, kind: input, shape index: {}]   ;;  %s6360_s9 = inlined_call_operand.vmem [shape: f32[2,1,256], index: 9, kind: input, shape index: {}]   ;;  %s6361_s10 = inlined_call_operand.vmem [shape: f32[2,256,128], index: 10, kind: input, shape index: {}]   ;;  %s6362_s11 = inlined_call_operand.vmem [shape: f32[2,1,128], index: 11, kind: input, shape index: {}]   ;;  %s6363_s12 = inlined_call_operand.vmem [shape: f32[2,1,128], index: 12, kind: input, shape index: {}]   ;;  %s6364_s13 = inlined_call_operand.vmem [shape: f32[2,1,128], index: 13, kind: input, shape index: {}]   ;;  %s6365_s14 = inlined_call_operand.vmem [shape: f32[128,128], index: 14, kind: output, shape index: {}]  }
   0x1   :  { %6379 = sst [smem:[#allocation20_spill]] %s6351_s0  ;;  %s4957_s15 = smov 0  }
   0x2   :  { %6380 = sst [smem:[#allocation21_spill]] %s6352_s1  ;;  %s4959_s16 = smov 0  }
   0x3   :  { %6381 = sst [smem:[#allocation22_spill]] %s6353_s2  ;;  %s4961_s17 = smov 0  }
   0x4   :  { %6382 = sst [smem:[#allocation23_spill]] %s6354_s3 }
   0x5   :  { %6383 = sst [smem:[#allocation24_spill]] %s6355_s4 }
   0x6   :  { %6384 = sst [smem:[#allocation25_spill]] %s6359_s8 }
   0x7   :  { %6385 = sst [smem:[#allocation26_spill]] %s6365_s14 }
   0x8 LB: > { %6386 = sst [smem:[#allocation3_spill]] %s4864_s15  ;;  %s33_s18 = sadd.s32 1, %s4864_s15  ;;  %s4872_s17 = sphi %s4961_s17, %s24_s17   ;;  %s4868_s16 = sphi %s4959_s16, %s6432_s16   ;;  %s4864_s15 = sphi %s4957_s15, %s6431_s15   ;;  %s4860_s30 = sphi %s4955_s30, %s6430_s30   ;;  %s4856_s29 = sphi %s4953_s29, %s6429_s29  }
   0x9   : > { %6387 = sst [smem:[#allocation4_spill]] %s4868_s16  ;;  %s36_s19 = sadd.s32 1, %s4868_s16 }
   0xa   : > { %6388 = sst [smem:[#allocation5_spill]] %s4872_s17  ;;  %p34_p0 = scmp.ge.s32.totalorder %s33_s18, 2 }
   0xb   : > { %p3852_p1 = scmp.ge.s32.totalorder %s4872_s17, 1  ;;  %p541_p2 = scmp.lt.s32.totalorder %s4872_s17, 5 }
   0xc   : > { %s6434_s18 = smov (%p34_p0, %s33_s18), 0  ;;  %s6436_s19 = smov (!%p34_p0, %s36_s19), %s4868_s16 }
   0xd   : > { %6389 = sst [smem:[#allocation6_spill]] %s6434_s18  ;;  %p542_p3 = pnand %p3852_p1, %p541_p2 }
   0xe   : > { %p38_p4 = scmp.ge.s32.totalorder %s6436_s19, 2 }
   0xf   : > { %545 = sbr.rel (%p542_p3) target bundleno = 3813 (0xee5), region = 76 }
  0x10   : > { %s6438_s19 = smov (%p38_p4, %s6436_s19), 0 }
  0x11   : > { %6390 = sst [smem:[#allocation7_spill]] %s6438_s19 }
  0x14   : > { %s3853_s20 = sshll.u32 %s4860_s30, 3  ;;  %p644_p5 = scmp.lt.s32.totalorder %s4860_s30, 1 }
  0x15   : > { %p639_p6 = scmp.lt.s32.totalorder %s3853_s20, 15  ;;  %p649_p7 = scmp.lt.s32.totalorder %s4856_s29, 1 }
  0x16   : > { %s6440_s30 = smov (!%p644_p5, %s4860_s30), 1  ;;  %s6391_s1 = sld [smem:[#allocation21_spill]] }
  0x17   : > { %s6442_s20 = smov (!%p639_p6, %s3853_s20), 15  ;;  %s3972_s21 = sshll.u32 %s6440_s30, 6 }
  0x18   : > { %s3854_s22 = sshll.u32 %s6442_s20, 3  ;;  %s6393_s0 = sld [smem:[#allocation20_spill]] }
  0x19   : > { %s6395_s14 = sld [smem:[#allocation26_spill]]  ;;  %p3867_p8 = scmp.ne.s32.totalorder %s4856_s29, 0 }
  0x1a   : > { %s5002_s15 = scalar_select %p649_p7, %s4856_s29, 1 }
  0x1b   : > { %s6397_s4 = sld [smem:[#allocation24_spill]] }
  0x1c   : > { %s4989_s25 = scalar_lea.vmem %s6391_s1, %s3972_s21  ;;  %s4520_s30 = smul.u32 384, %s5002_s15 }
  0x1d   : > { %6392 = sst [smem:[#allocation8_spill]] %s4989_s25  ;;  %s3973_s20 = sshll.u32 %s5002_s15, 7 }
  0x1e   : > { %s4994_s28 = scalar_lea.vmem %s6393_s0, %s3854_s22  ;;  %s4521_s21 = smul.u32 3, %s5002_s15 }
  0x1f   : > { %6394 = sst [smem:[#allocation9_spill]] %s4994_s28  ;;  %s4999_s16 = scalar_lea.vmem %s6395_s14, %s3854_s22 }
  0x20   : > { %6396 = sst [smem:[#allocation10_spill]] %s4999_s16  ;;  %s3974_s22 = sshll.u32 %s5002_s15, 8 }
  0x21   : > { %s5010_s19 = scalar_lea.vmem %s6397_s4, %s3973_s20  ;;  %s6398_s2 = sld [smem:[#allocation22_spill]] }
  0x22   : > { %s6399_s3 = sld [smem:[#allocation23_spill]]  ;;  %s3862_s0 = sshll.u32 %s5002_s15, 1 }
  0x23   : > { %s6400_s8 = sld [smem:[#allocation25_spill]]  ;;  %s5044_s14 = scalar_lea.vmem %s6360_s9, %s3862_s0 }
  0x24   : > { %s5049_s25 = scalar_lea.vmem %s6361_s10, %s3974_s22  ;;  %s688_s18 = scalar_lea.vmem %s6362_s11, %s5002_s15 }
  0x25   : > { %704 = sbr.rel (%p3867_p8) target bundleno = 48 (0x30), region = 80  ;;  %s6401_s1 = sld [smem:[#allocation9_spill]] (!%p3867_p8) }
  0x27   : > { %s5015_s26 = scalar_lea.vmem %s6398_s2, %s4520_s30  ;;  %s691_s30 = scalar_lea.vmem %s6363_s12, %s5002_s15 }
  0x28   : > { %s5024_s16 = scalar_lea.vmem %s6399_s3, %s4521_s21 }
  0x29   : > { %s5038_s2 = scalar_lea.vmem %s6400_s8, %s3974_s22  ;;  %s694_s8 = scalar_lea.vmem %s6364_s13, %s5002_s15 }
  0x2b   : > { %v705_v0 = vld [vmem:[%s6401_s1] sm:$0xff]  ;;  %v706_v1 = vld [vmem:[%s6401_s1 + $0x8] sm:$0xff]  ;;  %v707_v2 = vld [vmem:[%s6401_s1 + $0x10] sm:$0xff] }
  0x2c   : > { %713 = vst [vmem:[#allocation2 + $0x30] sm:$0xff] %v705_v0  ;;  %714 = vst [vmem:[#allocation2] sm:$0xff] %v706_v1  ;;  %v708_v3 = vld [vmem:[%s6401_s1 + $0x18] sm:$0xff]  ;;  %v709_v4 = vld [vmem:[%s6401_s1 + $0x20] sm:$0xff] }
  0x2d   : > { %715 = vst [vmem:[#allocation2 + $0x18] sm:$0xff] %v707_v2  ;;  %v710_v5 = vld [vmem:[%s6401_s1 + $0x28] sm:$0xff]  ;;  %716 = vst [vmem:[#allocation2 + $0x10] sm:$0xff] %v708_v3  ;;  %v711_v6 = vld [vmem:[%s6401_s1 + $0x30] sm:$0xff] }
  0x2e   : > { %717 = vst [vmem:[#allocation2 + $0x8] sm:$0xff] %v709_v4  ;;  %718 = vst [vmem:[#allocation2 + $0x20] sm:$0xff] %v710_v5  ;;  %v712_v7 = vld [vmem:[%s6401_s1 + $0x38] sm:$0xff] }
  0x2f   : > { %719 = vst [vmem:[#allocation2 + $0x28] sm:$0xff] %v711_v6  ;;  %720 = vst [vmem:[#allocation2 + $0x38] sm:$0xff] %v712_v7 }
  0x30 PF: > { %v783_v8 = vld [vmem:[%s5015_s26 + $0x170] sm:$0xff]  ;;  %v782_v9 = vld [vmem:[%s5015_s26 + $0x168] sm:$0xff]  ;;  %v780_v10 = vld [vmem:[%s5015_s26 + $0x158] sm:$0xff]  ;;  %v6374_v12 = vmov 0.0   ;;  %v787_v1 = vlaneseq  ;;  %vm1020_vm0 = vcmask 261120   ;;  %s4875_s3 = smov 96   ;;  %s6421_s23 = scalar_lea.vmem %s6356_s5, %s5002_s15 }
  0x31   : > { %802 = vmatprep.subr.mxu0 %v783_v8  ;;  %v779_v11 = vld [vmem:[%s5015_s26 + $0x150] sm:$0xff]  ;;  %866 = vmatprep.mubr.f32.mxu0 %v6374_v12  ;;  %v777_v13 = vld [vmem:[%s5015_s26 + $0x140] sm:$0xff]  ;;  %v776_v14 = vld [vmem:[%s5015_s26 + $0x138] sm:$0xff]  ;;  %s4876_s4 = smov 64   ;;  %s6404_s29 = sld [smem:[#allocation8_spill]]  ;;  %vm1190_vm1 = vcmask 523264  }
  0x32   : > { %803 = vmatpush1.msra.mxu0 %v782_v9  ;;  %v774_v15 = vld [vmem:[%s5015_s26 + $0x128] sm:$0xff]  ;;  %v773_v16 = vld [vmem:[%s5015_s26 + $0x120] sm:$0xff]  ;;  %v771_v17 = vld [vmem:[%s5015_s26 + $0x110] sm:$0xff]  ;;  %v5132_v2 = vshrl.u32 %v787_v1, 7  ;;  %vm2806_vm2 = vcmask 785408   ;;  %s6422_s0 = scalar_lea.vmem %s6357_s6, %s5002_s15  ;;  %s6423_s21 = scalar_lea.vmem %s6358_s7, %s5002_s15 }
  0x33   : > { %804 = vmatprep.subr.mxu0 %v780_v10  ;;  %v770_v18 = vld [vmem:[%s5015_s26 + $0x108] sm:$0xff]  ;;  %v768_v19 = vld [vmem:[%s5015_s26 + $0xf8] sm:$0xff]  ;;  %v767_v20 = vld [vmem:[%s5015_s26 + $0xf0] sm:$0xff] }
  0x34   : > { %805 = vmatpush1.msra.mxu0 %v779_v11  ;;  %v765_v21 = vld [vmem:[%s5015_s26 + $0xe0] sm:$0xff]  ;;  %v5086_v22 = vld [vmem:[#allocation2 + $0x30] sm:$0xff]  ;;  %v764_v23 = vld [vmem:[%s5015_s26 + $0xd8] sm:$0xff]  ;;  %6402 = vst [vmem:[#allocation11_spill] sm:$0xff] %v5132_v2  ;;  %v6373_v3 = vsub.s32 0, %v5132_v2  ;;  %v6372_v8 = vsub.s32 1, %v5132_v2 }
  0x35   : > { %806 = vmatprep.subr.mxu0 %v777_v13  ;;  %4240 = vmatprep.mubr.f32.mxu1 %v5086_v22  ;;  %v762_v24 = vld [vmem:[%s5015_s26 + $0xc8] sm:$0xff]  ;;  %v761_v25 = vld [vmem:[%s5015_s26 + $0xc0] sm:$0xff]  ;;  %v784_v26 = vld [vmem:[%s5015_s26 + $0x178] sm:$0xff] }
  0x36   : > { %807 = vmatpush1.msra.mxu0 %v776_v14  ;;  %v781_v27 = vld [vmem:[%s5015_s26 + $0x160] sm:$0xff]  ;;  %v759_v28 = vld [vmem:[%s5015_s26 + $0xb0] sm:$0xff]  ;;  %4208 = vmatprep.subr.mxu1 %v784_v26  ;;  %v758_v29 = vld [vmem:[%s5015_s26 + $0xa8] sm:$0xff] }
  0x37   : > { %808 = vmatprep.subr.mxu0 %v774_v15  ;;  %4209 = vmatpush3.msra.mxu1 %v784_v26  ;;  %v778_v30 = vld [vmem:[%s5015_s26 + $0x148] sm:$0xff]  ;;  %v756_v31 = vld [vmem:[%s5015_s26 + $0x98] sm:$0xff]  ;;  %v755_v32 = vld [vmem:[%s5015_s26 + $0x90] sm:$0xff]  ;;  %v797_v26 = vsub.s32 2, %v5132_v2 }
  0x38   : > { %809 = vmatpush1.msra.mxu0 %v773_v16  ;;  %4210 = vmatprep.subr.mxu1 %v781_v27  ;;  %v775_v33 = vld [vmem:[%s5015_s26 + $0x130] sm:$0xff]  ;;  %v753_v34 = vld [vmem:[%s5015_s26 + $0x80] sm:$0xff]  ;;  %v752_v35 = vld [vmem:[%s5015_s26 + $0x78] sm:$0xff] }
  0x39   : > { %810 = vmatprep.subr.mxu0 %v771_v17  ;;  %4211 = vmatpush3.msra.mxu1 %v781_v27  ;;  %v772_v36 = vld [vmem:[%s5015_s26 + $0x118] sm:$0xff]  ;;  %v750_v37 = vld [vmem:[%s5015_s26 + $0x68] sm:$0xff]  ;;  %v749_v38 = vld [vmem:[%s5015_s26 + $0x60] sm:$0xff] }
  0x3a   : > { %811 = vmatpush1.msra.mxu0 %v770_v18  ;;  %4212 = vmatprep.subr.mxu1 %v778_v30  ;;  %v769_v39 = vld [vmem:[%s5015_s26 + $0x100] sm:$0xff]  ;;  %v747_v40 = vld [vmem:[%s5015_s26 + $0x50] sm:$0xff]  ;;  %v746_v41 = vld [vmem:[%s5015_s26 + $0x48] sm:$0xff] }
  0x3b   : > { %812 = vmatprep.subr.mxu0 %v768_v19  ;;  %4213 = vmatpush3.msra.mxu1 %v778_v30  ;;  %v766_v42 = vld [vmem:[%s5015_s26 + $0xe8] sm:$0xff]  ;;  %v744_v43 = vld [vmem:[%s5015_s26 + $0x38] sm:$0xff]  ;;  %v743_v44 = vld [vmem:[%s5015_s26 + $0x30] sm:$0xff] }
  0x3c   : > { %813 = vmatpush1.msra.mxu0 %v767_v20  ;;  %4214 = vmatprep.subr.mxu1 %v775_v33  ;;  %v763_v45 = vld [vmem:[%s5015_s26 + $0xd0] sm:$0xff]  ;;  %v741_v46 = vld [vmem:[%s5015_s26 + $0x20] sm:$0xff]  ;;  %v740_v47 = vld [vmem:[%s5015_s26 + $0x18] sm:$0xff] }
  0x3d   : > { %814 = vmatprep.subr.mxu0 %v765_v21  ;;  %4215 = vmatpush3.msra.mxu1 %v775_v33  ;;  %v760_v48 = vld [vmem:[%s5015_s26 + $0xb8] sm:$0xff]  ;;  %v738_v49 = vld [vmem:[%s5015_s26 + $0x8] sm:$0xff]  ;;  %v737_v50 = vld [vmem:[%s5015_s26] sm:$0xff] }
  0x3e   : > { %815 = vmatpush1.msra.mxu0 %v764_v23  ;;  %4216 = vmatprep.subr.mxu1 %v772_v36  ;;  %v757_v51 = vld [vmem:[%s5015_s26 + $0xa0] sm:$0xff]  ;;  %v754_v52 = vld [vmem:[%s5015_s26 + $0x88] sm:$0xff]  ;;  %v751_v53 = vld [vmem:[%s5015_s26 + $0x70] sm:$0xff] }
  0x3f   : > { %816 = vmatprep.subr.mxu0 %v762_v24  ;;  %4217 = vmatpush3.msra.mxu1 %v772_v36  ;;  %v722_v54 = vld [vmem:[#allocation2] sm:$0xff]  ;;  %v748_v55 = vld [vmem:[%s5015_s26 + $0x58] sm:$0xff]  ;;  %v742_v58 = vld [vmem:[%s5015_s26 + $0x28] sm:$0xff] }
  0x40   : > { %817 = vmatpush1.msra.mxu0 %v761_v25  ;;  %4218 = vmatprep.subr.mxu1 %v769_v39  ;;  %v745_v56 = vld [vmem:[%s5015_s26 + $0x40] sm:$0xff]  ;;  %v723_v57 = vld [vmem:[#allocation2 + $0x18] sm:$0xff]  ;;  %v739_v59 = vld [vmem:[%s5015_s26 + $0x10] sm:$0xff] }
  0x41   : > { %818 = vmatprep.subr.mxu0 %v759_v28  ;;  %4219 = vmatpush3.msra.mxu1 %v769_v39  ;;  %v724_v60 = vld [vmem:[#allocation2 + $0x10] sm:$0xff]  ;;  %v725_v61 = vld [vmem:[#allocation2 + $0x8] sm:$0xff]  ;;  %v726_v62 = vld [vmem:[#allocation2 + $0x20] sm:$0xff] }
  0x42   : > { %819 = vmatpush1.msra.mxu0 %v758_v29  ;;  %4220 = vmatprep.subr.mxu1 %v766_v42  ;;  %v727_v63 = vld [vmem:[#allocation2 + $0x28] sm:$0xff]  ;;  %v728_v0 = vld [vmem:[#allocation2 + $0x38] sm:$0xff]  ;;  %v785_v4 = vld [vmem:[%s5024_s16] sm:$0x7]  ;;  %s4877_s16 = smov 32  }
  0x43   : > { %820 = vmatprep.subr.mxu0 %v756_v31  ;;  %4221 = vmatpush3.msra.mxu1 %v766_v42  ;;  %v5138_v5 = vrot.slane %v785_v4, %v6373_v3  ;;  %v5152_v11 = vrot.slane %v785_v4, %v6372_v8 }
  0x44   : > { %821 = vmatpush1.msra.mxu0 %v755_v32  ;;  %4222 = vmatprep.subr.mxu1 %v763_v45  ;;  %v798_v32 = vrot.slane %v785_v4, %v797_v26  ;;  %v5350_v26 = vld [vmem:[%s6404_s29 + $0x10] sm:$0xff] }
  0x45   : > { %822 = vmatprep.subr.mxu0 %v753_v34  ;;  %4223 = vmatpush3.msra.mxu1 %v763_v45 }
  0x46   : > { %823 = vmatpush1.msra.mxu0 %v752_v35  ;;  %4224 = vmatprep.subr.mxu1 %v760_v48 }
  0x47   : > { %824 = vmatprep.subr.mxu0 %v750_v37  ;;  %4225 = vmatpush3.msra.mxu1 %v760_v48 }
  0x48   : > { %825 = vmatpush1.msra.mxu0 %v749_v38  ;;  %4226 = vmatprep.subr.mxu1 %v757_v51 }
  0x49   : > { %826 = vmatprep.subr.mxu0 %v747_v40  ;;  %4227 = vmatpush3.msra.mxu1 %v757_v51 }
  0x4a   : > { %827 = vmatpush1.msra.mxu0 %v746_v41  ;;  %4228 = vmatprep.subr.mxu1 %v754_v52 }
  0x4b   : > { %828 = vmatprep.subr.mxu0 %v744_v43  ;;  %4229 = vmatpush3.msra.mxu1 %v754_v52 }
  0x4c   : > { %829 = vmatpush1.msra.mxu0 %v743_v44  ;;  %4230 = vmatprep.subr.mxu1 %v751_v53 }
  0x4d   : > { %830 = vmatprep.subr.mxu0 %v741_v46  ;;  %4231 = vmatpush3.msra.mxu1 %v751_v53 }
  0x4e   : > { %831 = vmatpush1.msra.mxu0 %v740_v47  ;;  %4232 = vmatprep.subr.mxu1 %v748_v55 }
  0x4f   : > { %832 = vmatprep.subr.mxu0 %v738_v49  ;;  %4233 = vmatpush3.msra.mxu1 %v748_v55 }
  0x50   : > { %833 = vmatpush1.msra.mxu0 %v737_v50  ;;  %4234 = vmatprep.subr.mxu1 %v745_v56 }
  0x51   : > { %867 = vmatmul.mubr.f32.vlgmr.msra.gmra.mxu0 %v5086_v22  ;;  %4235 = vmatpush3.msra.mxu1 %v745_v56 }
  0x52   : > { %872 = vmatprep.mubr.f32.mxu0 %v6374_v12  ;;  %4236 = vmatprep.subr.mxu1 %v742_v58 }
  0x53   : > { %4237 = vmatpush3.msra.mxu1 %v742_v58 }
  0x54   : > { %4238 = vmatprep.subr.mxu1 %v739_v59 }
  0x55   : > { %873 = vmatmul.mubr.f32.gmra.mxu0 %v722_v54  ;;  %4239 = vmatpush3.msra.mxu1 %v739_v59 }
  0x56   : > { %878 = vmatprep.mubr.f32.mxu0 %v6374_v12  ;;  %4241 = vmatmul.mubr.f32.vlgmr.msra.gmra.mxu1 %v722_v54 }
  0x57   : > { %4243 = vmatprep.mubr.f32.mxu1 %v723_v57 }
  0x59   : > { %879 = vmatmul.mubr.f32.gmra.mxu0 %v723_v57 }
  0x5a   : > { %884 = vmatprep.mubr.f32.mxu0 %v6374_v12  ;;  %4244 = vmatmul.mubr.f32.gmra.mxu1 %v724_v60 }
  0x5b   : > { %4246 = vmatprep.mubr.f32.mxu1 %v725_v61 }
  0x5d   : > { %885 = vmatmul.mubr.f32.gmra.mxu0 %v724_v60 }
  0x5e   : > { %890 = vmatprep.mubr.f32.mxu0 %v6374_v12  ;;  %4247 = vmatmul.mubr.f32.gmra.mxu1 %v726_v62 }
  0x5f   : > { %4249 = vmatprep.mubr.f32.mxu1 %v727_v63 }
  0x61   : > { %891 = vmatmul.mubr.f32.gmra.mxu0 %v725_v61 }
  0x62   : > { %896 = vmatprep.mubr.f32.mxu0 %v6374_v12  ;;  %4250 = vmatmul.mubr.f32.gmra.mxu1 %v728_v0 }
  0x65   : > { %897 = vmatmul.mubr.f32.gmra.mxu0 %v726_v62 }
  0x66   : > { %902 = vmatprep.mubr.f32.mxu0 %v6374_v12 }
  0x69   : > { %903 = vmatmul.mubr.f32.gmra.mxu0 %v727_v63 }
  0x6a   : > { %908 = vmatprep.mubr.f32.mxu0 %v6374_v12 }
  0x6d   : > { %909 = vmatmul.mubr.f32.gmra.mxu0 %v728_v0 }
 0x111   : > { %v868_v6 = vpop.f32.mrf.mxu0 }
 0x112   : > { %v5141_v7 = vadd.f32 %v868_v6, %v5138_v5 }
 0x113   : > { %v5144_v9 = vpop.f32.mrf.mxu0 }
 0x114   : > { %4268 = vmatprep.mubr.msk.f32.mxu0 %vm1020_vm0, %v5141_v7  ;;  %v5266_v51 = vadd.f32 %v5144_v9, %v5152_v11 }
 0x115   : > { %v5148_v10 = vpop.f32.mrf.mxu0 }
 0x116   : > { %v4242_v19 = vpop.f32.mrf.mxu1  ;;  %v5276_v52 = vadd.f32 %v5148_v10, %v5138_v5  ;;  %v5338_v10 = vld [vmem:[%s6404_s29 + $0x8] sm:$0xff] }
 0x117   : > { %v876_v13 = vpop.f32.mrf.mxu0  ;;  %v5232_v49 = vadd.f32 %v4242_v19, %v798_v32 }
 0x118   : > { %v5155_v14 = vadd.f32 %v876_v13, %v5152_v11  ;;  %v981_v22 = vpop.f32.mrf.mxu1 }
 0x119   : > { %v5157_v15 = vpop.f32.mrf.mxu0  ;;  %v5238_v50 = vadd.f32 %v981_v22, %v798_v32 }
 0x11a   : > { %1426 = vrot.lane.b32.xlu0 %v5155_v14, %s4875_s3  ;;  %v4245_v24 = vpop.f32.mrf.mxu1  ;;  %v5280_v53 = vadd.f32 %v5157_v15, %v5138_v5  ;;  %v5341_v15 = vld [vmem:[%s6404_s29] sm:$0xff] }
 0x11b   : > { %v882_v16 = vpop.f32.mrf.mxu0  ;;  %v5219_v47 = vadd.f32 %v4245_v24, %v798_v32 }
 0x11c   : > { %v5162_v17 = vadd.f32 %v882_v16, %v5152_v11  ;;  %v991_v28 = vpop.f32.mrf.mxu1 }
 0x11d   : > { %v5164_v18 = vpop.f32.mrf.mxu0  ;;  %v5224_v48 = vadd.f32 %v991_v28, %v798_v32 }
 0x11e   : > { %1428 = vrot.lane.b32.xlu0 %v5162_v17, %s4875_s3  ;;  %v4248_v30 = vpop.f32.mrf.mxu1  ;;  %v5288_v54 = vadd.f32 %v5164_v18, %v5138_v5 }
 0x11f   : > { %v888_v20 = vpop.f32.mrf.mxu0  ;;  %v5192_v41 = vadd.f32 %v4248_v30, %v798_v32 }
 0x120   : > { %v5169_v21 = vadd.f32 %v888_v20, %v5152_v11  ;;  %v1001_v34 = vpop.f32.mrf.mxu1  ;;  %v5345_v20 = vld [vmem:[%s6404_s29 + $0x18] sm:$0xff] }
 0x121   : > { %v5171_v23 = vpop.f32.mrf.mxu0  ;;  %v5208_v46 = vadd.f32 %v1001_v34, %v798_v32 }
 0x122   : > { %1430 = vrot.lane.b32.xlu0 %v5169_v21, %s4875_s3  ;;  %v4251_v36 = vpop.f32.mrf.mxu1  ;;  %v5292_v55 = vadd.f32 %v5171_v23, %v5138_v5 }
 0x123   : > { %v894_v25 = vpop.f32.mrf.mxu0  ;;  %v5190_v38 = vadd.f32 %v4251_v36, %v798_v32 }
 0x124   : > { %v5177_v27 = vadd.f32 %v894_v25, %v5152_v11  ;;  %v1011_v39 = vpop.f32.mrf.mxu1 }
 0x125   : > { %v5179_v29 = vpop.f32.mrf.mxu0  ;;  %v5194_v42 = vadd.f32 %v1011_v39, %v798_v32  ;;  %4280 = vmatprep.subr.mxu1 %v5190_v38  ;;  %v5360_v39 = vld [vmem:[%s6404_s29 + $0x28] sm:$0xff] }
 0x126   : > { %1432 = vrot.lane.b32.xlu1 %v5177_v27, %s4875_s3  ;;  %4281 = vmatpush3.msra.mxu1 %v5190_v38  ;;  %v5300_v56 = vadd.f32 %v5179_v29, %v5138_v5 }
 0x127   : > { %v900_v31 = vpop.f32.mrf.mxu0  ;;  %4282 = vmatprep.subr.mxu1 %v5194_v42 }
 0x128   : > { %v5184_v33 = vadd.f32 %v900_v31, %v5152_v11  ;;  %4283 = vmatpush3.msra.mxu1 %v5194_v42 }
 0x129   : > { %v5186_v35 = vpop.f32.mrf.mxu0  ;;  %4284 = vmatprep.subr.mxu1 %v5192_v41 }
 0x12a   : > { %6403 = vst [vmem:[#allocation12_spill] sm:$0xff] %v5184_v33  ;;  %1434 = vrot.lane.b32.xlu1 %v5184_v33, %s4875_s3  ;;  %4285 = vmatpush3.msra.mxu1 %v5192_v41  ;;  %v5304_v57 = vadd.f32 %v5186_v35, %v5138_v5 }
 0x12b   : > { %v906_v37 = vpop.f32.mrf.mxu0  ;;  %4286 = vmatprep.subr.mxu1 %v5208_v46 }
 0x12c   : > { %v5202_v44 = vadd.f32 %v906_v37, %v5152_v11  ;;  %4287 = vmatpush3.msra.mxu1 %v5208_v46  ;;  %v5357_v37 = vld [vmem:[%s6404_s29 + $0x20] sm:$0xff] }
 0x12d   : > { %v910_v40 = vpop.f32.mrf.mxu0  ;;  %4288 = vmatprep.subr.mxu1 %v5219_v47 }
 0x12e   : > { %1868 = vrot.lane.b32.xlu1 %v5184_v33, %s4876_s4  ;;  %4289 = vmatpush3.msra.mxu1 %v5219_v47  ;;  %v5311_v58 = vadd.f32 %v910_v40, %v5138_v5 }
 0x12f   : > { %v912_v43 = vpop.f32.mrf.mxu0  ;;  %4290 = vmatprep.subr.mxu1 %v5224_v48 }
 0x130   : > { %v5205_v45 = vadd.f32 %v912_v43, %v5152_v11  ;;  %4291 = vmatpush3.msra.mxu1 %v5224_v48 }
 0x131   : > { %4292 = vmatprep.subr.mxu1 %v5232_v49 }
 0x132   : > { %4252 = vmatprep.subr.msk.mxu0 %vm1020_vm0, %v5205_v45  ;;  %1436 = vrot.lane.b32.xlu1 %v5202_v44, %s4875_s3 }
 0x133   : > { %1438 = vrot.lane.b32.xlu0 %v5205_v45, %s4875_s3  ;;  %4253 = vmatpush3.xpose.msk.msra.mxu0 %vm1020_vm0, %v5205_v45 }
 0x134   : > { %4254 = vmatprep.subr.msk.mxu0 %vm1020_vm0, %v5202_v44  ;;  %4293 = vmatpush3.msra.mxu1 %v5232_v49 }
 0x135   : > { %4294 = vmatprep.subr.mxu1 %v5238_v50 }
 0x136   : > { %1870 = vrot.lane.b32.xlu1 %v5202_v44, %s4876_s4  ;;  %4295 = vmatpush3.msra.mxu1 %v5238_v50 }
 0x137   : > { %4255 = vmatpush3.xpose.msk.msra.mxu0 %vm1020_vm0, %v5202_v44 }
 0x138   : > { %4256 = vmatprep.subr.msk.mxu0 %vm1020_vm0, %v5184_v33 }
 0x13a   : > { %1872 = vrot.lane.b32.xlu1 %v5205_v45, %s4876_s4 }
 0x13b   : > { %4257 = vmatpush3.xpose.msk.msra.mxu0 %vm1020_vm0, %v5184_v33 }
 0x13c   : > { %4258 = vmatprep.subr.msk.mxu0 %vm1020_vm0, %v5177_v27 }
 0x13f   : > { %4259 = vmatpush3.xpose.msk.msra.mxu0 %vm1020_vm0, %v5177_v27 }
 0x140   : > { %4260 = vmatprep.subr.msk.mxu0 %vm1020_vm0, %v5169_v21 }
 0x143   : > { %4261 = vmatpush3.xpose.msk.msra.mxu0 %vm1020_vm0, %v5169_v21 }
 0x144   : > { %4262 = vmatprep.subr.msk.mxu0 %vm1020_vm0, %v5162_v17 }
 0x147   : > { %4263 = vmatpush3.xpose.msk.msra.mxu0 %vm1020_vm0, %v5162_v17 }
 0x148   : > { %4264 = vmatprep.subr.msk.mxu0 %vm1020_vm0, %v5155_v14 }
 0x14b   : > { %4265 = vmatpush3.xpose.msk.msra.mxu0 %vm1020_vm0, %v5155_v14 }
 0x14c   : > { %4266 = vmatprep.subr.msk.mxu0 %vm1020_vm0, %v5266_v51 }
 0x14f   : > { %4267 = vmatpush3.xpose.msk.msra.mxu0 %vm1020_vm0, %v5266_v51 }
 0x152   : > { %4269 = vmatmul.mubr.msk.f32.vlgmr.msra.gmra.mxu0 %vm1020_vm0, %v5276_v52 }
 0x153   : > { %4271 = vmatprep.mubr.msk.f32.mxu0 %vm1020_vm0, %v5280_v53 }
 0x156   : > { %4272 = vmatmul.mubr.msk.f32.gmra.mxu0 %vm1020_vm0, %v5288_v54 }
 0x157   : > { %4274 = vmatprep.mubr.msk.f32.mxu0 %vm1020_vm0, %v5292_v55 }
 0x15a   : > { %4275 = vmatmul.mubr.msk.f32.gmra.mxu0 %vm1020_vm0, %v5300_v56 }
 0x15b   : > { %4277 = vmatprep.mubr.msk.f32.mxu0 %vm1020_vm0, %v5304_v57 }
 0x15e   : > { %4278 = vmatmul.mubr.msk.f32.gmra.mxu0 %vm1020_vm0, %v5311_v58 }
 0x18c   : > { %v5315_v59 = vpop.permute.xlu0 %1426 }
 0x190   : > { %v5319_v61 = vpop.permute.xlu0 %1428 }
 0x194   : > { %v5323_v0 = vpop.permute.xlu0 %1430 }
 0x198   : > { %v5317_v60 = vpop.permute.xlu1 %1432 }
 0x19c   : > { %v5321_v62 = vpop.permute.xlu1 %1434 }
 0x1a0   : > { %v1869_v63 = vpop.permute.xlu1 %1868 }
 0x1a4   : > { %v5325_v1 = vpop.permute.xlu1 %1436 }
 0x1a5   : > { %v5327_v4 = vpop.permute.xlu0 %1438 }
 0x1a6   : > { %4308 = vmatprep.subr.msk.mxu1 %vm1020_vm0, %v5327_v4 }
 0x1a8   : > { %v1871_v5 = vpop.permute.xlu1 %1870 }
 0x1ac   : > { %v1873_v6 = vpop.permute.xlu1 %1872 }
 0x1ad   : > { %4364 = vmatprep.subr.msk.mxu0 %vm1020_vm0, %v1873_v6 }
 0x1ae   : > { %4365 = vmatpush3.xpose.msk.msra.mxu0 %vm1020_vm0, %v1873_v6 }
 0x1af   : > { %4366 = vmatprep.subr.msk.mxu0 %vm1020_vm0, %v1871_v5 }
 0x1b2   : > { %4367 = vmatpush3.xpose.msk.msra.mxu0 %vm1020_vm0, %v1871_v5 }
 0x1b3   : > { %4368 = vmatprep.subr.msk.mxu0 %vm1020_vm0, %v1869_v63 }
 0x1b6   : > { %4369 = vmatpush3.xpose.msk.msra.mxu0 %vm1020_vm0, %v1869_v63 }
 0x212   : > { %v4270_v9 = vpop.f32.mrf.mxu0 }
 0x213   : > { %v1175_v11 = vmul.f32 0.17677669, %v4270_v9 }
 0x214   : > { %v1135_v13 = vpop.f32.mrf.mxu0 }
 0x215   : > { %v1174_v16 = vmul.f32 0.17677669, %v1135_v13  ;;  %v1183_v18 = vadd.f32 %v1175_v11, %v5338_v10  ;;  %v5366_v13 = vld [vmem:[%s6404_s29 + $0x30] sm:$0xff] }
 0x216   : > { %v4273_v19 = vpop.f32.mrf.mxu0 }
 0x217   : > { %v1177_v22 = vmul.f32 0.17677669, %v4273_v19  ;;  %v1194_v23 = vsel %vm1190_vm1, %v1183_v18, -inf  ;;  %v1182_v24 = vadd.f32 %v1174_v16, %v5341_v15  ;;  %v5369_v16 = vld [vmem:[%s6404_s29 + $0x38] sm:$0xff] }
 0x218   : > { %1195 = vmax.xlane.f32.xlu0 %v1194_v23  ;;  %v1145_v25 = vpop.f32.mrf.mxu0 }
 0x219   : > { %v1176_v28 = vmul.f32 0.17677669, %v1145_v25  ;;  %v1185_v29 = vadd.f32 %v1177_v22, %v5345_v20  ;;  %v1191_v32 = vsel %vm1190_vm1, %v1182_v24, -inf }
 0x21a   : > { %v4276_v30 = vpop.f32.mrf.mxu0 }
 0x21b   : > { %v1179_v31 = vmul.f32 0.17677669, %v4276_v30  ;;  %v1200_v34 = vsel %vm1190_vm1, %v1185_v29, -inf  ;;  %v1184_v35 = vadd.f32 %v1176_v28, %v5350_v26 }
 0x21c   : > { %1192 = vmax.xlane.f32.xlu0 %v1191_v32  ;;  %1201 = vmax.xlane.f32.xlu1 %v1200_v34  ;;  %v1155_v36 = vpop.f32.mrf.mxu0 }
 0x21d   : > { %v1178_v40 = vmul.f32 0.17677669, %v1155_v36  ;;  %v1197_v5 = vsel %vm1190_vm1, %v1184_v35, -inf  ;;  %v1187_v9 = vadd.f32 %v1179_v31, %v5360_v39 }
 0x21e   : > { %v4279_v43 = vpop.f32.mrf.mxu0 }
 0x21f   : > { %v1181_v63 = vmul.f32 0.17677669, %v4279_v43  ;;  %v1186_v6 = vadd.f32 %v1178_v40, %v5357_v37  ;;  %v1206_v23 = vsel %vm1190_vm1, %v1187_v9, -inf }
 0x220   : > { %1198 = vmax.xlane.f32.xlu1 %v1197_v5  ;;  %v1165_v11 = vpop.f32.mrf.mxu0 }
 0x221   : > { %v1180_v19 = vmul.f32 0.17677669, %v1165_v11  ;;  %v1203_v22 = vsel %vm1190_vm1, %v1186_v6, -inf  ;;  %v1189_v28 = vadd.f32 %v1181_v63, %v5369_v16 }
 0x222   : > { %1204 = vmax.xlane.f32.xlu0 %v1203_v22 }
 0x223   : > { %v1188_v25 = vadd.f32 %v1180_v19, %v5366_v13  ;;  %v1212_v31 = vsel %vm1190_vm1, %v1189_v28, -inf }
 0x224   : > { %1207 = vmax.xlane.f32.xlu1 %v1206_v23 }
 0x225   : > { %v1209_v30 = vsel %vm1190_vm1, %v1188_v25, -inf }
 0x226   : > { %1210 = vmax.xlane.f32.xlu0 %v1209_v30 }
 0x228   : > { %1213 = vmax.xlane.f32.xlu1 %v1212_v31 }
 0x239   : > { %1866 = vrot.lane.b32.xlu1 %v5177_v27, %s4876_s4 }
 0x23c   : > { %1424 = vrot.lane.b32.xlu0 %v5266_v51, %s4875_s3 }
 0x2a1   : > { %v1196_v32 = vpop.xlane.xlu0 %1195 }
 0x2a2   : > { %v1216_v34 = vsub.f32 %v1183_v18, %v1196_v32 }
 0x2a4   : > { %v1225_v36 = vmul.f32 1.442695, %v1216_v34 }
 0x2a5   : > { %v1193_v40 = vpop.xlane.xlu0 %1192  ;;  %v1202_v43 = vpop.xlane.xlu1 %1201 }
 0x2a6   : > { %4626 = vpow2.f32 %v1225_v36  ;;  %v1215_v63 = vsub.f32 %v1182_v24, %v1193_v40  ;;  %v1218_v32 = vsub.f32 %v1185_v29, %v1202_v43 }
 0x2a8   : > { %v1223_v5 = vmul.f32 1.442695, %v1215_v63  ;;  %v1229_v40 = vmul.f32 1.442695, %v1218_v32 }
 0x2a9   : > { %v1199_v11 = vpop.xlane.xlu1 %1198 }
 0x2aa   : > { %4628 = vpow2.f32 %v1223_v5  ;;  %v1217_v34 = vsub.f32 %v1184_v35, %v1199_v11 }
 0x2ab   : > { %v1205_v36 = vpop.xlane.xlu0 %1204  ;;  %4630 = vpow2.f32 %v1229_v40 }
 0x2ac   : > { %v1227_v5 = vmul.f32 1.442695, %v1217_v34 }
 0x2ad   : > { %v1208_v19 = vpop.xlane.xlu1 %1207 }
 0x2ae   : > { %v1220_v63 = vsub.f32 %v1187_v9, %v1208_v19  ;;  %4632 = vpow2.f32 %v1227_v5 }
 0x2af   : > { %v1211_v3 = vpop.xlane.xlu0 %1210 }
 0x2b0   : > { %v1233_v8 = vmul.f32 1.442695, %v1220_v63 }
 0x2b1   : > { %v1214_v22 = vpop.xlane.xlu1 %1213 }
 0x2b2   : > { %4634 = vpow2.f32 %v1233_v8 }
 0x2b3   : > { %v5381_v23 = vpop.eup %4626  ;;  %v1425_v11 = vpop.permute.xlu0 %1424 }
 0x2b4   : > { %v1242_v30 = vsel %vm1190_vm1, %v5381_v23, 0.0 }
 0x2b5   : > { %1243 = vadd.xlane.f32.xlu1 %v1242_v30  ;;  %v1867_v31 = vpop.permute.xlu1 %1866  ;;  %v1219_v30 = vsub.f32 %v1186_v6, %v1205_v36 }
 0x2b6   : > { %4370 = vmatprep.subr.msk.mxu0 %vm1020_vm0, %v1867_v31 }
 0x2b7   : > { %v5386_v18 = vpop.eup %4628  ;;  %4371 = vmatpush3.xpose.msk.msra.mxu0 %vm1020_vm0, %v1867_v31  ;;  %v1222_v31 = vsub.f32 %v1189_v28, %v1214_v22  ;;  %v1231_v12 = vmul.f32 1.442695, %v1219_v30 }
 0x2b8   : > { %v1239_v24 = vsel %vm1190_vm1, %v5386_v18, 0.0  ;;  %v5395_v29 = vpop.eup %4630 }
 0x2b9   : > { %1240 = vadd.xlane.f32.xlu0 %v1239_v24  ;;  %v1221_v24 = vsub.f32 %v1188_v25, %v1211_v3  ;;  %v1237_v2 = vmul.f32 1.442695, %v1222_v31  ;;  %4636 = vpow2.f32 %v1231_v12  ;;  %v1248_v6 = vsel %vm1190_vm1, %v5395_v29, 0.0 }
 0x2bb   : > { %v1235_v33 = vmul.f32 1.442695, %v1221_v24  ;;  %4638 = vpow2.f32 %v1237_v2  ;;  %v5397_v35 = vpop.eup %4632 }
 0x2bc   : > { %v1245_v12 = vsel %vm1190_vm1, %v5397_v35, 0.0 }
 0x2bd   : > { %4640 = vpow2.f32 %v1235_v33 }
 0x2bf   : > { %v5401_v9 = vpop.eup %4634 }
 0x2c0   : > { %v1254_v3 = vsel %vm1190_vm1, %v5401_v9, 0.0 }
 0x2c6   : > { %1410 = vrot.lane.b32.xlu1 %v5276_v52, %s4875_s3  ;;  %v5403_v28 = vpop.eup %4636 }
 0x2c7   : > { %v1251_v33 = vsel %vm1190_vm1, %v5403_v28, 0.0 }
 0x2c8   : > { %v5409_v2 = vpop.eup %4638 }
 0x2c9   : > { %v1260_v8 = vsel %vm1190_vm1, %v5409_v2, 0.0 }
 0x2ca   : > { %v5415_v25 = vpop.eup %4640 }
 0x2cb   : > { %v1257_v43 = vsel %vm1190_vm1, %v5415_v25, 0.0 }
 0x2cf   : > { %1408 = vrot.lane.b32.xlu0 %v5141_v7, %s4875_s3 }
 0x2ea   : > { %1249 = vadd.xlane.f32.xlu1 %v1248_v6 }
 0x2ee   : > { %1255 = vadd.xlane.f32.xlu1 %v1254_v3  ;;  %1246 = vadd.xlane.f32.xlu0 %v1245_v12 }
 0x2f2   : > { %1261 = vadd.xlane.f32.xlu1 %v1260_v8  ;;  %1252 = vadd.xlane.f32.xlu0 %v1251_v33 }
 0x2f6   : > { %1258 = vadd.xlane.f32.xlu0 %v1257_v43 }
 0x303   : > { %1412 = vrot.lane.b32.xlu1 %v5280_v53, %s4875_s3 }
 0x307   : > { %1862 = vrot.lane.b32.xlu1 %v5162_v17, %s4876_s4 }
 0x30b   : > { %1418 = vrot.lane.b32.xlu1 %v5300_v56, %s4875_s3 }
 0x30c   : > { %1864 = vrot.lane.b32.xlu0 %v5169_v21, %s4876_s4 }
 0x30f   : > { %1420 = vrot.lane.b32.xlu1 %v5304_v57, %s4875_s3 }
 0x310   : > { %1414 = vrot.lane.b32.xlu0 %v5288_v54, %s4875_s3 }
 0x313   : > { %1858 = vrot.lane.b32.xlu1 %v5266_v51, %s4876_s4 }
 0x314   : > { %1416 = vrot.lane.b32.xlu0 %v5292_v55, %s4875_s3 }
 0x317   : > { %1844 = vrot.lane.b32.xlu1 %v5276_v52, %s4876_s4 }
 0x318   : > { %1860 = vrot.lane.b32.xlu0 %v5155_v14, %s4876_s4 }
 0x31b   : > { %1848 = vrot.lane.b32.xlu1 %v5288_v54, %s4876_s4 }
 0x31c   : > { %1422 = vrot.lane.b32.xlu0 %v5311_v58, %s4875_s3 }
 0x31f   : > { %1852 = vrot.lane.b32.xlu1 %v5300_v56, %s4876_s4 }
 0x320   : > { %1842 = vrot.lane.b32.xlu0 %v5141_v7, %s4876_s4 }
 0x323   : > { %1856 = vrot.lane.b32.xlu1 %v5311_v58, %s4876_s4 }
 0x324   : > { %1846 = vrot.lane.b32.xlu0 %v5280_v53, %s4876_s4 }
 0x328   : > { %1850 = vrot.lane.b32.xlu0 %v5292_v55, %s4876_s4 }
 0x32c   : > { %1854 = vrot.lane.b32.xlu0 %v5304_v57, %s4876_s4 }
 0x33e   : > { %v1244_v19 = vpop.xlane.xlu1 %1243 }
 0x33f   : > { %4642 = vrcp.f32 %v1244_v19 }
 0x342   : > { %v1241_v22 = vpop.xlane.xlu0 %1240 }
 0x343   : > { %4644 = vrcp.f32 %v1241_v22 }
 0x34c   : > { %v4643_v32 = vpop.eup %4642 }
 0x34d   : > { %v1272_v40 = vmul.f32 %v4643_v32, %v5381_v23 }
 0x350   : > { %v4645_v34 = vpop.eup %4644 }
 0x351   : > { %v1271_v36 = vmul.f32 %v4645_v34, %v5386_v18 }
 0x353   : > { %4296 = vmatprep.mubr.msk.f32.mxu1 %vm1190_vm1, %v1271_v36 }
 0x354   : > { %4297 = vmatmul.mubr.msk.f32.vlgmr.msra.gmra.mxu1 %vm1190_vm1, %v1272_v40 }
 0x355   : > { %4309 = vmatpush3.xpose.msk.msra.mxu1 %vm1020_vm0, %v5327_v4 }
 0x356   : > { %4310 = vmatprep.subr.msk.mxu1 %vm1020_vm0, %v5325_v1 }
 0x359   : > { %4311 = vmatpush3.xpose.msk.msra.mxu1 %vm1020_vm0, %v5325_v1 }
 0x35a   : > { %4312 = vmatprep.subr.msk.mxu1 %vm1020_vm0, %v5321_v62 }
 0x35d   : > { %4313 = vmatpush3.xpose.msk.msra.mxu1 %vm1020_vm0, %v5321_v62  ;;  %v1409_v62 = vpop.permute.xlu0 %1408 }
 0x35e   : > { %4314 = vmatprep.subr.msk.mxu1 %vm1020_vm0, %v5317_v60 }
 0x361   : > { %4315 = vmatpush3.xpose.msk.msra.mxu1 %vm1020_vm0, %v5317_v60  ;;  %v1411_v60 = vpop.permute.xlu1 %1410 }
 0x362   : > { %4316 = vmatprep.subr.msk.mxu1 %vm1020_vm0, %v5323_v0 }
 0x365   : > { %4317 = vmatpush3.xpose.msk.msra.mxu1 %vm1020_vm0, %v5323_v0 }
 0x366   : > { %4318 = vmatprep.subr.msk.mxu1 %vm1020_vm0, %v5319_v61 }
 0x369   : > { %4319 = vmatpush3.xpose.msk.msra.mxu1 %vm1020_vm0, %v5319_v61 }
 0x36a   : > { %4320 = vmatprep.subr.msk.mxu1 %vm1020_vm0, %v5315_v59 }
 0x36d   : > { %4321 = vmatpush3.xpose.msk.msra.mxu1 %vm1020_vm0, %v5315_v59 }
 0x36e   : > { %4322 = vmatprep.subr.msk.mxu1 %vm1020_vm0, %v1425_v11 }
 0x371   : > { %4323 = vmatpush3.xpose.msk.msra.mxu1 %vm1020_vm0, %v1425_v11 }
 0x373   : > { %v1250_v1 = vpop.xlane.xlu1 %1249 }
 0x374   : > { %4646 = vrcp.f32 %v1250_v1 }
 0x377   : > { %v1256_v0 = vpop.xlane.xlu1 %1255  ;;  %v1247_v4 = vpop.xlane.xlu0 %1246 }
 0x378   : > { %4648 = vrcp.f32 %v1247_v4 }
 0x379   : > { %4650 = vrcp.f32 %v1256_v0 }
 0x37b   : > { %v1262_v23 = vpop.xlane.xlu1 %1261  ;;  %v1253_v18 = vpop.xlane.xlu0 %1252 }
 0x37c   : > { %4652 = vrcp.f32 %v1253_v18 }
 0x37d   : > { %4654 = vrcp.f32 %v1262_v23 }
 0x37f   : > { %v1413_v61 = vpop.permute.xlu1 %1412  ;;  %v1259_v63 = vpop.xlane.xlu0 %1258 }
 0x380   : > { %4656 = vrcp.f32 %v1259_v63 }
 0x381   : > { %v4647_v30 = vpop.eup %4646 }
 0x382   : > { %v1274_v12 = vmul.f32 %v4647_v30, %v5395_v29 }
 0x383   : > { %v1863_v59 = vpop.permute.xlu1 %1862  ;;  %v1865_v5 = vpop.permute.xlu0 %1864 }
 0x384   : > { %4372 = vmatprep.subr.msk.mxu0 %vm1020_vm0, %v1865_v5 }
 0x385   : > { %4373 = vmatpush3.xpose.msk.msra.mxu0 %vm1020_vm0, %v1865_v5  ;;  %v4649_v31 = vpop.eup %4648 }
 0x386   : > { %4374 = vmatprep.subr.msk.mxu0 %vm1020_vm0, %v1863_v59  ;;  %v1273_v3 = vmul.f32 %v4649_v31, %v5397_v35  ;;  %v4651_v8 = vpop.eup %4650 }
 0x387   : > { %v1419_v24 = vpop.permute.xlu1 %1418  ;;  %v1415_v6 = vpop.permute.xlu0 %1414  ;;  %v1276_v32 = vmul.f32 %v4651_v8, %v5401_v9 }
 0x388   : > { %4299 = vmatprep.mubr.msk.f32.mxu1 %vm1190_vm1, %v1273_v3 }
 0x389   : > { %4375 = vmatpush3.xpose.msk.msra.mxu0 %vm1020_vm0, %v1863_v59  ;;  %v4653_v33 = vpop.eup %4652  ;;  %4300 = vmatmul.mubr.msk.f32.gmra.mxu1 %vm1190_vm1, %v1274_v12 }
 0x38a   : > { %v1275_v19 = vmul.f32 %v4653_v33, %v5403_v28  ;;  %v4655_v22 = vpop.eup %4654 }
 0x38b   : > { %v1421_v43 = vpop.permute.xlu1 %1420  ;;  %v1417_v11 = vpop.permute.xlu0 %1416  ;;  %v1278_v40 = vmul.f32 %v4655_v22, %v5409_v2 }
 0x38c   : > { %4302 = vmatprep.mubr.msk.f32.mxu1 %vm1190_vm1, %v1275_v19 }
 0x38d   : > { %v4657_v34 = vpop.eup %4656  ;;  %4303 = vmatmul.mubr.msk.f32.gmra.mxu1 %vm1190_vm1, %v1276_v32 }
 0x38e   : > { %v1277_v29 = vmul.f32 %v4657_v34, %v5415_v25 }
 0x38f   : > { %v1859_v35 = vpop.permute.xlu1 %1858  ;;  %v1861_v36 = vpop.permute.xlu0 %1860 }
 0x390   : > { %4305 = vmatprep.mubr.msk.f32.mxu1 %vm1190_vm1, %v1277_v29  ;;  %4376 = vmatprep.subr.msk.mxu0 %vm1020_vm0, %v1861_v36 }
 0x391   : > { %4377 = vmatpush3.xpose.msk.msra.mxu0 %vm1020_vm0, %v1861_v36  ;;  %4306 = vmatmul.mubr.msk.f32.gmra.mxu1 %vm1190_vm1, %v1278_v40 }
 0x392   : > { %4378 = vmatprep.subr.msk.mxu0 %vm1020_vm0, %v1859_v35  ;;  %4324 = vmatprep.mubr.msk.f32.mxu1 %vm1020_vm0, %v1409_v62 }
 0x393   : > { %v1845_v9 = vpop.permute.xlu1 %1844  ;;  %v1423_v28 = vpop.permute.xlu0 %1422 }
 0x395   : > { %4379 = vmatpush3.xpose.msk.msra.mxu0 %vm1020_vm0, %v1859_v35  ;;  %4325 = vmatmul.mubr.msk.f32.vlgmr.msra.gmra.mxu1 %vm1020_vm0, %v1411_v60 }
 0x396   : > { %4327 = vmatprep.mubr.msk.f32.mxu1 %vm1020_vm0, %v1413_v61 }
 0x397   : > { %v1843_v25 = vpop.permute.xlu0 %1842  ;;  %v1849_v1 = vpop.permute.xlu1 %1848 }
 0x398   : > { %4380 = vmatprep.mubr.msk.f32.mxu0 %vm1020_vm0, %v1843_v25 }
 0x399   : > { %4381 = vmatmul.mubr.msk.f32.vlgmr.msra.gmra.mxu0 %vm1020_vm0, %v1845_v9  ;;  %4328 = vmatmul.mubr.msk.f32.gmra.mxu1 %vm1020_vm0, %v1415_v6 }
 0x39a   : > { %4330 = vmatprep.mubr.msk.f32.mxu1 %vm1020_vm0, %v1417_v11 }
 0x39b   : > { %v1847_v2 = vpop.permute.xlu0 %1846  ;;  %v1853_v62 = vpop.permute.xlu1 %1852 }
 0x39c   : > { %4383 = vmatprep.mubr.msk.f32.mxu0 %vm1020_vm0, %v1847_v2 }
 0x39d   : > { %4384 = vmatmul.mubr.msk.f32.gmra.mxu0 %vm1020_vm0, %v1849_v1  ;;  %4331 = vmatmul.mubr.msk.f32.gmra.mxu1 %vm1020_vm0, %v1419_v24 }
 0x39e   : > { %4333 = vmatprep.mubr.msk.f32.mxu1 %vm1020_vm0, %v1421_v43 }
 0x39f   : > { %v1851_v60 = vpop.permute.xlu0 %1850  ;;  %v1857_v4 = vpop.permute.xlu1 %1856 }
 0x3a0   : > { %4386 = vmatprep.mubr.msk.f32.mxu0 %vm1020_vm0, %v1851_v60 }
 0x3a1   : > { %4387 = vmatmul.mubr.msk.f32.gmra.mxu0 %vm1020_vm0, %v1853_v62  ;;  %4334 = vmatmul.mubr.msk.f32.gmra.mxu1 %vm1020_vm0, %v1423_v28 }
 0x3a3   : > { %v1855_v0 = vpop.permute.xlu0 %1854 }
 0x3a4   : > { %4389 = vmatprep.mubr.msk.f32.mxu0 %vm1020_vm0, %v1855_v0 }
 0x3a5   : > { %4390 = vmatmul.mubr.msk.f32.gmra.mxu0 %vm1020_vm0, %v1857_v4 }
 0x414   : > { %v5575_v4 = vpop.f32.mrf.mxu1 }
 0x459   : > { %v4382_v23 = vpop.f32.mrf.mxu0 }
 0x45a   : > { %v2012_v18 = vmul.f32 0.17677669, %v4382_v23  ;;  %v5577_v23 = vpop.f32.mrf.mxu1 }
 0x45b   : > { %v1972_v61 = vpop.f32.mrf.mxu0  ;;  %6405 = vst [vmem:[#allocation13_spill] sm:$0xff] %v5577_v23 }
 0x45c   : > { %v2011_v63 = vmul.f32 0.17677669, %v1972_v61  ;;  %v2020_v59 = vadd.f32 %v2012_v18, %v5338_v10  ;;  %v5579_v18 = vpop.f32.mrf.mxu1 }
 0x45d   : > { %v4385_v5 = vpop.f32.mrf.mxu0  ;;  %6406 = vst [vmem:[#allocation14_spill] sm:$0xff] %v5579_v18 }
 0x45e   : > { %v2014_v30 = vmul.f32 0.17677669, %v4385_v5  ;;  %v2030_v31 = vsel %vm1190_vm1, %v2020_v59, -inf  ;;  %v2019_v24 = vadd.f32 %v2011_v63, %v5341_v15  ;;  %v5581_v61 = vpop.f32.mrf.mxu1 }
 0x45f   : > { %2031 = vmax.xlane.f32.xlu1 %v2030_v31  ;;  %v1982_v6 = vpop.f32.mrf.mxu0  ;;  %6407 = vst [vmem:[#allocation15_spill] sm:$0xff] %v5581_v61 }
 0x460   : > { %v2013_v3 = vmul.f32 0.17677669, %v1982_v6  ;;  %v2027_v12 = vsel %vm1190_vm1, %v2019_v24, -inf  ;;  %v2022_v8 = vadd.f32 %v2014_v30, %v5345_v20  ;;  %v5583_v63 = vpop.f32.mrf.mxu1 }
 0x461   : > { %2028 = vmax.xlane.f32.xlu0 %v2027_v12  ;;  %v4388_v33 = vpop.f32.mrf.mxu0  ;;  %6408 = vst [vmem:[#allocation16_spill] sm:$0xff] %v5583_v63 }
 0x462   : > { %v2016_v43 = vmul.f32 0.17677669, %v4388_v33  ;;  %v2036_v11 = vsel %vm1190_vm1, %v2022_v8, -inf  ;;  %v2021_v19 = vadd.f32 %v2013_v3, %v5350_v26  ;;  %v5585_v5 = vpop.f32.mrf.mxu1 }
 0x463   : > { %2037 = vmax.xlane.f32.xlu1 %v2036_v11  ;;  %v1992_v22 = vpop.f32.mrf.mxu0  ;;  %6409 = vst [vmem:[#allocation17_spill] sm:$0xff] %v5585_v5 }
 0x464   : > { %v2015_v32 = vmul.f32 0.17677669, %v1992_v22  ;;  %v2033_v34 = vsel %vm1190_vm1, %v2021_v19, -inf  ;;  %v5532_v29 = vadd.f32 %v2016_v43, %v5360_v39  ;;  %v5587_v30 = vpop.f32.mrf.mxu1 }
 0x465   : > { %2034 = vmax.xlane.f32.xlu0 %v2033_v34  ;;  %v4391_v35 = vpop.f32.mrf.mxu0  ;;  %6410 = vst [vmem:[#allocation18_spill] sm:$0xff] %v5587_v30 }
 0x466   : > { %v2018_v36 = vmul.f32 0.17677669, %v4391_v35  ;;  %v2042_v40 = vsel %vm1190_vm1, %v5532_v29, -inf  ;;  %v5537_v9 = vadd.f32 %v2015_v32, %v5357_v37  ;;  %v5589_v31 = vpop.f32.mrf.mxu1 }
 0x467   : > { %2043 = vmax.xlane.f32.xlu1 %v2042_v40  ;;  %v2002_v28 = vpop.f32.mrf.mxu0  ;;  %6411 = vst [vmem:[#allocation19_spill] sm:$0xff] %v5589_v31 }
 0x468   : > { %v2017_v25 = vmul.f32 0.17677669, %v2002_v28  ;;  %v2039_v1 = vsel %vm1190_vm1, %v5537_v9, -inf  ;;  %v5542_v2 = vadd.f32 %v2018_v36, %v5369_v16  ;;  %v4326_v12 = vpop.f32.mrf.mxu1 }
 0x469   : > { %2040 = vmax.xlane.f32.xlu0 %v2039_v1 }
 0x46a   : > { %v2048_v62 = vsel %vm1190_vm1, %v5542_v2, -inf  ;;  %v5547_v60 = vadd.f32 %v2017_v25, %v5366_v13  ;;  %v1538_v35 = vpop.f32.mrf.mxu1 }
 0x46b   : > { %2049 = vmax.xlane.f32.xlu1 %v2048_v62 }
 0x46c   : > { %v2045_v0 = vsel %vm1190_vm1, %v5547_v60, -inf  ;;  %v4329_v62 = vpop.f32.mrf.mxu1 }
 0x46d   : > { %2046 = vmax.xlane.f32.xlu0 %v2045_v0  ;;  %v1580_v31 = vmul.f32 0.17677669, %v4329_v62 }
 0x47c   : > { %1703 = vrot.lane.b32.xlu1 %v5190_v38, %s4875_s3 }
 0x480   : > { %1699 = vrot.lane.b32.xlu1 %v5192_v41, %s4875_s3 }
 0x483   : > { %1701 = vrot.lane.b32.xlu0 %v5194_v42, %s4875_s3 }
 0x484   : > { %1697 = vrot.lane.b32.xlu1 %v5208_v46, %s4875_s3 }
 0x487   : > { %1695 = vrot.lane.b32.xlu0 %v5219_v47, %s4875_s3 }
 0x488   : > { %1693 = vrot.lane.b32.xlu1 %v5224_v48, %s4875_s3 }
 0x48b   : > { %2129 = vrot.lane.b32.xlu0 %v5190_v38, %s4876_s4 }
 0x48c   : > { %1691 = vrot.lane.b32.xlu1 %v5232_v49, %s4875_s3 }
 0x48f   : > { %2125 = vrot.lane.b32.xlu0 %v5192_v41, %s4876_s4 }
 0x490   : > { %1689 = vrot.lane.b32.xlu1 %v5238_v50, %s4875_s3 }
 0x494   : > { %2127 = vrot.lane.b32.xlu1 %v5194_v42, %s4876_s4 }
 0x498   : > { %2123 = vrot.lane.b32.xlu1 %v5208_v46, %s4876_s4 }
 0x4e8   : > { %v2032_v6 = vpop.xlane.xlu1 %2031 }
 0x4e9   : > { %v2052_v3 = vsub.f32 %v2020_v59, %v2032_v6 }
 0x4ea   : > { %v2029_v33 = vpop.xlane.xlu0 %2028 }
 0x4eb   : > { %v2061_v43 = vmul.f32 1.442695, %v2052_v3  ;;  %v2051_v11 = vsub.f32 %v2019_v24, %v2029_v33  ;;  %v1548_v24 = vpop.f32.mrf.mxu1 }
 0x4ec   : > { %v2038_v22 = vpop.xlane.xlu1 %2037 }
 0x4ed   : > { %4658 = vpow2.f32 %v2061_v43  ;;  %v2059_v32 = vmul.f32 1.442695, %v2051_v11  ;;  %v2054_v34 = vsub.f32 %v2022_v8, %v2038_v22  ;;  %v4332_v33 = vpop.f32.mrf.mxu1 }
 0x4ee   : > { %v2035_v36 = vpop.xlane.xlu0 %2034  ;;  %v1582_v30 = vmul.f32 0.17677669, %v4332_v33 }
 0x4ef   : > { %4660 = vpow2.f32 %v2059_v32  ;;  %v2065_v40 = vmul.f32 1.442695, %v2054_v34  ;;  %v2053_v28 = vsub.f32 %v2021_v19, %v2035_v36  ;;  %v1578_v32 = vmul.f32 0.17677669, %v4326_v12 }
 0x4f0   : > { %v5591_v25 = vpop.xlane.xlu1 %2043  ;;  %v5624_v18 = vadd.f32 %v1582_v30, %v5360_v39 }
 0x4f1   : > { %4662 = vpow2.f32 %v2065_v40  ;;  %v2063_v1 = vmul.f32 1.442695, %v2053_v28  ;;  %v1577_v40 = vmul.f32 0.17677669, %v1538_v35  ;;  %v1558_v28 = vpop.f32.mrf.mxu1 }
 0x4f2   : > { %v5593_v0 = vpop.xlane.xlu0 %2040  ;;  %v1581_v39 = vmul.f32 0.17677669, %v1558_v28 }
 0x4f3   : > { %4664 = vpow2.f32 %v2063_v1  ;;  %v4335_v63 = vpop.f32.mrf.mxu1  ;;  %v5619_v35 = vadd.f32 %v1577_v40, %v5341_v15  ;;  %v5629_v15 = vadd.f32 %v1580_v31, %v5345_v20 }
 0x4f4   : > { %v5595_v59 = vpop.xlane.xlu1 %2049  ;;  %v1589_v28 = vadd.f32 %v1581_v39, %v5357_v37 }
 0x4f5   : > { %v1593_v62 = vsel %vm1190_vm1, %v5619_v35, -inf  ;;  %v1568_v20 = vpop.f32.mrf.mxu1 }
 0x4f6   : > { %v5597_v6 = vpop.xlane.xlu0 %2046 }
 0x4f8   : > { %v1704_v3 = vpop.permute.xlu1 %1703 }
 0x4f9   : > { %4336 = vmatprep.subr.mxu1 %v1704_v3 }
 0x4fa   : > { %v5599_v8 = vpop.eup %4658  ;;  %4337 = vmatpush3.msra.mxu1 %v1704_v3  ;;  %v1702_v19 = vpop.permute.xlu0 %1701 }
 0x4fb   : > { %4338 = vmatprep.subr.mxu1 %v1702_v19  ;;  %v2078_v43 = vsel %vm1190_vm1, %v5599_v8, 0.0 }
 0x4fc   : > { %v5603_v11 = vpop.eup %4660  ;;  %v1700_v22 = vpop.permute.xlu1 %1699  ;;  %2079 = vadd.xlane.f32.xlu0 %v2078_v43  ;;  %4339 = vmatpush3.msra.mxu1 %v1702_v19  ;;  %v5616_v19 = vadd.f32 %v1578_v32, %v5338_v10  ;;  %v1579_v10 = vmul.f32 0.17677669, %v1548_v24 }
 0x4fd   : > { %4340 = vmatprep.subr.mxu1 %v1700_v22  ;;  %v2075_v34 = vsel %vm1190_vm1, %v5603_v11, 0.0 }
 0x4fe   : > { %v5607_v36 = vpop.eup %4662  ;;  %2076 = vadd.xlane.f32.xlu1 %v2075_v34  ;;  %4341 = vmatpush3.msra.mxu1 %v1700_v22  ;;  %v1696_v22 = vpop.permute.xlu0 %1695  ;;  %v1584_v34 = vmul.f32 0.17677669, %v4335_v63  ;;  %v1596_v5 = vsel %vm1190_vm1, %v5616_v19, -inf  ;;  %v1608_v63 = vsel %vm1190_vm1, %v5624_v18, -inf  ;;  %v5639_v30 = vadd.f32 %v1579_v10, %v5350_v26 }
 0x4ff   : > { %v2084_v43 = vsel %vm1190_vm1, %v5607_v36, 0.0  ;;  %v1605_v26 = vsel %vm1190_vm1, %v1589_v28, -inf }
 0x500   : > { %v5609_v1 = vpop.eup %4664  ;;  %v1698_v3 = vpop.permute.xlu1 %1697  ;;  %v5634_v40 = vadd.f32 %v1584_v34, %v5369_v16  ;;  %v1599_v16 = vsel %vm1190_vm1, %v5639_v30, -inf }
 0x501   : > { %4342 = vmatprep.subr.mxu1 %v1698_v3  ;;  %v2081_v12 = vsel %vm1190_vm1, %v5609_v1, 0.0 }
 0x502   : > { %2085 = vadd.xlane.f32.xlu1 %v2084_v43  ;;  %2082 = vadd.xlane.f32.xlu0 %v2081_v12  ;;  %v1614_v24 = vsel %vm1190_vm1, %v5634_v40, -inf  ;;  %v5643_v43 = vpop.permute.xlu0 %2129 }
 0x503   : > { %4343 = vmatpush3.msra.mxu1 %v1698_v3  ;;  %v1583_v3 = vmul.f32 0.17677669, %v1568_v20 }
 0x504   : > { %4344 = vmatprep.subr.mxu1 %v1696_v22  ;;  %v1694_v33 = vpop.permute.xlu1 %1693 }
 0x505   : > { %4345 = vmatpush3.msra.mxu1 %v1696_v22  ;;  %v5651_v12 = vadd.f32 %v1583_v3, %v5366_v13  ;;  %v2055_v13 = vsub.f32 %v5537_v9, %v5593_v0 }
 0x506   : > { %4346 = vmatprep.subr.mxu1 %v1694_v33  ;;  %1597 = vmax.xlane.f32.xlu1 %v1596_v5  ;;  %v1602_v5 = vsel %vm1190_vm1, %v5629_v15, -inf }
 0x507   : > { %1594 = vmax.xlane.f32.xlu0 %v1593_v62  ;;  %4347 = vmatpush3.msra.mxu1 %v1694_v33  ;;  %v1611_v22 = vsel %vm1190_vm1, %v5651_v12, -inf  ;;  %v2056_v33 = vsub.f32 %v5532_v29, %v5591_v25  ;;  %v2067_v34 = vmul.f32 1.442695, %v2055_v13  ;;  %v5677_v25 = vpop.permute.xlu0 %2125 }
 0x508   : > { %v1692_v32 = vpop.permute.xlu1 %1691 }
 0x509   : > { %4348 = vmatprep.subr.mxu1 %v1692_v32  ;;  %v2069_v37 = vmul.f32 1.442695, %v2056_v33 }
 0x50a   : > { %1609 = vmax.xlane.f32.xlu1 %v1608_v63  ;;  %4349 = vmatpush3.msra.mxu1 %v1692_v32 }
 0x50b   : > { %1603 = vmax.xlane.f32.xlu0 %v1602_v5  ;;  %4666 = vpow2.f32 %v2069_v37 }
 0x50c   : > { %v1690_v31 = vpop.permute.xlu1 %1689  ;;  %4668 = vpow2.f32 %v2067_v34 }
 0x50d   : > { %4350 = vmatprep.subr.mxu1 %v1690_v31 }
 0x50e   : > { %1615 = vmax.xlane.f32.xlu1 %v1614_v24  ;;  %4351 = vmatpush3.msra.mxu1 %v1690_v31 }
 0x50f   : > { %1600 = vmax.xlane.f32.xlu0 %v1599_v16  ;;  %4392 = vmatprep.subr.mxu1 %v5643_v43 }
 0x510   : > { %v5675_v9 = vpop.permute.xlu1 %2127 }
 0x513   : > { %1606 = vmax.xlane.f32.xlu0 %v1605_v26 }
 0x514   : > { %v5679_v0 = vpop.permute.xlu1 %2123 }
 0x517   : > { %1612 = vmax.xlane.f32.xlu0 %v1611_v22 }
 0x518   : > { %v5663_v10 = vpop.eup %4666 }
 0x519   : > { %v2090_v62 = vsel %vm1190_vm1, %v5663_v10, 0.0  ;;  %v5667_v32 = vpop.eup %4668 }
 0x51a   : > { %v2087_v29 = vsel %vm1190_vm1, %v5667_v32, 0.0 }
 0x51f   : > { %2119 = vrot.lane.b32.xlu1 %v5224_v48, %s4876_s4 }
 0x52d   : > { %2121 = vrot.lane.b32.xlu0 %v5219_v47, %s4876_s4 }
 0x543   : > { %2091 = vadd.xlane.f32.xlu1 %v2090_v62  ;;  %v2058_v62 = vsub.f32 %v5542_v2, %v5595_v59 }
 0x54c   : > { %2088 = vadd.xlane.f32.xlu0 %v2087_v29 }
 0x554   : > { %2115 = vrot.lane.b32.xlu1 %v5238_v50, %s4876_s4 }
 0x562   : > { %2117 = vrot.lane.b32.xlu0 %v5232_v49, %s4876_s4 }
 0x585   : > { %v5681_v63 = vpop.xlane.xlu0 %2079 }
 0x587   : > { %v5683_v39 = vpop.xlane.xlu1 %2076 }
 0x58b   : > { %v5685_v5 = vpop.xlane.xlu1 %2085  ;;  %v5687_v20 = vpop.xlane.xlu0 %2082 }
 0x58f   : > { %v1598_v31 = vpop.xlane.xlu1 %1597 }
 0x590   : > { %v1618_v24 = vsub.f32 %v5616_v19, %v1598_v31  ;;  %v1595_v3 = vpop.xlane.xlu0 %1594  ;;  %v2073_v31 = vmul.f32 1.442695, %v2058_v62 }
 0x591   : > { %v1617_v16 = vsub.f32 %v5619_v35, %v1595_v3 }
 0x592   : > { %v1627_v26 = vmul.f32 1.442695, %v1618_v24 }
 0x593   : > { %v1625_v22 = vmul.f32 1.442695, %v1617_v16  ;;  %v1610_v33 = vpop.xlane.xlu1 %1609 }
 0x594   : > { %4670 = vpow2.f32 %v1627_v26  ;;  %v1622_v37 = vsub.f32 %v5624_v18, %v1610_v33  ;;  %v1604_v13 = vpop.xlane.xlu0 %1603 }
 0x595   : > { %4672 = vpow2.f32 %v1625_v22  ;;  %v1620_v34 = vsub.f32 %v5629_v15, %v1604_v13 }
 0x596   : > { %v1635_v29 = vmul.f32 1.442695, %v1622_v37 }
 0x597   : > { %v1631_v61 = vmul.f32 1.442695, %v1620_v34  ;;  %v1616_v23 = vpop.xlane.xlu1 %1615 }
 0x598   : > { %v1601_v19 = vpop.xlane.xlu0 %1600  ;;  %v1624_v24 = vsub.f32 %v5634_v40, %v1616_v23  ;;  %v2057_v23 = vsub.f32 %v5547_v60, %v5597_v6 }
 0x599   : > { %4674 = vpow2.f32 %v1631_v61  ;;  %v1619_v35 = vsub.f32 %v5639_v30, %v1601_v19 }
 0x59a   : > { %4676 = vpow2.f32 %v1635_v29  ;;  %v1639_v15 = vmul.f32 1.442695, %v1624_v24  ;;  %v2071_v37 = vmul.f32 1.442695, %v2057_v23 }
 0x59b   : > { %v1629_v3 = vmul.f32 1.442695, %v1619_v35 }
 0x59c   : > { %v1607_v18 = vpop.xlane.xlu0 %1606 }
 0x59d   : > { %4678 = vpow2.f32 %v1629_v3  ;;  %v1621_v16 = vsub.f32 %v1589_v28, %v1607_v18 }
 0x59e   : > { %4680 = vpow2.f32 %v2073_v31 }
 0x59f   : > { %v1633_v26 = vmul.f32 1.442695, %v1621_v16 }
 0x5a0   : > { %v1613_v22 = vpop.xlane.xlu0 %1612 }
 0x5a1   : > { %v5697_v2 = vpop.eup %4670  ;;  %4682 = vpow2.f32 %v1633_v26  ;;  %v1623_v59 = vsub.f32 %v5651_v12, %v1613_v22 }
 0x5a2   : > { %v5700_v61 = vpop.eup %4672  ;;  %v1644_v30 = vsel %vm1190_vm1, %v5697_v2, 0.0  ;;  %4684 = vpow2.f32 %v1639_v15 }
 0x5a3   : > { %v1637_v40 = vmul.f32 1.442695, %v1623_v59  ;;  %1645 = vadd.xlane.f32.xlu1 %v1644_v30  ;;  %v1641_v28 = vsel %vm1190_vm1, %v5700_v61, 0.0 }
 0x5a4   : > { %1642 = vadd.xlane.f32.xlu0 %v1641_v28 }
 0x5a5   : > { %4686 = vpow2.f32 %v1637_v40 }
 0x5a6   : > { %v5708_v33 = vpop.eup %4674  ;;  %4688 = vpow2.f32 %v2071_v37 }
 0x5a7   : > { %v1650_v12 = vsel %vm1190_vm1, %v5708_v33, 0.0  ;;  %v5712_v13 = vpop.eup %4676 }
 0x5a8   : > { %1651 = vadd.xlane.f32.xlu1 %v1650_v12  ;;  %v1656_v60 = vsel %vm1190_vm1, %v5712_v13, 0.0 }
 0x5aa   : > { %v5714_v34 = vpop.eup %4678 }
 0x5ab   : > { %v1647_v6 = vsel %vm1190_vm1, %v5714_v34, 0.0  ;;  %v5720_v62 = vpop.eup %4680 }
 0x5ac   : > { %1657 = vadd.xlane.f32.xlu1 %v1656_v60  ;;  %1648 = vadd.xlane.f32.xlu0 %v1647_v6  ;;  %v2096_v19 = vsel %vm1190_vm1, %v5720_v62, 0.0 }
 0x5ae   : > { %v5722_v29 = vpop.eup %4682 }
 0x5af   : > { %v1653_v35 = vsel %vm1190_vm1, %v5722_v29, 0.0  ;;  %v5728_v31 = vpop.eup %4684 }
 0x5b0   : > { %2097 = vadd.xlane.f32.xlu1 %v2096_v19  ;;  %1654 = vadd.xlane.f32.xlu0 %v1653_v35  ;;  %v1662_v24 = vsel %vm1190_vm1, %v5728_v31, 0.0 }
 0x5b2   : > { %v5732_v3 = vpop.eup %4686 }
 0x5b3   : > { %v1659_v18 = vsel %vm1190_vm1, %v5732_v3, 0.0  ;;  %v5736_v16 = vpop.eup %4688 }
 0x5b4   : > { %1663 = vadd.xlane.f32.xlu0 %v1662_v24  ;;  %v2093_v15 = vsel %vm1190_vm1, %v5736_v16, 0.0 }
 0x5b8   : > { %1660 = vadd.xlane.f32.xlu0 %v1659_v18 }
 0x5bc   : > { %2094 = vadd.xlane.f32.xlu0 %v2093_v15 }
 0x5c1   : > { %2296 = vrot.lane.b32.xlu1 %v5202_v44, %s4877_s16  ;;  %v6412_v44 = vld [vmem:[#allocation12_spill] sm:$0xff] }
 0x5c5   : > { %2292 = vrot.lane.b32.xlu1 %v5177_v27, %s4877_s16 }
 0x5c9   : > { %2288 = vrot.lane.b32.xlu1 %v5162_v17, %s4877_s16  ;;  %v2120_v17 = vpop.permute.xlu1 %2119 }
 0x5cd   : > { %2284 = vrot.lane.b32.xlu1 %v5266_v51, %s4877_s16  ;;  %v2092_v27 = vpop.xlane.xlu1 %2091 }
 0x5d1   : > { %2270 = vrot.lane.b32.xlu1 %v5276_v52, %s4877_s16  ;;  %v2116_v51 = vpop.permute.xlu1 %2115 }
 0x5d2   : > { %2298 = vrot.lane.b32.xlu0 %v5205_v45, %s4877_s16 }
 0x5d5   : > { %2274 = vrot.lane.b32.xlu1 %v5288_v54, %s4877_s16 }
 0x5d6   : > { %2294 = vrot.lane.b32.xlu0 %v6412_v44, %s4877_s16 }
 0x5d9   : > { %2278 = vrot.lane.b32.xlu1 %v5300_v56, %s4877_s16 }
 0x5da   : > { %2290 = vrot.lane.b32.xlu0 %v5169_v21, %s4877_s16  ;;  %v2122_v21 = vpop.permute.xlu0 %2121 }
 0x5dd   : > { %2282 = vrot.lane.b32.xlu1 %v5311_v58, %s4877_s16 }
 0x5de   : > { %2286 = vrot.lane.b32.xlu0 %v5155_v14, %s4877_s16  ;;  %v2089_v45 = vpop.xlane.xlu0 %2088 }
 0x5e2   : > { %2268 = vrot.lane.b32.xlu0 %v5141_v7, %s4877_s16  ;;  %v2118_v52 = vpop.permute.xlu0 %2117 }
 0x5e6   : > { %2272 = vrot.lane.b32.xlu0 %v5280_v53, %s4877_s16 }
 0x5ea   : > { %2276 = vrot.lane.b32.xlu0 %v5292_v55, %s4877_s16 }
 0x5ee   : > { %2280 = vrot.lane.b32.xlu0 %v5304_v57, %s4877_s16 }
 0x62c   : > { %v1646_v54 = vpop.xlane.xlu1 %1645 }
 0x62d   : > { %4690 = vrcp.f32 %v1646_v54  ;;  %v1643_v14 = vpop.xlane.xlu0 %1642 }
 0x62e   : > { %4692 = vrcp.f32 %v1643_v14 }
 0x631   : > { %v1652_v7 = vpop.xlane.xlu1 %1651 }
 0x632   : > { %4694 = vrcp.f32 %v1652_v7 }
 0x635   : > { %v1649_v56 = vpop.xlane.xlu0 %1648  ;;  %v1658_v53 = vpop.xlane.xlu1 %1657 }
 0x636   : > { %4696 = vrcp.f32 %v1649_v56  ;;  %v6413_v56 = vmov 0.0  }
 0x637   : > { %4698 = vrcp.f32 %v1658_v53 }
 0x639   : > { %v1655_v58 = vpop.xlane.xlu0 %1654 }
 0x63a   : > { %v4691_v55 = vpop.eup %4690  ;;  %4700 = vrcp.f32 %v1655_v58 }
 0x63b   : > { %v4693_v26 = vpop.eup %4692  ;;  %v1674_v57 = vmul.f32 %v4691_v55, %v5697_v2  ;;  %4702 = vrcp.f32 %v5683_v39 }
 0x63c   : > { %v1673_v22 = vmul.f32 %v4693_v26, %v5700_v61 }
 0x63d   : > { %v1664_v59 = vpop.xlane.xlu0 %1663 }
 0x63e   : > { %4352 = vmatprep.mubr.msk.f32.mxu1 %vm1190_vm1, %v1673_v22  ;;  %4704 = vrcp.f32 %v1664_v59 }
 0x63f   : > { %4353 = vmatmul.mubr.msk.f32.vlgmr.msra.gmra.mxu1 %vm1190_vm1, %v1674_v57  ;;  %v4695_v2 = vpop.eup %4694 }
 0x640   : > { %4393 = vmatpush3.msra.mxu1 %v5643_v43 }
 0x641   : > { %4394 = vmatprep.subr.mxu1 %v5675_v9  ;;  %v1661_v30 = vpop.xlane.xlu0 %1660 }
 0x642   : > { %4395 = vmatpush3.msra.mxu1 %v5675_v9  ;;  %4706 = vrcp.f32 %v1661_v30  ;;  %v1676_v9 = vmul.f32 %v4695_v2, %v5708_v33  ;;  %v2098_v33 = vpop.xlane.xlu1 %2097 }
 0x643   : > { %4396 = vmatprep.subr.mxu1 %v5677_v25  ;;  %v4697_v61 = vpop.eup %4696  ;;  %4708 = vrcp.f32 %v5681_v63 }
 0x644   : > { %4397 = vmatpush3.msra.mxu1 %v5677_v25  ;;  %v1675_v43 = vmul.f32 %v4697_v61, %v5714_v34  ;;  %4710 = vrcp.f32 %v5687_v20  ;;  %v4699_v23 = vpop.eup %4698 }
 0x645   : > { %4398 = vmatprep.subr.mxu1 %v5679_v0  ;;  %v2095_v39 = vpop.xlane.xlu0 %2094  ;;  %4712 = vrcp.f32 %v5685_v5  ;;  %v1678_v63 = vmul.f32 %v4699_v23, %v5712_v13 }
 0x646   : > { %4399 = vmatpush3.msra.mxu1 %v5679_v0  ;;  %4355 = vmatprep.mubr.msk.f32.mxu1 %vm1190_vm1, %v1675_v43  ;;  %4714 = vrcp.f32 %v2089_v45 }
 0x647   : > { %4400 = vmatprep.subr.mxu1 %v2122_v21  ;;  %v4701_v40 = vpop.eup %4700  ;;  %4356 = vmatmul.mubr.msk.f32.gmra.mxu1 %vm1190_vm1, %v1676_v9  ;;  %4716 = vrcp.f32 %v2092_v27 }
 0x648   : > { %4401 = vmatpush3.msra.mxu1 %v2122_v21  ;;  %v1677_v25 = vmul.f32 %v4701_v40, %v5722_v29  ;;  %v4703_v20 = vpop.eup %4702  ;;  %4718 = vrcp.f32 %v2095_v39 }
 0x649   : > { %4402 = vmatprep.subr.mxu1 %v2120_v17  ;;  %v2299_v0 = vpop.permute.xlu0 %2298  ;;  %4720 = vrcp.f32 %v2098_v33  ;;  %v2107_v60 = vmul.f32 %v4703_v20, %v5603_v11 }
 0x64a   : > { %4403 = vmatpush3.msra.mxu1 %v2120_v17  ;;  %4358 = vmatprep.mubr.msk.f32.mxu1 %vm1190_vm1, %v1677_v25 }
 0x64b   : > { %4404 = vmatprep.subr.mxu1 %v2118_v52  ;;  %4359 = vmatmul.mubr.msk.f32.gmra.mxu1 %vm1190_vm1, %v1678_v63  ;;  %v4705_v28 = vpop.eup %4704 }
 0x64c   : > { %4405 = vmatpush3.msra.mxu1 %v2118_v52  ;;  %v1680_v13 = vmul.f32 %v4705_v28, %v5728_v31  ;;  %v2297_v31 = vpop.permute.xlu1 %2296 }
 0x64d   : > { %4406 = vmatprep.subr.mxu1 %v2116_v51  ;;  %v2295_v12 = vpop.permute.xlu0 %2294 }
 0x64e   : > { %4407 = vmatpush3.msra.mxu1 %v2116_v51 }
 0x64f   : > { %v4707_v5 = vpop.eup %4706  ;;  %4420 = vmatprep.subr.msk.mxu1 %vm1020_vm0, %v2299_v0 }
 0x650   : > { %v1679_v37 = vmul.f32 %v4707_v5, %v5732_v3  ;;  %v4709_v34 = vpop.eup %4708  ;;  %v2293_v21 = vpop.permute.xlu1 %2292 }
 0x651   : > { %v4711_v6 = vpop.eup %4710  ;;  %v2108_v29 = vmul.f32 %v4709_v34, %v5599_v8  ;;  %v2291_v3 = vpop.permute.xlu0 %2290 }
 0x652   : > { %4361 = vmatprep.mubr.msk.f32.mxu1 %vm1190_vm1, %v1679_v37  ;;  %v4713_v19 = vpop.eup %4712  ;;  %v2109_v35 = vmul.f32 %v4711_v6, %v5609_v1  ;;  %v4818_v6 = vld [vmem:[%s6404_s29 + $0x8] sm:$0xff] }
 0x653   : > { %4362 = vmatmul.mubr.msk.f32.gmra.mxu1 %vm1190_vm1, %v1680_v13  ;;  %v4715_v24 = vpop.eup %4714  ;;  %v2110_v11 = vmul.f32 %v4713_v19, %v5607_v36 }
 0x654   : > { %4408 = vmatprep.mubr.msk.f32.mxu1 %vm1190_vm1, %v2107_v60  ;;  %v4717_v18 = vpop.eup %4716  ;;  %v2111_v15 = vmul.f32 %v4715_v24, %v5667_v32  ;;  %v2289_v45 = vpop.permute.xlu1 %2288  ;;  %v4819_v24 = vld [vmem:[%s6404_s29] sm:$0xff] }
 0x655   : > { %v4719_v8 = vpop.eup %4718  ;;  %v2287_v1 = vpop.permute.xlu0 %2286  ;;  %v2112_v44 = vmul.f32 %v4717_v18, %v5663_v10 }
 0x656   : > { %v4721_v17 = vpop.eup %4720  ;;  %v2113_v27 = vmul.f32 %v4719_v8, %v5736_v16 }
 0x657   : > { %4409 = vmatmul.mubr.msk.f32.vlgmr.msra.gmra.mxu1 %vm1190_vm1, %v2108_v29  ;;  %v2114_v36 = vmul.f32 %v4721_v17, %v5720_v62  ;;  %v4821_v17 = vld [vmem:[%s6404_s29 + $0x10] sm:$0xff] }
 0x658   : > { %4421 = vmatpush3.xpose.msk.msra.mxu1 %vm1020_vm0, %v2299_v0  ;;  %4411 = vmatprep.mubr.msk.f32.mxu1 %vm1190_vm1, %v2109_v35  ;;  %v2285_v10 = vpop.permute.xlu1 %2284 }
 0x659   : > { %4422 = vmatprep.subr.msk.mxu1 %vm1020_vm0, %v2297_v31  ;;  %v2269_v32 = vpop.permute.xlu0 %2268 }
 0x65b   : > { %4412 = vmatmul.mubr.msk.f32.gmra.mxu1 %vm1190_vm1, %v2110_v11 }
 0x65c   : > { %4423 = vmatpush3.xpose.msk.msra.mxu1 %vm1020_vm0, %v2297_v31  ;;  %4414 = vmatprep.mubr.msk.f32.mxu1 %vm1190_vm1, %v2111_v15  ;;  %v2271_v62 = vpop.permute.xlu1 %2270  ;;  %v4820_v15 = vld [vmem:[%s6404_s29 + $0x18] sm:$0xff] }
 0x65d   : > { %4424 = vmatprep.subr.msk.mxu1 %vm1020_vm0, %v2295_v12  ;;  %v2273_v16 = vpop.permute.xlu0 %2272 }
 0x65f   : > { %4415 = vmatmul.mubr.msk.f32.gmra.mxu1 %vm1190_vm1, %v2112_v44 }
 0x660   : > { %4425 = vmatpush3.xpose.msk.msra.mxu1 %vm1020_vm0, %v2295_v12  ;;  %4417 = vmatprep.mubr.msk.f32.mxu1 %vm1190_vm1, %v2113_v27  ;;  %v2275_v51 = vpop.permute.xlu1 %2274 }
 0x661   : > { %4426 = vmatprep.subr.msk.mxu1 %vm1020_vm0, %v2293_v21  ;;  %v2277_v52 = vpop.permute.xlu0 %2276 }
 0x663   : > { %4418 = vmatmul.mubr.msk.f32.gmra.mxu1 %vm1190_vm1, %v2114_v36 }
 0x664   : > { %4427 = vmatpush3.xpose.msk.msra.mxu1 %vm1020_vm0, %v2293_v21  ;;  %4436 = vmatprep.mubr.msk.f32.mxu1 %vm1020_vm0, %v2269_v32  ;;  %v2279_v54 = vpop.permute.xlu1 %2278 }
 0x665   : > { %4428 = vmatprep.subr.msk.mxu1 %vm1020_vm0, %v2291_v3  ;;  %v2281_v14 = vpop.permute.xlu0 %2280 }
 0x668   : > { %4429 = vmatpush3.xpose.msk.msra.mxu1 %vm1020_vm0, %v2291_v3  ;;  %v2283_v7 = vpop.permute.xlu1 %2282 }
 0x669   : > { %4430 = vmatprep.subr.msk.mxu1 %vm1020_vm0, %v2289_v45 }
 0x66c   : > { %4431 = vmatpush3.xpose.msk.msra.mxu1 %vm1020_vm0, %v2289_v45 }
 0x66d   : > { %4432 = vmatprep.subr.msk.mxu1 %vm1020_vm0, %v2287_v1 }
 0x670   : > { %4433 = vmatpush3.xpose.msk.msra.mxu1 %vm1020_vm0, %v2287_v1 }
 0x671   : > { %4434 = vmatprep.subr.msk.mxu1 %vm1020_vm0, %v2285_v10 }
 0x674   : > { %4435 = vmatpush3.xpose.msk.msra.mxu1 %vm1020_vm0, %v2285_v10 }
 0x677   : > { %4437 = vmatmul.mubr.msk.f32.vlgmr.msra.gmra.mxu1 %vm1020_vm0, %v2271_v62 }
 0x678   : > { %4439 = vmatprep.mubr.msk.f32.mxu1 %vm1020_vm0, %v2273_v16  ;;  %v4822_v16 = vld [vmem:[%s6404_s29 + $0x28] sm:$0xff] }
 0x67b   : > { %4440 = vmatmul.mubr.msk.f32.gmra.mxu1 %vm1020_vm0, %v2275_v51 }
 0x67c   : > { %4442 = vmatprep.mubr.msk.f32.mxu1 %vm1020_vm0, %v2277_v52 }
 0x67f   : > { %4443 = vmatmul.mubr.msk.f32.gmra.mxu1 %vm1020_vm0, %v2279_v54  ;;  %v4823_v54 = vld [vmem:[%s6404_s29 + $0x38] sm:$0xff] }
 0x680   : > { %4445 = vmatprep.mubr.msk.f32.mxu1 %vm1020_vm0, %v2281_v14 }
 0x683   : > { %4446 = vmatmul.mubr.msk.f32.gmra.mxu1 %vm1020_vm0, %v2283_v7 }
 0x684   : > { %3235 = vmatprep.mubr.f32.mxu1 %v6413_v56 }
 0x6ff   : > { %v5840_v53 = vpop.f32.mrf.mxu1 }
 0x701   : > { %v5842_v58 = vpop.f32.mrf.mxu1 }
 0x702   : > { %v4566_v55 = vpack.i.bf16 %v5840_v53, %v5842_v58 }
 0x707   : > { %v5846_v26 = vpop.f32.mrf.mxu1 }
 0x709   : > { %v5848_v57 = vpop.f32.mrf.mxu1 }
 0x70a   : > { %v4581_v22 = vpack.i.bf16 %v5846_v26, %v5848_v57 }
 0x70b   : > { %v5852_v59 = vpop.f32.mrf.mxu1 }
 0x70d   : > { %v5854_v30 = vpop.f32.mrf.mxu1 }
 0x70e   : > { %v4596_v2 = vpack.i.bf16 %v5852_v59, %v5854_v30 }
 0x713   : > { %v5858_v61 = vpop.f32.mrf.mxu1 }
 0x715   : > { %v5860_v39 = vpop.f32.mrf.mxu1 }
 0x716   : > { %v4611_v43 = vpack.i.bf16 %v5858_v61, %v5860_v39 }
 0x717   : > { %v5864_v9 = vpop.f32.mrf.mxu1 }
 0x719   : > { %v5866_v23 = vpop.f32.mrf.mxu1 }
 0x71a   : > { %v4571_v40 = vpack.i.bf16 %v5864_v9, %v5866_v23 }
 0x71b   : > { %v5870_v25 = vpop.f32.mrf.mxu1 }
 0x71d   : > { %v5872_v63 = vpop.f32.mrf.mxu1 }
 0x71e   : > { %v4586_v0 = vpack.i.bf16 %v5870_v25, %v5872_v63 }
 0x71f   : > { %v5876_v20 = vpop.f32.mrf.mxu1 }
 0x721   : > { %v5878_v28 = vpop.f32.mrf.mxu1 }
 0x722   : > { %v4601_v33 = vpack.i.bf16 %v5876_v20, %v5878_v28 }
 0x723   : > { %v5882_v5 = vpop.f32.mrf.mxu1 }
 0x725   : > { %v5884_v37 = vpop.f32.mrf.mxu1 }
 0x726   : > { %v4616_v12 = vpack.i.bf16 %v5882_v5, %v5884_v37 }
 0x737   : > { %v4438_v13 = vpop.f32.mrf.mxu1 }
 0x738   : > { %v2438_v34 = vmul.f32 0.17677669, %v4438_v13 }
 0x739   : > { %v2398_v60 = vpop.f32.mrf.mxu1 }
 0x73a   : > { %v2446_v29 = vadd.f32 %v4818_v6, %v2438_v34  ;;  %v2437_v19 = vmul.f32 0.17677669, %v2398_v60  ;;  %v4824_v34 = vld [vmem:[%s6404_s29 + $0x20] sm:$0xff] }
 0x73b   : > { %v4441_v35 = vpop.f32.mrf.mxu1 }
 0x73c   : > { %v2445_v3 = vadd.f32 %v4819_v24, %v2437_v19  ;;  %v2440_v31 = vmul.f32 0.17677669, %v4441_v35  ;;  %v2456_v11 = vsel %vm1190_vm1, %v2446_v29, -inf  ;;  %v4825_v19 = vld [vmem:[%s6404_s29 + $0x30] sm:$0xff] }
 0x73d   : > { %2457 = vmax.xlane.f32.xlu1 %v2456_v11  ;;  %v2408_v18 = vpop.f32.mrf.mxu1 }
 0x73e   : > { %v2448_v8 = vadd.f32 %v4820_v15, %v2440_v31  ;;  %v2439_v1 = vmul.f32 0.17677669, %v2408_v18  ;;  %v2453_v44 = vsel %vm1190_vm1, %v2445_v3, -inf }
 0x73f   : > { %2454 = vmax.xlane.f32.xlu0 %v2453_v44  ;;  %v4444_v32 = vpop.f32.mrf.mxu1 }
 0x740   : > { %v2447_v21 = vadd.f32 %v4821_v17, %v2439_v1  ;;  %v2462_v27 = vsel %vm1190_vm1, %v2448_v8, -inf  ;;  %v2442_v10 = vmul.f32 0.17677669, %v4444_v32 }
 0x741   : > { %v2418_v45 = vpop.f32.mrf.mxu1 }
 0x742   : > { %v2459_v36 = vsel %vm1190_vm1, %v2447_v21, -inf  ;;  %v2450_v51 = vadd.f32 %v4822_v16, %v2442_v10  ;;  %v2441_v13 = vmul.f32 0.17677669, %v2418_v45 }
 0x743   : > { %2463 = vmax.xlane.f32.xlu0 %v2462_v27  ;;  %v4447_v62 = vpop.f32.mrf.mxu1 }
 0x744   : > { %v2444_v52 = vmul.f32 0.17677669, %v4447_v62  ;;  %v2468_v7 = vsel %vm1190_vm1, %v2450_v51, -inf  ;;  %v2449_v60 = vadd.f32 %v4824_v34, %v2441_v13 }
 0x746   : > { %v5902_v14 = vadd.f32 %v4823_v54, %v2444_v52  ;;  %v2465_v24 = vsel %vm1190_vm1, %v2449_v60, -inf }
 0x747   : > { %2460 = vmax.xlane.f32.xlu0 %v2459_v36 }
 0x74e   : > { %2553 = vrot.lane.b32.xlu1 %v5194_v42, %s4877_s16  ;;  %v2428_v42 = vpop.f32.mrf.mxu1 }
 0x74f   : > { %v2443_v6 = vmul.f32 0.17677669, %v2428_v42 }
 0x751   : > { %v2451_v35 = vadd.f32 %v4825_v19, %v2443_v6 }
 0x753   : > { %v2471_v31 = vsel %vm1190_vm1, %v2451_v35, -inf }
 0x75d   : > { %2555 = vrot.lane.b32.xlu0 %v5190_v38, %s4877_s16  ;;  %v2474_v38 = vsel %vm1190_vm1, %v5902_v14, -inf }
 0x772   : > { %2469 = vmax.xlane.f32.xlu1 %v2468_v7 }
 0x776   : > { %2475 = vmax.xlane.f32.xlu1 %v2474_v38 }
 0x77c   : > { %2466 = vmax.xlane.f32.xlu0 %v2465_v24 }
 0x780   : > { %2472 = vmax.xlane.f32.xlu0 %v2471_v31 }
 0x787   : > { %2549 = vrot.lane.b32.xlu1 %v5208_v46, %s4877_s16 }
 0x78b   : > { %2547 = vrot.lane.b32.xlu1 %v5219_v47, %s4877_s16 }
 0x78f   : > { %2545 = vrot.lane.b32.xlu1 %v5224_v48, %s4877_s16 }
 0x796   : > { %2551 = vrot.lane.b32.xlu0 %v5192_v41, %s4877_s16 }
 0x7c6   : > { %v2458_v11 = vpop.xlane.xlu1 %2457 }
 0x7c7   : > { %v2478_v18 = vsub.f32 %v2446_v29, %v2458_v11 }
 0x7c8   : > { %v2455_v15 = vpop.xlane.xlu0 %2454 }
 0x7c9   : > { %v2487_v1 = vmul.f32 1.442695, %v2478_v18  ;;  %v2477_v44 = vsub.f32 %v2445_v3, %v2455_v15 }
 0x7ca   : > { %v2554_v48 = vpop.permute.xlu1 %2553 }
 0x7cb   : > { %4722 = vpow2.f32 %v2487_v1  ;;  %v2485_v17 = vmul.f32 1.442695, %v2477_v44 }
 0x7cc   : > { %v2464_v27 = vpop.xlane.xlu0 %2463 }
 0x7cd   : > { %4724 = vpow2.f32 %v2485_v17  ;;  %v2480_v36 = vsub.f32 %v2448_v8, %v2464_v27 }
 0x7cf   : > { %v2491_v46 = vmul.f32 1.442695, %v2480_v36 }
 0x7d0   : > { %v2461_v32 = vpop.xlane.xlu0 %2460 }
 0x7d1   : > { %4726 = vpow2.f32 %v2491_v46  ;;  %v2479_v47 = vsub.f32 %v2447_v21, %v2461_v32 }
 0x7d3   : > { %v2489_v45 = vmul.f32 1.442695, %v2479_v47 }
 0x7d4   : > { %v2556_v10 = vpop.permute.xlu0 %2555 }
 0x7d5   : > { %4728 = vpow2.f32 %v2489_v45  ;;  %4448 = vmatprep.subr.mxu0 %v2556_v10 }
 0x7d6   : > { %4449 = vmatpush3.msra.mxu0 %v2556_v10 }
 0x7d7   : > { %4450 = vmatprep.subr.mxu0 %v2554_v48 }
 0x7d8   : > { %v5919_v41 = vpop.eup %4722  ;;  %4451 = vmatpush3.msra.mxu0 %v2554_v48 }
 0x7d9   : > { %v2504_v29 = vsel %vm1190_vm1, %v5919_v41, 0.0 }
 0x7da   : > { %v4725_v3 = vpop.eup %4724  ;;  %2505 = vadd.xlane.f32.xlu1 %v2504_v29 }
 0x7db   : > { %v2501_v8 = vsel %vm1190_vm1, %v4725_v3, 0.0 }
 0x7dc   : > { %2502 = vadd.xlane.f32.xlu0 %v2501_v8 }
 0x7de   : > { %v5924_v62 = vpop.eup %4726 }
 0x7df   : > { %v2510_v21 = vsel %vm1190_vm1, %v5924_v62, 0.0 }
 0x7e0   : > { %2511 = vadd.xlane.f32.xlu1 %v2510_v21 }
 0x7e2   : > { %v5928_v16 = vpop.eup %4728 }
 0x7e3   : > { %v2507_v52 = vsel %vm1190_vm1, %v5928_v16, 0.0 }
 0x7e4   : > { %2508 = vadd.xlane.f32.xlu0 %v2507_v52 }
 0x7fb   : > { %v2470_v54 = vpop.xlane.xlu1 %2469 }
 0x7fc   : > { %v2482_v7 = vsub.f32 %v2450_v51, %v2470_v54 }
 0x7fe   : > { %v2495_v13 = vmul.f32 1.442695, %v2482_v7 }
 0x7ff   : > { %v2476_v42 = vpop.xlane.xlu1 %2475 }
 0x800   : > { %4730 = vpow2.f32 %v2495_v13  ;;  %v2484_v38 = vsub.f32 %v5902_v14, %v2476_v42  ;;  %v2830_v42 = vld [vmem:[%s5010_s19 + $0x78] sm:$0xff] }
 0x802   : > { %v2499_v24 = vmul.f32 1.442695, %v2484_v38  ;;  %v2829_v38 = vld [vmem:[%s5010_s19 + $0x70] sm:$0xff] }
 0x803   : > { %v2550_v19 = vpop.permute.xlu1 %2549 }
 0x805   : > { %v2467_v34 = vpop.xlane.xlu0 %2466 }
 0x806   : > { %v2481_v6 = vsub.f32 %v2449_v60, %v2467_v34  ;;  %v2828_v34 = vld [vmem:[%s5010_s19 + $0x68] sm:$0xff] }
 0x807   : > { %v2548_v44 = vpop.permute.xlu1 %2547 }
 0x808   : > { %v2493_v31 = vmul.f32 1.442695, %v2481_v6  ;;  %v2827_v6 = vld [vmem:[%s5010_s19 + $0x60] sm:$0xff] }
 0x809   : > { %v2473_v11 = vpop.xlane.xlu0 %2472 }
 0x80a   : > { %4732 = vpow2.f32 %v2493_v31  ;;  %v2483_v18 = vsub.f32 %v2451_v35, %v2473_v11  ;;  %v2824_v31 = vld [vmem:[%s5010_s19 + $0x48] sm:$0xff]  ;;  %v2823_v11 = vld [vmem:[%s5010_s19 + $0x40] sm:$0xff] }
 0x80b   : > { %4734 = vpow2.f32 %v2499_v24  ;;  %v2546_v14 = vpop.permute.xlu1 %2545  ;;  %v2825_v24 = vld [vmem:[%s5010_s19 + $0x50] sm:$0xff] }
 0x80c   : > { %v2497_v15 = vmul.f32 1.442695, %v2483_v18  ;;  %v2822_v18 = vld [vmem:[%s5010_s19 + $0x38] sm:$0xff] }
 0x80d   : > { %v5933_v1 = vpop.eup %4730  ;;  %v2552_v17 = vpop.permute.xlu0 %2551 }
 0x80e   : > { %4736 = vpow2.f32 %v2497_v15  ;;  %4452 = vmatprep.subr.mxu0 %v2552_v17  ;;  %v2516_v51 = vsel %vm1190_vm1, %v5933_v1, 0.0  ;;  %v2821_v15 = vld [vmem:[%s5010_s19 + $0x30] sm:$0xff] }
 0x80f   : > { %2517 = vadd.xlane.f32.xlu0 %v2516_v51  ;;  %4453 = vmatpush3.msra.mxu0 %v2552_v17  ;;  %v2818_v17 = vld [vmem:[%s5010_s19 + $0x18] sm:$0xff]  ;;  %v2817_v51 = vld [vmem:[%s5010_s19 + $0x10] sm:$0xff] }
 0x810   : > { %4454 = vmatprep.subr.mxu0 %v2550_v19 }
 0x811   : > { %4455 = vmatpush3.msra.mxu0 %v2550_v19  ;;  %v2826_v19 = vld [vmem:[%s5010_s19 + $0x58] sm:$0xff] }
 0x812   : > { %4456 = vmatprep.subr.mxu0 %v2548_v44 }
 0x813   : > { %4457 = vmatpush3.msra.mxu0 %v2548_v44  ;;  %v2819_v44 = vld [vmem:[%s5010_s19 + $0x20] sm:$0xff] }
 0x814   : > { %4458 = vmatprep.subr.mxu0 %v2546_v14 }
 0x815   : > { %4459 = vmatpush3.msra.mxu0 %v2546_v14  ;;  %v2816_v14 = vld [vmem:[%s5010_s19 + $0x8] sm:$0xff] }
 0x817   : > { %v4733_v60 = vpop.eup %4732 }
 0x818   : > { %v2513_v35 = vsel %vm1190_vm1, %v4733_v60, 0.0  ;;  %v4735_v27 = vpop.eup %4734 }
 0x819   : > { %2514 = vadd.xlane.f32.xlu1 %v2513_v35  ;;  %v2522_v46 = vsel %vm1190_vm1, %v4735_v27, 0.0 }
 0x81b   : > { %v4737_v36 = vpop.eup %4736 }
 0x81c   : > { %v2519_v32 = vsel %vm1190_vm1, %v4737_v36, 0.0 }
 0x81d   : > { %2523 = vadd.xlane.f32.xlu1 %v2522_v46  ;;  %2520 = vadd.xlane.f32.xlu0 %v2519_v32 }
 0x82e   : > { %2541 = vrot.lane.b32.xlu1 %v5238_v50, %s4877_s16 }
 0x832   : > { %4572 = vrot.lane.b32.xlu1 %v4571_v40, %s4876_s4 }
 0x833   : > { %2543 = vrot.lane.b32.xlu0 %v5232_v49, %s4877_s16 }
 0x836   : > { %4582 = vrot.lane.b32.xlu1 %v4581_v22, %s4877_s16 }
 0x837   : > { %4567 = vrot.lane.b32.xlu0 %v4566_v55, %s4877_s16 }
 0x863   : > { %v2506_v9 = vpop.xlane.xlu1 %2505 }
 0x865   : > { %v2503_v47 = vpop.xlane.xlu0 %2502 }
 0x866   : > { %4738 = vrcp.f32 %v2503_v47 }
 0x867   : > { %4740 = vrcp.f32 %v2506_v9 }
 0x869   : > { %v2512_v49 = vpop.xlane.xlu1 %2511 }
 0x86d   : > { %v2509_v23 = vpop.xlane.xlu0 %2508 }
 0x86e   : > { %4742 = vrcp.f32 %v2509_v23 }
 0x86f   : > { %4744 = vrcp.f32 %v2512_v49 }
 0x873   : > { %v4739_v50 = vpop.eup %4738 }
 0x874   : > { %v2533_v45 = vmul.f32 %v4739_v50, %v4725_v3  ;;  %v4741_v53 = vpop.eup %4740 }
 0x875   : > { %v2534_v48 = vmul.f32 %v4741_v53, %v5919_v41 }
 0x876   : > { %4464 = vmatprep.mubr.msk.f32.mxu0 %vm1190_vm1, %v2533_v45 }
 0x87b   : > { %v4743_v55 = vpop.eup %4742 }
 0x87c   : > { %v4745_v29 = vpop.eup %4744  ;;  %v2535_v3 = vmul.f32 %v4743_v55, %v5928_v16 }
 0x87d   : > { %v2536_v21 = vmul.f32 %v4745_v29, %v5924_v62 }
 0x898   : > { %v2518_v40 = vpop.xlane.xlu0 %2517 }
 0x8a2   : > { %v2515_v26 = vpop.xlane.xlu1 %2514 }
 0x8a3   : > { %4746 = vrcp.f32 %v2515_v26 }
 0x8a4   : > { %4748 = vrcp.f32 %v2518_v40 }
 0x8a6   : > { %v2524_v57 = vpop.xlane.xlu1 %2523  ;;  %v2521_v22 = vpop.xlane.xlu0 %2520 }
 0x8a7   : > { %4750 = vrcp.f32 %v2521_v22 }
 0x8a8   : > { %4752 = vrcp.f32 %v2524_v57 }
 0x8aa   : > { %v2544_v58 = vpop.permute.xlu0 %2543  ;;  %v2542_v10 = vpop.permute.xlu1 %2541 }
 0x8ab   : > { %4460 = vmatprep.subr.mxu0 %v2544_v58 }
 0x8ac   : > { %4461 = vmatpush3.msra.mxu0 %v2544_v58 }
 0x8ad   : > { %4462 = vmatprep.subr.mxu0 %v2542_v10 }
 0x8ae   : > { %4463 = vmatpush3.msra.mxu0 %v2542_v10  ;;  %v4568_v59 = vpop.permute.xlu0 %4567  ;;  %v4573_v30 = vpop.permute.xlu1 %4572 }
 0x8af   : > { %4465 = vmatmul.mubr.msk.f32.vlgmr.msra.gmra.mxu0 %vm1190_vm1, %v2534_v48  ;;  %4476 = vmatprep.subr.mxu0 %v2830_v42  ;;  %v4569_v63 = vunpack.i.l.bf16 %v4568_v59  ;;  %v4574_v20 = vunpack.i.l.bf16 %v4573_v30 }
 0x8b0   : > { %v4747_v8 = vpop.eup %4746  ;;  %4467 = vmatprep.mubr.msk.f32.mxu0 %vm1190_vm1, %v2535_v3  ;;  %4477 = vmatpush3.msra.mxu0 %v2830_v42  ;;  %v6415_v3 = vld [vmem:[#allocation15_spill] sm:$0xff] }
 0x8b1   : > { %v2537_v52 = vmul.f32 %v4747_v8, %v4733_v60  ;;  %v4749_v54 = vpop.eup %4748  ;;  %4478 = vmatprep.subr.mxu0 %v2829_v38  ;;  %v2815_v60 = vld [vmem:[%s5010_s19] sm:$0xff] }
 0x8b2   : > { %v2538_v16 = vmul.f32 %v4749_v54, %v5933_v1  ;;  %4479 = vmatpush3.msra.mxu0 %v2829_v38  ;;  %v2820_v1 = vld [vmem:[%s5010_s19 + $0x28] sm:$0xff]  ;;  %v4583_v39 = vpop.permute.xlu1 %4582 }
 0x8b3   : > { %4468 = vmatmul.mubr.msk.f32.gmra.mxu0 %vm1190_vm1, %v2536_v21  ;;  %4480 = vmatprep.subr.mxu0 %v2828_v34  ;;  %v4585_v37 = vunpack.i.h.bf16 %v4583_v39  ;;  %v6416_v21 = vld [vmem:[#allocation14_spill] sm:$0xff] }
 0x8b4   : > { %4470 = vmatprep.mubr.msk.f32.mxu0 %vm1190_vm1, %v2537_v52  ;;  %v4751_v41 = vpop.eup %4750  ;;  %4481 = vmatpush3.msra.mxu0 %v2828_v34 }
 0x8b5   : > { %v4753_v7 = vpop.eup %4752  ;;  %v2539_v13 = vmul.f32 %v4751_v41, %v4737_v36  ;;  %4482 = vmatprep.subr.mxu0 %v2827_v6  ;;  %v2793_v52 = vsel %vm1020_vm0, %v6416_v21, %v4585_v37 }
 0x8b6   : > { %v2540_v62 = vmul.f32 %v4753_v7, %v4735_v27  ;;  %4483 = vmatpush3.msra.mxu0 %v2827_v6 }
 0x8b7   : > { %4471 = vmatmul.mubr.msk.f32.gmra.mxu0 %vm1190_vm1, %v2538_v16  ;;  %4484 = vmatprep.subr.mxu0 %v2826_v19 }
 0x8b8   : > { %4473 = vmatprep.mubr.msk.f32.mxu0 %vm1190_vm1, %v2539_v13  ;;  %4485 = vmatpush3.msra.mxu0 %v2826_v19  ;;  %v6417_v19 = vld [vmem:[#allocation17_spill] sm:$0xff] }
 0x8b9   : > { %4486 = vmatprep.subr.mxu0 %v2825_v24 }
 0x8ba   : > { %4487 = vmatpush3.msra.mxu0 %v2825_v24 }
 0x8bb   : > { %4474 = vmatmul.mubr.msk.f32.gmra.mxu0 %vm1190_vm1, %v2540_v62  ;;  %4488 = vmatprep.subr.mxu0 %v2824_v31 }
 0x8bc   : > { %4489 = vmatpush3.msra.mxu0 %v2824_v31  ;;  %v6418_v31 = vld [vmem:[#allocation16_spill] sm:$0xff] }
 0x8bd   : > { %4490 = vmatprep.subr.mxu0 %v2823_v11 }
 0x8be   : > { %4491 = vmatpush3.msra.mxu0 %v2823_v11 }
 0x8bf   : > { %4492 = vmatprep.subr.mxu0 %v2822_v18 }
 0x8c0   : > { %4493 = vmatpush3.msra.mxu0 %v2822_v18 }
 0x8c1   : > { %4494 = vmatprep.subr.mxu0 %v2821_v15 }
 0x8c2   : > { %4495 = vmatpush3.msra.mxu0 %v2821_v15 }
 0x8c3   : > { %4496 = vmatprep.subr.mxu0 %v2820_v1 }
 0x8c4   : > { %4497 = vmatpush3.msra.mxu0 %v2820_v1 }
 0x8c5   : > { %4498 = vmatprep.subr.mxu0 %v2819_v44 }
 0x8c6   : > { %4499 = vmatpush3.msra.mxu0 %v2819_v44 }
 0x8c7   : > { %4500 = vmatprep.subr.mxu0 %v2818_v17 }
 0x8c8   : > { %4501 = vmatpush3.msra.mxu0 %v2818_v17 }
 0x8c9   : > { %4502 = vmatprep.subr.mxu0 %v2817_v51 }
 0x8ca   : > { %4503 = vmatpush3.msra.mxu0 %v2817_v51 }
 0x8cb   : > { %4504 = vmatprep.subr.mxu0 %v2816_v14 }
 0x8cc   : > { %4505 = vmatpush3.msra.mxu0 %v2816_v14 }
 0x8cd   : > { %4506 = vmatprep.subr.mxu0 %v2815_v60 }
 0x8ce   : > { %4507 = vmatpush3.msra.mxu0 %v2815_v60 }
 0x96f   : > { %v4466_v35 = vpop.f32.mrf.mxu0 }
 0x971   : > { %v2655_v27 = vpop.f32.mrf.mxu0 }
 0x972   : > { %v4576_v36 = vpack.i.bf16 %v4466_v35, %v2655_v27 }
 0x973   : > { %v4469_v46 = vpop.f32.mrf.mxu0 }
 0x974   : > { %4577 = vrot.lane.b32.xlu0 %v4576_v36, %s4875_s3 }
 0x975   : > { %v2665_v32 = vpop.f32.mrf.mxu0 }
 0x976   : > { %v4591_v47 = vpack.i.bf16 %v4469_v46, %v2665_v32 }
 0x977   : > { %v4472_v50 = vpop.f32.mrf.mxu0 }
 0x978   : > { %4587 = vrot.lane.b32.xlu0 %v4586_v0, %s4876_s4  ;;  %4592 = vrot.lane.b32.xlu1 %v4591_v47, %s4875_s3  ;;  %v4575_v0 = vunpack.i.h.bf16 %v4573_v30 }
 0x979   : > { %v2675_v45 = vpop.f32.mrf.mxu0 }
 0x97a   : > { %v4606_v23 = vpack.i.bf16 %v4472_v50, %v2675_v45 }
 0x97b   : > { %v4475_v9 = vpop.f32.mrf.mxu0 }
 0x97c   : > { %4597 = vrot.lane.b32.xlu0 %v4596_v2, %s4877_s16  ;;  %4602 = vrot.lane.b32.xlu1 %v4601_v33, %s4876_s4  ;;  %v4570_v2 = vunpack.i.h.bf16 %v4568_v59 }
 0x97d   : > { %v2685_v49 = vpop.f32.mrf.mxu0 }
 0x97e   : > { %v4621_v25 = vpack.i.bf16 %v4475_v9, %v2685_v49  ;;  %v2791_v61 = vsel %vm1020_vm0, %v5575_v4, %v4570_v2  ;;  %v6419_v9 = vld [vmem:[#allocation19_spill] sm:$0xff]  ;;  %v6420_v49 = vld [vmem:[#allocation18_spill] sm:$0xff] }
 0x97f   : > { %v2799_v57 = vsel %vm1190_vm1, %v2791_v61, %v4575_v0  ;;  %v3964_v0 = vld [vmem:[%s6421_s23] ss:$0 sm:$0xff] }
 0x980   : > { %4612 = vrot.lane.b32.xlu1 %v4611_v43, %s4877_s16  ;;  %4607 = vrot.lane.b32.xlu0 %v4606_v23, %s4875_s3  ;;  %v6414_v43 = vld [vmem:[#allocation13_spill] sm:$0xff] }
 0x981   : > { %v2790_v28 = vsel %vm1020_vm0, %v6414_v43, %v4569_v63 }
 0x982   : > { %v2798_v26 = vsel %vm1190_vm1, %v2790_v28, %v4574_v20 }
 0x984   : > { %4617 = vrot.lane.b32.xlu0 %v4616_v12, %s4876_s4  ;;  %4622 = vrot.lane.b32.xlu1 %v4621_v25, %s4875_s3  ;;  %v4584_v12 = vunpack.i.l.bf16 %v4583_v39 }
 0x986   : > { %v2792_v8 = vsel %vm1020_vm0, %v6415_v3, %v4584_v12 }
 0x9e6   : > { %v4578_v33 = vpop.permute.xlu0 %4577 }
 0x9e7   : > { %v4580_v40 = vunpack.i.h.bf16 %v4578_v33  ;;  %v4579_v5 = vunpack.i.l.bf16 %v4578_v33 }
 0x9e9   : > { %v2807_v22 = vsel %vm2806_vm2, %v2798_v26, %v4579_v5  ;;  %v2808_v53 = vsel %vm2806_vm2, %v2799_v57, %v4580_v40 }
 0x9ea   : > { %v4593_v58 = vpop.permute.xlu1 %4592  ;;  %v4588_v4 = vpop.permute.xlu0 %4587  ;;  %4508 = vmatprep.mubr.f32.mxu0 %v2807_v22 }
 0x9eb   : > { %v4595_v55 = vunpack.i.h.bf16 %v4593_v58  ;;  %v4594_v10 = vunpack.i.l.bf16 %v4593_v58  ;;  %v4590_v48 = vunpack.i.h.bf16 %v4588_v4  ;;  %v4589_v29 = vunpack.i.l.bf16 %v4588_v4  ;;  %4509 = vmatmul.mubr.f32.vlgmr.msra.gmra.mxu0 %v2808_v53 }
 0x9ed   : > { %v2800_v54 = vsel %vm1190_vm1, %v2792_v8, %v4589_v29  ;;  %v2801_v41 = vsel %vm1190_vm1, %v2793_v52, %v4590_v48 }
 0x9ee   : > { %v4603_v16 = vpop.permute.xlu1 %4602  ;;  %v4598_v7 = vpop.permute.xlu0 %4597  ;;  %v2809_v13 = vsel %vm2806_vm2, %v2800_v54, %v4594_v10  ;;  %v2810_v62 = vsel %vm2806_vm2, %v2801_v41, %v4595_v55 }
 0x9ef   : > { %v4600_v42 = vunpack.i.h.bf16 %v4598_v7  ;;  %v4599_v38 = vunpack.i.l.bf16 %v4598_v7  ;;  %4511 = vmatprep.mubr.f32.mxu0 %v2809_v13  ;;  %v4605_v34 = vunpack.i.h.bf16 %v4603_v16  ;;  %v4604_v6 = vunpack.i.l.bf16 %v4603_v16 }
 0x9f0   : > { %4512 = vmatmul.mubr.f32.gmra.mxu0 %v2810_v62 }
 0x9f1   : > { %v2794_v24 = vsel %vm1020_vm0, %v6417_v19, %v4599_v38  ;;  %v2795_v11 = vsel %vm1020_vm0, %v6418_v31, %v4600_v42 }
 0x9f2   : > { %v4613_v18 = vpop.permute.xlu1 %4612  ;;  %v4608_v15 = vpop.permute.xlu0 %4607  ;;  %v2802_v14 = vsel %vm1190_vm1, %v2794_v24, %v4604_v6  ;;  %v2803_v60 = vsel %vm1190_vm1, %v2795_v11, %v4605_v34 }
 0x9f3   : > { %v4610_v1 = vunpack.i.h.bf16 %v4608_v15  ;;  %v4609_v44 = vunpack.i.l.bf16 %v4608_v15  ;;  %v4615_v17 = vunpack.i.h.bf16 %v4613_v18  ;;  %v4614_v51 = vunpack.i.l.bf16 %v4613_v18 }
 0x9f5   : > { %v2811_v35 = vsel %vm2806_vm2, %v2802_v14, %v4609_v44  ;;  %v2812_v27 = vsel %vm2806_vm2, %v2803_v60, %v4610_v1  ;;  %v2796_v23 = vsel %vm1020_vm0, %v6419_v9, %v4614_v51  ;;  %v2797_v25 = vsel %vm1020_vm0, %v6420_v49, %v4615_v17  ;;  %v3152_v9 = vld [vmem:[%s5038_s2 + $0xc8] sm:$0xff]  ;;  %v3150_v49 = vld [vmem:[%s5038_s2 + $0xb8] sm:$0xff] }
 0x9f6   : > { %v4623_v36 = vpop.permute.xlu1 %4622  ;;  %v4618_v46 = vpop.permute.xlu0 %4617  ;;  %4514 = vmatprep.mubr.f32.mxu0 %v2811_v35 }
 0x9f7   : > { %v4625_v32 = vunpack.i.h.bf16 %v4623_v36  ;;  %v4624_v47 = vunpack.i.l.bf16 %v4623_v36  ;;  %v4620_v50 = vunpack.i.h.bf16 %v4618_v46  ;;  %v4619_v45 = vunpack.i.l.bf16 %v4618_v46  ;;  %4515 = vmatmul.mubr.f32.gmra.mxu0 %v2812_v27  ;;  %v3158_v36 = vld [vmem:[%s5038_s2 + $0xf8] sm:$0xff]  ;;  %v3157_v46 = vld [vmem:[%s5038_s2 + $0xf0] sm:$0xff] }
 0x9f8   : > { %3171 = vmatprep.subr.mxu1 %v3158_v36  ;;  %v3304_v36 = vld [vmem:[%s5049_s25 + $0x20] sm:$0xff] }
 0x9f9   : > { %v2804_v59 = vsel %vm1190_vm1, %v2796_v23, %v4619_v45  ;;  %v2805_v30 = vsel %vm1190_vm1, %v2797_v25, %v4620_v50  ;;  %3172 = vmatpush1.msra.mxu1 %v3157_v46  ;;  %v3154_v50 = vld [vmem:[%s5038_s2 + $0xd8] sm:$0xff]  ;;  %v3153_v45 = vld [vmem:[%s5038_s2 + $0xd0] sm:$0xff]  ;;  %v3151_v23 = vld [vmem:[%s5038_s2 + $0xc0] sm:$0xff] }
 0x9fa   : > { %v2813_v2 = vsel %vm2806_vm2, %v2804_v59, %v4624_v47  ;;  %v2814_v63 = vsel %vm2806_vm2, %v2805_v30, %v4625_v32  ;;  %v3156_v32 = vld [vmem:[%s5038_s2 + $0xe8] sm:$0xff]  ;;  %v3155_v47 = vld [vmem:[%s5038_s2 + $0xe0] sm:$0xff]  ;;  %v3149_v25 = vld [vmem:[%s5038_s2 + $0xb0] sm:$0xff] }
 0x9fb   : > { %4517 = vmatprep.mubr.f32.mxu0 %v2813_v2  ;;  %3173 = vmatprep.subr.mxu1 %v3156_v32  ;;  %v3148_v59 = vld [vmem:[%s5038_s2 + $0xa8] sm:$0xff]  ;;  %v3147_v30 = vld [vmem:[%s5038_s2 + $0xa0] sm:$0xff]  ;;  %v3146_v2 = vld [vmem:[%s5038_s2 + $0x98] sm:$0xff] }
 0x9fc   : > { %4518 = vmatmul.mubr.f32.gmra.mxu0 %v2814_v63  ;;  %3174 = vmatpush1.msra.mxu1 %v3155_v47  ;;  %v3145_v63 = vld [vmem:[%s5038_s2 + $0x90] sm:$0xff] }
 0x9fd   : > { %3175 = vmatprep.subr.mxu1 %v3154_v50 }
 0x9fe   : > { %3176 = vmatpush1.msra.mxu1 %v3153_v45 }
 0x9ff   : > { %3177 = vmatprep.subr.mxu1 %v3152_v9 }
 0xa00   : > { %3178 = vmatpush1.msra.mxu1 %v3151_v23 }
 0xa01   : > { %3179 = vmatprep.subr.mxu1 %v3150_v49 }
 0xa02   : > { %3180 = vmatpush1.msra.mxu1 %v3149_v25 }
 0xa03   : > { %3181 = vmatprep.subr.mxu1 %v3148_v59 }
 0xa04   : > { %3182 = vmatpush1.msra.mxu1 %v3147_v30 }
 0xa05   : > { %3183 = vmatprep.subr.mxu1 %v3146_v2 }
 0xa06   : > { %3184 = vmatpush1.msra.mxu1 %v3145_v63 }
 0xaab   : > { %v4510_v20 = vpop.f32.mrf.mxu0 }
 0xaac   : > { %v2910_v61 = vadd.f32 %v4510_v20, %v3964_v0  ;;  %v3143_v20 = vld [vmem:[%s5038_s2 + $0x80] sm:$0xff] }
 0xaad   : > { %v2904_v39 = vpop.f32.mrf.mxu0 }
 0xaae   : > { %v2905_v43 = vadd.f32 %v3964_v0, %v2904_v39  ;;  %2947 = vadd.xlane.f32.xlu1 %v2910_v61  ;;  %v3141_v39 = vld [vmem:[%s5038_s2 + $0x70] sm:$0xff] }
 0xab0   : > { %v4513_v28 = vpop.f32.mrf.mxu0  ;;  %2945 = vadd.xlane.f32.xlu0 %v2905_v43 }
 0xab1   : > { %v2920_v5 = vadd.f32 %v4513_v28, %v3964_v0  ;;  %v3139_v28 = vld [vmem:[%s5038_s2 + $0x60] sm:$0xff] }
 0xab2   : > { %v2914_v33 = vpop.f32.mrf.mxu0 }
 0xab3   : > { %v2915_v40 = vadd.f32 %v3964_v0, %v2914_v33  ;;  %v3138_v33 = vld [vmem:[%s5038_s2 + $0x58] sm:$0xff] }
 0xab5   : > { %2949 = vadd.xlane.f32.xlu0 %v2915_v40 }
 0xab7   : > { %v4516_v37 = vpop.f32.mrf.mxu0 }
 0xab8   : > { %v2930_v12 = vadd.f32 %v4516_v37, %v3964_v0  ;;  %v3135_v37 = vld [vmem:[%s5038_s2 + $0x40] sm:$0xff] }
 0xab9   : > { %v2924_v26 = vpop.f32.mrf.mxu0  ;;  %2951 = vadd.xlane.f32.xlu0 %v2920_v5 }
 0xaba   : > { %v2925_v57 = vadd.f32 %v3964_v0, %v2924_v26  ;;  %2955 = vadd.xlane.f32.xlu1 %v2930_v12  ;;  %v3133_v26 = vld [vmem:[%s5038_s2 + $0x30] sm:$0xff] }
 0xabc   : > { %v4519_v22 = vpop.f32.mrf.mxu0 }
 0xabd   : > { %v2940_v53 = vadd.f32 %v4519_v22, %v3964_v0  ;;  %2953 = vadd.xlane.f32.xlu0 %v2925_v57  ;;  %v3131_v22 = vld [vmem:[%s5038_s2 + $0x20] sm:$0xff] }
 0xabe   : > { %v2934_v58 = vpop.f32.mrf.mxu0 }
 0xabf   : > { %v2935_v4 = vadd.f32 %v3964_v0, %v2934_v58  ;;  %2959 = vadd.xlane.f32.xlu1 %v2940_v53  ;;  %v3144_v0 = vld [vmem:[%s5038_s2 + $0x88] sm:$0xff]  ;;  %v3129_v58 = vld [vmem:[%s5038_s2 + $0x10] sm:$0xff] }
 0xac0   : > { %3185 = vmatprep.subr.mxu1 %v3144_v0 }
 0xac1   : > { %2957 = vadd.xlane.f32.xlu0 %v2935_v4  ;;  %3186 = vmatpush1.msra.mxu1 %v3143_v20 }
 0xb37   : > { %v2948_v55 = vpop.xlane.xlu1 %2947 }
 0xb38   : > { %v2963_v10 = vmul.f32 0.0078125, %v2948_v55  ;;  %v3127_v55 = vld [vmem:[%s5038_s2] sm:$0xff] }
 0xb39   : > { %v2946_v48 = vpop.xlane.xlu0 %2945 }
 0xb3a   : > { %v6045_v29 = vsub.f32 %v2910_v61, %v2963_v10  ;;  %v2962_v3 = vmul.f32 0.0078125, %v2946_v48  ;;  %v3142_v61 = vld [vmem:[%s5038_s2 + $0x78] sm:$0xff] }
 0xb3b   : > { %3187 = vmatprep.subr.mxu1 %v3142_v61  ;;  %v3331_v10 = vld [vmem:[%s5049_s25 + $0xf8] sm:$0xff] }
 0xb3c   : > { %v6047_v8 = vsub.f32 %v2905_v43, %v2962_v3  ;;  %v2979_v21 = vmul.f32 %v6045_v29, %v6045_v29  ;;  %3188 = vmatpush1.msra.mxu1 %v3141_v39  ;;  %v3140_v43 = vld [vmem:[%s5038_s2 + $0x68] sm:$0xff]  ;;  %v3315_v48 = vld [vmem:[%s5049_s25 + $0x78] sm:$0xff]  ;;  %v3330_v3 = vld [vmem:[%s5049_s25 + $0xf0] sm:$0xff]  ;;  %4152 = vmatprep.subr.mxu0 %v3331_v10 }
 0xb3d   : > { %3189 = vmatprep.subr.mxu1 %v3140_v43  ;;  %4153 = vmatpush3.msra.mxu0 %v3315_v48 }
 0xb3e   : > { %2988 = vadd.xlane.f32.xlu1 %v2979_v21  ;;  %v2950_v52 = vpop.xlane.xlu0 %2949  ;;  %v2978_v54 = vmul.f32 %v6047_v8, %v6047_v8  ;;  %3190 = vmatpush1.msra.mxu1 %v3139_v28  ;;  %v3314_v21 = vld [vmem:[%s5049_s25 + $0x70] sm:$0xff] }
 0xb3f   : > { %v2964_v41 = vmul.f32 0.0078125, %v2950_v52  ;;  %3191 = vmatprep.subr.mxu1 %v3138_v33  ;;  %v3329_v52 = vld [vmem:[%s5049_s25 + $0xe8] sm:$0xff]  ;;  %4154 = vmatprep.subr.mxu0 %v3330_v3 }
 0xb40   : > { %2986 = vadd.xlane.f32.xlu0 %v2978_v54  ;;  %v3313_v54 = vld [vmem:[%s5049_s25 + $0x68] sm:$0xff]  ;;  %4155 = vmatpush3.msra.mxu0 %v3314_v21 }
 0xb41   : > { %v6053_v16 = vsub.f32 %v2915_v40, %v2964_v41  ;;  %v3137_v40 = vld [vmem:[%s5038_s2 + $0x50] sm:$0xff]  ;;  %v3328_v41 = vld [vmem:[%s5049_s25 + $0xe0] sm:$0xff]  ;;  %4156 = vmatprep.subr.mxu0 %v3329_v52 }
 0xb42   : > { %v2952_v7 = vpop.xlane.xlu0 %2951  ;;  %3192 = vmatpush1.msra.mxu1 %v3137_v40  ;;  %4157 = vmatpush3.msra.mxu0 %v3313_v54 }
 0xb43   : > { %v2965_v13 = vmul.f32 0.0078125, %v2952_v7  ;;  %v2956_v62 = vpop.xlane.xlu1 %2955  ;;  %v2980_v42 = vmul.f32 %v6053_v16, %v6053_v16  ;;  %v3312_v7 = vld [vmem:[%s5049_s25 + $0x60] sm:$0xff]  ;;  %4158 = vmatprep.subr.mxu0 %v3328_v41 }
 0xb44   : > { %v2967_v38 = vmul.f32 0.0078125, %v2956_v62  ;;  %v3311_v62 = vld [vmem:[%s5049_s25 + $0x58] sm:$0xff]  ;;  %4159 = vmatpush3.msra.mxu0 %v3312_v7 }
 0xb45   : > { %v6057_v34 = vsub.f32 %v2920_v5, %v2965_v13  ;;  %2990 = vadd.xlane.f32.xlu0 %v2980_v42  ;;  %v3136_v5 = vld [vmem:[%s5038_s2 + $0x48] sm:$0xff]  ;;  %v3327_v13 = vld [vmem:[%s5049_s25 + $0xd8] sm:$0xff]  ;;  %v3326_v42 = vld [vmem:[%s5049_s25 + $0xd0] sm:$0xff] }
 0xb46   : > { %v2954_v6 = vpop.xlane.xlu0 %2953  ;;  %v6059_v19 = vsub.f32 %v2930_v12, %v2967_v38  ;;  %3193 = vmatprep.subr.mxu1 %v3136_v5  ;;  %v3134_v12 = vld [vmem:[%s5038_s2 + $0x38] sm:$0xff]  ;;  %4160 = vmatprep.subr.mxu0 %v3327_v13  ;;  %v3310_v38 = vld [vmem:[%s5049_s25 + $0x50] sm:$0xff] }
 0xb47   : > { %v2966_v24 = vmul.f32 0.0078125, %v2954_v6  ;;  %v2981_v31 = vmul.f32 %v6057_v34, %v6057_v34  ;;  %3194 = vmatpush1.msra.mxu1 %v3135_v37  ;;  %4161 = vmatpush3.msra.mxu0 %v3311_v62  ;;  %v3325_v6 = vld [vmem:[%s5049_s25 + $0xc8] sm:$0xff] }
 0xb48   : > { %v2960_v11 = vpop.xlane.xlu1 %2959  ;;  %v2983_v51 = vmul.f32 %v6059_v19, %v6059_v19  ;;  %3195 = vmatprep.subr.mxu1 %v3134_v12  ;;  %4162 = vmatprep.subr.mxu0 %v3326_v42 }
 0xb49   : > { %v6063_v18 = vsub.f32 %v2925_v57, %v2966_v24  ;;  %v2969_v15 = vmul.f32 0.0078125, %v2960_v11  ;;  %2992 = vadd.xlane.f32.xlu1 %v2981_v31  ;;  %3196 = vmatpush1.msra.mxu1 %v3133_v26  ;;  %v3132_v57 = vld [vmem:[%s5038_s2 + $0x28] sm:$0xff]  ;;  %v3324_v31 = vld [vmem:[%s5049_s25 + $0xc0] sm:$0xff] }
 0xb4a   : > { %v2958_v1 = vpop.xlane.xlu0 %2957  ;;  %3197 = vmatprep.subr.mxu1 %v3132_v57  ;;  %v3309_v24 = vld [vmem:[%s5049_s25 + $0x48] sm:$0xff]  ;;  %4163 = vmatpush3.msra.mxu0 %v3310_v38  ;;  %v3308_v11 = vld [vmem:[%s5049_s25 + $0x40] sm:$0xff] }
 0xb4b   : > { %v6065_v44 = vsub.f32 %v2940_v53, %v2969_v15  ;;  %v2968_v17 = vmul.f32 0.0078125, %v2958_v1  ;;  %v2982_v14 = vmul.f32 %v6063_v18, %v6063_v18  ;;  %3198 = vmatpush1.msra.mxu1 %v3131_v22  ;;  %v3130_v53 = vld [vmem:[%s5038_s2 + $0x18] sm:$0xff]  ;;  %4164 = vmatprep.subr.mxu0 %v3325_v6 }
 0xb4c   : > { %3199 = vmatprep.subr.mxu1 %v3130_v53  ;;  %4165 = vmatpush3.msra.mxu0 %v3309_v24  ;;  %v3323_v15 = vld [vmem:[%s5049_s25 + $0xb8] sm:$0xff] }
 0xb4d   : > { %v6071_v60 = vsub.f32 %v2935_v4, %v2968_v17  ;;  %2996 = vadd.xlane.f32.xlu1 %v2983_v51  ;;  %2994 = vadd.xlane.f32.xlu0 %v2982_v14  ;;  %v2985_v35 = vmul.f32 %v6065_v44, %v6065_v44  ;;  %v3128_v4 = vld [vmem:[%s5038_s2 + $0x8] sm:$0xff]  ;;  %v3307_v1 = vld [vmem:[%s5049_s25 + $0x38] sm:$0xff]  ;;  %v3322_v17 = vld [vmem:[%s5049_s25 + $0xb0] sm:$0xff] }
 0xb4e   : > { %3200 = vmatpush1.msra.mxu1 %v3129_v58  ;;  %4166 = vmatprep.subr.mxu0 %v3324_v31  ;;  %v3306_v51 = vld [vmem:[%s5049_s25 + $0x30] sm:$0xff]  ;;  %v3321_v14 = vld [vmem:[%s5049_s25 + $0xa8] sm:$0xff]  ;;  %v6148_v31 = vld [vmem:[%s6422_s0] ss:$0 sm:$0xff] }
 0xb4f   : > { %v2984_v27 = vmul.f32 %v6071_v60, %v6071_v60  ;;  %3201 = vmatprep.subr.mxu1 %v3128_v4  ;;  %4167 = vmatpush3.msra.mxu0 %v3308_v11 }
 0xb50   : > { %3202 = vmatpush1.msra.mxu1 %v3127_v55  ;;  %4168 = vmatprep.subr.mxu0 %v3323_v15 }
 0xb51   : > { %3000 = vadd.xlane.f32.xlu1 %v2985_v35  ;;  %2998 = vadd.xlane.f32.xlu0 %v2984_v27  ;;  %v3305_v35 = vld [vmem:[%s5049_s25 + $0x28] sm:$0xff]  ;;  %v3320_v27 = vld [vmem:[%s5049_s25 + $0xa0] sm:$0xff] }
 0xb52   : > { %4169 = vmatpush3.msra.mxu0 %v3307_v1 }
 0xb53   : > { %4170 = vmatprep.subr.mxu0 %v3322_v17 }
 0xb54   : > { %4171 = vmatpush3.msra.mxu0 %v3306_v51 }
 0xb55   : > { %4172 = vmatprep.subr.mxu0 %v3321_v14 }
 0xb56   : > { %4173 = vmatpush3.msra.mxu0 %v3305_v35 }
 0xb57   : > { %4174 = vmatprep.subr.mxu0 %v3320_v27 }
 0xb58   : > { %4175 = vmatpush3.msra.mxu0 %v3304_v36 }
 0xbc7   : > { %v2989_v46 = vpop.xlane.xlu1 %2988 }
 0xbc8   : > { %v3004_v32 = vmul.f32 0.007874016, %v2989_v46 }
 0xbc9   : > { %v2987_v47 = vpop.xlane.xlu0 %2986 }
 0xbca   : > { %4754 = vrsqrt.f32 %v3004_v32  ;;  %v3003_v50 = vmul.f32 0.007874016, %v2987_v47  ;;  %vm3034_vm3 = vcmp.eq.f32.partialorder %v3004_v32, inf  ;;  %v3037_v20 = vand.u32 2147483648, %v3004_v32 }
 0xbcb   : > { %vm3036_vm4 = vcmp.eq.f32.partialorder %v3004_v32, 0.0  ;;  %v3017_v47 = vmul.f32 %v6148_v31, %v6047_v8 }
 0xbcc   : > { %4756 = vrsqrt.f32 %v3003_v50  ;;  %vm3027_vm5 = vcmp.eq.f32.partialorder %v3003_v50, inf  ;;  %v3030_v12 = vand.u32 2147483648, %v3003_v50  ;;  %vm3029_vm6 = vcmp.eq.f32.partialorder %v3003_v50, 0.0 }
 0xbce   : > { %v2991_v45 = vpop.xlane.xlu0 %2990 }
 0xbcf   : > { %v3005_v9 = vmul.f32 0.007874016, %v2991_v45 }
 0xbd1   : > { %4758 = vrsqrt.f32 %v3005_v9  ;;  %vm3041_vm7 = vcmp.eq.f32.partialorder %v3005_v9, inf  ;;  %v3044_v55 = vand.u32 2147483648, %v3005_v9  ;;  %vm3043_vm8 = vcmp.eq.f32.partialorder %v3005_v9, 0.0 }
 0xbd2   : > { %v2993_v23 = vpop.xlane.xlu1 %2992 }
 0xbd3   : > { %v3006_v49 = vmul.f32 0.007874016, %v2993_v23 }
 0xbd5   : > { %4760 = vrsqrt.f32 %v3006_v49  ;;  %vm3048_vm9 = vcmp.eq.f32.partialorder %v3006_v49, inf  ;;  %v3051_v54 = vand.u32 2147483648, %v3006_v49  ;;  %vm3050_vm10 = vcmp.eq.f32.partialorder %v3006_v49, 0.0 }
 0xbd6   : > { %v2997_v25 = vpop.xlane.xlu1 %2996  ;;  %v2995_v59 = vpop.xlane.xlu0 %2994 }
 0xbd7   : > { %v4755_v30 = vpop.eup %4754  ;;  %v3008_v2 = vmul.f32 0.007874016, %v2997_v25  ;;  %v6133_v63 = vmul.f32 0.007874016, %v2995_v59  ;;  %v3966_v59 = vld [vmem:[%s6423_s21] ss:$0 sm:$0xff] }
 0xbd8   : > { %v3033_v0 = vmul.f32 %v4755_v30, %v3004_v32 }
 0xbd9   : > { %4762 = vrsqrt.f32 %v3008_v2  ;;  %v4757_v61 = vpop.eup %4756  ;;  %vm3062_vm11 = vcmp.eq.f32.partialorder %v3008_v2, inf  ;;  %vm3064_vm12 = vcmp.eq.f32.partialorder %v3008_v2, 0.0  ;;  %v3065_v6 = vand.u32 2147483648, %v3008_v2 }
 0xbda   : > { %v3035_v39 = vsel %vm3034_vm3, %v3004_v32, %v3033_v0  ;;  %4764 = vrsqrt.f32 %v6133_v63  ;;  %v3001_v43 = vpop.xlane.xlu1 %3000  ;;  %v2999_v28 = vpop.xlane.xlu0 %2998  ;;  %v3026_v40 = vmul.f32 %v4757_v61, %v3003_v50  ;;  %vm3055_vm13 = vcmp.eq.f32.partialorder %v6133_v63, inf }
 0xbdb   : > { %v3038_v33 = vsel %vm3036_vm4, %v3037_v20, %v3035_v39  ;;  %v6136_v5 = vmul.f32 0.007874016, %v3001_v43  ;;  %v6138_v26 = vmul.f32 0.007874016, %v2999_v28  ;;  %v3058_v15 = vand.u32 2147483648, %v6133_v63 }
 0xbdc   : > { %v3082_v37 = vadd.f32 1e-06, %v3038_v33  ;;  %v3028_v57 = vsel %vm3027_vm5, %v3003_v50, %v3026_v40  ;;  %vm3057_vm14 = vcmp.eq.f32.partialorder %v6133_v63, 0.0  ;;  %v3018_v32 = vmul.f32 %v6148_v31, %v6045_v29  ;;  %v4826_v33 = vld [vmem:[#allocation2 + $0x30] sm:$0xff] }
 0xbdd   : > { %4766 = vrsqrt.f32 %v6136_v5  ;;  %v3031_v53 = vsel %vm3029_vm6, %v3030_v12, %v3028_v57  ;;  %vm3076_vm15 = vcmp.eq.f32.partialorder %v6136_v5, inf  ;;  %vm3078_vm0 = vcmp.eq.f32.partialorder %v6136_v5, 0.0 }
 0xbde   : > { %v4759_v22 = vpop.eup %4758  ;;  %4768 = vrcp.f32 %v3082_v37  ;;  %v3081_v58 = vadd.f32 1e-06, %v3031_v53  ;;  %vm3069_vm1 = vcmp.eq.f32.partialorder %v6138_v26, inf  ;;  %v3072_v29 = vand.u32 2147483648, %v6138_v26 }
 0xbdf   : > { %v3040_v4 = vmul.f32 %v4759_v22, %v3005_v9  ;;  %4770 = vrsqrt.f32 %v6138_v26  ;;  %vm3071_vm2 = vcmp.eq.f32.partialorder %v6138_v26, 0.0  ;;  %v3019_v0 = vmul.f32 %v6148_v31, %v6053_v16  ;;  %v4827_v16 = vld [vmem:[#allocation2] sm:$0xff] }
 0xbe0   : > { %4772 = vrcp.f32 %v3081_v58  ;;  %v3020_v37 = vmul.f32 %v6148_v31, %v6057_v34  ;;  %v3021_v53 = vmul.f32 %v6148_v31, %v6063_v18  ;;  %v4828_v34 = vld [vmem:[#allocation2 + $0x18] sm:$0xff] }
 0xbe1   : > { %v3042_v10 = vsel %vm3041_vm7, %v3005_v9, %v3040_v4  ;;  %v3079_v9 = vand.u32 2147483648, %v6136_v5 }
 0xbe2   : > { %v4761_v48 = vpop.eup %4760  ;;  %v3045_v3 = vsel %vm3043_vm8, %v3044_v55, %v3042_v10 }
 0xbe3   : > { %v3083_v21 = vadd.f32 1e-06, %v3045_v3  ;;  %v3047_v52 = vmul.f32 %v4761_v48, %v3006_v49  ;;  %v3022_v3 = vmul.f32 %v6148_v31, %v6059_v19 }
 0xbe5   : > { %4774 = vrcp.f32 %v3083_v21  ;;  %v3049_v41 = vsel %vm3048_vm9, %v3006_v49, %v3047_v52  ;;  %v4829_v21 = vld [vmem:[#allocation2 + $0x10] sm:$0xff] }
 0xbe6   : > { %v4763_v7 = vpop.eup %4762  ;;  %v3052_v13 = vsel %vm3050_vm10, %v3051_v54, %v3049_v41 }
 0xbe7   : > { %v4765_v62 = vpop.eup %4764  ;;  %v3084_v42 = vadd.f32 1e-06, %v3052_v13  ;;  %v3061_v38 = vmul.f32 %v4763_v7, %v3008_v2  ;;  %v3023_v7 = vmul.f32 %v6148_v31, %v6071_v60  ;;  %v4830_v13 = vld [vmem:[#allocation2 + $0x8] sm:$0xff] }
 0xbe8   : > { %v3054_v24 = vmul.f32 %v4765_v62, %v6133_v63 }
 0xbe9   : > { %4776 = vrcp.f32 %v3084_v42  ;;  %v3063_v11 = vsel %vm3062_vm11, %v3008_v2, %v3061_v38 }
 0xbea   : > { %v4767_v1 = vpop.eup %4766  ;;  %v3066_v17 = vsel %vm3064_vm12, %v3065_v6, %v3063_v11  ;;  %v3056_v51 = vsel %vm3055_vm13, %v6133_v63, %v3054_v24  ;;  %v3024_v6 = vmul.f32 %v6148_v31, %v6065_v44  ;;  %v4831_v24 = vld [vmem:[#allocation2 + $0x20] sm:$0xff] }
 0xbeb   : > { %v4769_v14 = vpop.eup %4768  ;;  %v3086_v35 = vadd.f32 1e-06, %v3066_v17  ;;  %v3059_v27 = vsel %vm3057_vm14, %v3058_v15, %v3056_v51  ;;  %v3075_v36 = vmul.f32 %v4767_v1, %v6136_v5  ;;  %v4832_v1 = vld [vmem:[#allocation2 + $0x28] sm:$0xff]  ;;  %v4833_v17 = vld [vmem:[#allocation2 + $0x38] sm:$0xff] }
 0xbec   : > { %v4771_v46 = vpop.eup %4770  ;;  %v3085_v50 = vadd.f32 1e-06, %v3059_v27  ;;  %v3092_v25 = vmul.f32 %v4769_v14, %v3018_v32  ;;  %v3319_v14 = vld [vmem:[%s5049_s25 + $0x98] sm:$0xff]  ;;  %v3318_v27 = vld [vmem:[%s5049_s25 + $0x90] sm:$0xff]  ;;  %v3301_v32 = vld [vmem:[%s5049_s25 + $0x8] sm:$0xff] }
 0xbed   : > { %v3077_v45 = vsel %vm3076_vm15, %v6136_v5, %v3075_v36  ;;  %v3068_v23 = vmul.f32 %v4771_v46, %v6138_v26  ;;  %v4773_v49 = vpop.eup %4772  ;;  %4176 = vmatprep.subr.mxu0 %v3319_v14  ;;  %v3302_v36 = vld [vmem:[%s5049_s25 + $0x10] sm:$0xff]  ;;  %v3317_v46 = vld [vmem:[%s5049_s25 + $0x88] sm:$0xff] }
 0xbee   : > { %4778 = vrcp.f32 %v3085_v50  ;;  %v3090_v30 = vmul.f32 %v4773_v49, %v3017_v47  ;;  %v3080_v2 = vsel %vm3078_vm0, %v3079_v9, %v3077_v45  ;;  %v3112_v43 = vadd.f32 %v3966_v59, %v3092_v25  ;;  %v3300_v47 = vld [vmem:[%s5049_s25] sm:$0xff] }
 0xbef   : > { %4780 = vrcp.f32 %v3086_v35  ;;  %v3070_v8 = vsel %vm3069_vm1, %v6138_v26, %v3068_v23  ;;  %v3088_v28 = vadd.f32 1e-06, %v3080_v2  ;;  %v3303_v35 = vld [vmem:[%s5049_s25 + $0x18] sm:$0xff]  ;;  %v3159_v50 = vld [vmem:[%s5044_s14] sm:$0x3] }
 0xbf0   : > { %v3073_v63 = vsel %vm3071_vm2, %v3072_v29, %v3070_v8  ;;  %v3111_v61 = vadd.f32 %v3966_v59, %v3090_v30  ;;  %v6181_v26 = vadd.f32 %v4827_v16, %v3112_v43  ;;  %4177 = vmatpush3.msra.mxu0 %v3303_v35  ;;  %v6424_v45 = vld [vmem:[#allocation11_spill] sm:$0xff] }
 0xbf1   : > { %v3087_v20 = vadd.f32 1e-06, %v3073_v63  ;;  %4178 = vmatprep.subr.mxu0 %v3318_v27  ;;  %v6425_v9 = vsub.s32 0, %v6424_v45  ;;  %v6426_v49 = vsub.s32 1, %v6424_v45 }
 0xbf2   : > { %v4775_v39 = vpop.eup %4774  ;;  %v6175_v40 = vadd.f32 %v4826_v33, %v3111_v61  ;;  %4179 = vmatpush3.msra.mxu0 %v3302_v36 }
 0xbf3   : > { %4782 = vrcp.f32 %v3087_v20  ;;  %v3094_v5 = vmul.f32 %v4775_v39, %v3019_v0  ;;  %4180 = vmatprep.subr.mxu0 %v3317_v46  ;;  %v3164_v23 = vrot.slane %v3159_v50, %v6425_v9  ;;  %v3168_v29 = vrot.slane %v3159_v50, %v6426_v49 }
 0xbf4   : > { %3236 = vmatmul.mubr.f32.vlgmr.msra.gmra.mxu1 %v6175_v40  ;;  %4784 = vrcp.f32 %v3088_v28  ;;  %4181 = vmatpush3.msra.mxu0 %v3301_v32 }
 0xbf5   : > { %3241 = vmatprep.mubr.f32.mxu1 %v6413_v56  ;;  %v3113_v57 = vadd.f32 %v3966_v59, %v3094_v5 }
 0xbf6   : > { %v4777_v12 = vpop.eup %4776 }
 0xbf7   : > { %v3096_v22 = vmul.f32 %v4777_v12, %v3020_v37  ;;  %v6187_v4 = vadd.f32 %v4828_v34, %v3113_v57 }
 0xbf8   : > { %3242 = vmatmul.mubr.f32.gmra.mxu1 %v6181_v26 }
 0xbf9   : > { %3247 = vmatprep.mubr.f32.mxu1 %v6413_v56  ;;  %v3114_v55 = vadd.f32 %v3966_v59, %v3096_v22 }
 0xbfb   : > { %v4779_v58 = vpop.eup %4778  ;;  %v6193_v52 = vadd.f32 %v4829_v21, %v3114_v55 }
 0xbfc   : > { %v4781_v10 = vpop.eup %4780  ;;  %v3098_v48 = vmul.f32 %v4779_v58, %v3021_v53  ;;  %3248 = vmatmul.mubr.f32.gmra.mxu1 %v6187_v4 }
 0xbfd   : > { %3253 = vmatprep.mubr.f32.mxu1 %v6413_v56  ;;  %v3100_v54 = vmul.f32 %v4781_v10, %v3022_v3 }
 0xbfe   : > { %v3115_v18 = vadd.f32 %v3966_v59, %v3098_v48 }
 0xbff   : > { %v3116_v19 = vadd.f32 %v3966_v59, %v3100_v54 }
 0xc00   : > { %v4783_v41 = vpop.eup %4782  ;;  %3254 = vmatmul.mubr.f32.gmra.mxu1 %v6193_v52  ;;  %v6199_v62 = vadd.f32 %v4830_v13, %v3115_v18 }
 0xc01   : > { %3259 = vmatprep.mubr.f32.mxu1 %v6413_v56  ;;  %v3102_v42 = vmul.f32 %v4783_v41, %v3023_v7  ;;  %v4785_v38 = vpop.eup %4784  ;;  %v6205_v60 = vadd.f32 %v4831_v24, %v3116_v19 }
 0xc02   : > { %v3104_v15 = vmul.f32 %v4785_v38, %v3024_v6 }
 0xc03   : > { %v3117_v11 = vadd.f32 %v3966_v59, %v3102_v42 }
 0xc04   : > { %3260 = vmatmul.mubr.f32.gmra.mxu1 %v6199_v62  ;;  %v3118_v31 = vadd.f32 %v3966_v59, %v3104_v15 }
 0xc05   : > { %3265 = vmatprep.mubr.f32.mxu1 %v6413_v56  ;;  %v6209_v44 = vadd.f32 %v4832_v1, %v3117_v11 }
 0xc06   : > { %v6213_v51 = vadd.f32 %v4833_v17, %v3118_v31 }
 0xc08   : > { %3266 = vmatmul.mubr.f32.gmra.mxu1 %v6205_v60 }
 0xc09   : > { %3271 = vmatprep.mubr.f32.mxu1 %v6413_v56 }
 0xc0c   : > { %3272 = vmatmul.mubr.f32.gmra.mxu1 %v6209_v44 }
 0xc0d   : > { %3277 = vmatprep.mubr.f32.mxu1 %v6413_v56  ;;  %v3316_v56 = vld [vmem:[%s5049_s25 + $0x80] sm:$0xff] }
 0xc0e   : > { %4182 = vmatprep.subr.mxu0 %v3316_v56 }
 0xc0f   : > { %4183 = vmatpush3.msra.mxu0 %v3300_v47  ;;  %v3967_v47 = vld [vmem:[%s688_s18] ss:$0 sm:$0xff] }
 0xc10   : > { %3278 = vmatmul.mubr.f32.gmra.mxu1 %v6213_v51 }
 0xcb4   : > { %v3237_v25 = vpop.f32.mrf.mxu1 }
 0xcb5   : > { %v3238_v8 = vadd.f32 %v3237_v25, %v3164_v23 }
 0xcb6   : > { %v3239_v59 = vpop.f32.mrf.mxu1 }
 0xcb7   : > { %v3240_v30 = vadd.f32 %v3239_v59, %v3168_v29  ;;  %v3284_v0 = vmax.f32 %v3238_v8, 0.0 }
 0xcb8   : > { %v3243_v2 = vpop.f32.mrf.mxu1 }
 0xcb9   : > { %v3285_v63 = vmax.f32 %v3240_v30, 0.0  ;;  %v3244_v20 = vadd.f32 %v3243_v2, %v3164_v23 }
 0xcba   : > { %v3245_v61 = vpop.f32.mrf.mxu1 }
 0xcbb   : > { %v3246_v39 = vadd.f32 %v3245_v61, %v3168_v29  ;;  %3403 = vmatprep.mubr.f32.mxu0 %v3285_v63  ;;  %v3286_v33 = vmax.f32 %v3244_v20, 0.0 }
 0xcbc   : > { %v3249_v43 = vpop.f32.mrf.mxu1  ;;  %3404 = vmatmul.mubr.f32.vlgmr.msra.gmra.mxu0 %v3284_v0 }
 0xcbd   : > { %v3287_v28 = vmax.f32 %v3246_v39, 0.0  ;;  %v3250_v5 = vadd.f32 %v3249_v43, %v3164_v23 }
 0xcbe   : > { %v3251_v37 = vpop.f32.mrf.mxu1 }
 0xcbf   : > { %v3252_v12 = vadd.f32 %v3251_v37, %v3168_v29  ;;  %3408 = vmatprep.mubr.f32.mxu0 %v3287_v28  ;;  %v3288_v22 = vmax.f32 %v3250_v5, 0.0 }
 0xcc0   : > { %v3255_v16 = vpop.f32.mrf.mxu1  ;;  %3409 = vmatmul.mubr.f32.gmra.mxu0 %v3286_v33 }
 0xcc1   : > { %v3289_v57 = vmax.f32 %v3252_v12, 0.0  ;;  %v3256_v53 = vadd.f32 %v3255_v16, %v3164_v23 }
 0xcc2   : > { %v3257_v58 = vpop.f32.mrf.mxu1 }
 0xcc3   : > { %v3258_v34 = vadd.f32 %v3257_v58, %v3168_v29  ;;  %3413 = vmatprep.mubr.f32.mxu0 %v3289_v57  ;;  %v3290_v48 = vmax.f32 %v3256_v53, 0.0 }
 0xcc4   : > { %v3261_v55 = vpop.f32.mrf.mxu1  ;;  %3414 = vmatmul.mubr.f32.gmra.mxu0 %v3288_v22 }
 0xcc5   : > { %v3291_v10 = vmax.f32 %v3258_v34, 0.0  ;;  %v3262_v3 = vadd.f32 %v3261_v55, %v3164_v23 }
 0xcc6   : > { %v3263_v21 = vpop.f32.mrf.mxu1 }
 0xcc7   : > { %v3264_v18 = vadd.f32 %v3263_v21, %v3168_v29  ;;  %3418 = vmatprep.mubr.f32.mxu0 %v3291_v10  ;;  %v3292_v7 = vmax.f32 %v3262_v3, 0.0 }
 0xcc8   : > { %v3267_v54 = vpop.f32.mrf.mxu1  ;;  %3419 = vmatmul.mubr.f32.gmra.mxu0 %v3290_v48 }
 0xcc9   : > { %v3293_v41 = vmax.f32 %v3264_v18, 0.0  ;;  %v3268_v13 = vadd.f32 %v3267_v54, %v3164_v23 }
 0xcca   : > { %v3269_v19 = vpop.f32.mrf.mxu1 }
 0xccb   : > { %v3270_v42 = vadd.f32 %v3269_v19, %v3168_v29  ;;  %3423 = vmatprep.mubr.f32.mxu0 %v3293_v41  ;;  %v3294_v24 = vmax.f32 %v3268_v13, 0.0 }
 0xccc   : > { %v3273_v38 = vpop.f32.mrf.mxu1  ;;  %3424 = vmatmul.mubr.f32.gmra.mxu0 %v3292_v7 }
 0xccd   : > { %v3295_v6 = vmax.f32 %v3270_v42, 0.0  ;;  %v3274_v11 = vadd.f32 %v3273_v38, %v3164_v23 }
 0xcce   : > { %v3275_v15 = vpop.f32.mrf.mxu1 }
 0xccf   : > { %v3276_v1 = vadd.f32 %v3275_v15, %v3168_v29  ;;  %3428 = vmatprep.mubr.f32.mxu0 %v3295_v6  ;;  %v3296_v14 = vmax.f32 %v3274_v11, 0.0 }
 0xcd0   : > { %v3279_v31 = vpop.f32.mrf.mxu1  ;;  %3429 = vmatmul.mubr.f32.gmra.mxu0 %v3294_v24 }
 0xcd1   : > { %v3297_v17 = vmax.f32 %v3276_v1, 0.0  ;;  %v3280_v35 = vadd.f32 %v3279_v31, %v3164_v23 }
 0xcd2   : > { %v3281_v27 = vpop.f32.mrf.mxu1 }
 0xcd3   : > { %v3282_v36 = vadd.f32 %v3281_v27, %v3168_v29  ;;  %3433 = vmatprep.mubr.f32.mxu0 %v3297_v17  ;;  %v3298_v32 = vmax.f32 %v3280_v35, 0.0 }
 0xcd4   : > { %3434 = vmatmul.mubr.f32.gmra.mxu0 %v3296_v14 }
 0xcd5   : > { %v3299_v46 = vmax.f32 %v3282_v36, 0.0 }
 0xcd7   : > { %3438 = vmatprep.mubr.f32.mxu0 %v3299_v46 }
 0xcd8   : > { %3439 = vmatmul.mubr.f32.gmra.mxu0 %v3298_v32 }
 0xd7c   : > { %v4184_v56 = vpop.f32.mrf.mxu0 }
 0xd7e   : > { %v4185_v50 = vpop.f32.mrf.mxu0 }
 0xd7f   : > { %v4186_v45 = vadd.f32 %v4185_v50, %v4184_v56 }
 0xd80   : > { %v4187_v9 = vpop.f32.mrf.mxu0 }
 0xd81   : > { %v3406_v49 = vadd.f32 %v4186_v45, %v3967_v47 }
 0xd82   : > { %v4188_v25 = vpop.f32.mrf.mxu0 }
 0xd83   : > { %v4189_v23 = vadd.f32 %v4188_v25, %v4187_v9  ;;  %3446 = vadd.xlane.f32.xlu0 %v3406_v49 }
 0xd84   : > { %v4190_v29 = vpop.f32.mrf.mxu0 }
 0xd85   : > { %v3411_v8 = vadd.f32 %v4189_v23, %v3967_v47 }
 0xd86   : > { %v4191_v59 = vpop.f32.mrf.mxu0 }
 0xd87   : > { %v4192_v30 = vadd.f32 %v4191_v59, %v4190_v29  ;;  %3448 = vadd.xlane.f32.xlu1 %v3411_v8 }
 0xd88   : > { %v4193_v2 = vpop.f32.mrf.mxu0 }
 0xd89   : > { %v3416_v63 = vadd.f32 %v4192_v30, %v3967_v47 }
 0xd8a   : > { %v4194_v0 = vpop.f32.mrf.mxu0 }
 0xd8b   : > { %v4195_v20 = vadd.f32 %v4194_v0, %v4193_v2  ;;  %3450 = vadd.xlane.f32.xlu0 %v3416_v63 }
 0xd8c   : > { %v4196_v61 = vpop.f32.mrf.mxu0 }
 0xd8d   : > { %v3421_v39 = vadd.f32 %v4195_v20, %v3967_v47 }
 0xd8e   : > { %v4197_v43 = vpop.f32.mrf.mxu0 }
 0xd8f   : > { %v4198_v28 = vadd.f32 %v4197_v43, %v4196_v61  ;;  %3452 = vadd.xlane.f32.xlu1 %v3421_v39 }
 0xd90   : > { %v4199_v33 = vpop.f32.mrf.mxu0 }
 0xd91   : > { %v3426_v5 = vadd.f32 %v4198_v28, %v3967_v47 }
 0xd92   : > { %v4200_v37 = vpop.f32.mrf.mxu0 }
 0xd93   : > { %v4201_v12 = vadd.f32 %v4200_v37, %v4199_v33  ;;  %3454 = vadd.xlane.f32.xlu0 %v3426_v5 }
 0xd94   : > { %v4202_v16 = vpop.f32.mrf.mxu0 }
 0xd95   : > { %v3431_v57 = vadd.f32 %v4201_v12, %v3967_v47 }
 0xd96   : > { %v4203_v22 = vpop.f32.mrf.mxu0 }
 0xd97   : > { %v4204_v53 = vadd.f32 %v4203_v22, %v4202_v16  ;;  %3456 = vadd.xlane.f32.xlu1 %v3431_v57 }
 0xd98   : > { %v4205_v58 = vpop.f32.mrf.mxu0 }
 0xd99   : > { %v3436_v34 = vadd.f32 %v4204_v53, %v3967_v47 }
 0xd9a   : > { %v4206_v55 = vpop.f32.mrf.mxu0 }
 0xd9b   : > { %v4207_v10 = vadd.f32 %v4206_v55, %v4205_v58  ;;  %3458 = vadd.xlane.f32.xlu0 %v3436_v34 }
 0xd9d   : > { %v3441_v48 = vadd.f32 %v4207_v10, %v3967_v47 }
 0xd9f   : > { %3460 = vadd.xlane.f32.xlu1 %v3441_v48 }
 0xe0c   : > { %v3447_v3 = vpop.xlane.xlu0 %3446 }
 0xe0d   : > { %v3462_v21 = vmul.f32 0.0078125, %v3447_v3 }
 0xe0f   : > { %v6234_v18 = vsub.f32 %v3406_v49, %v3462_v21 }
 0xe10   : > { %v3449_v54 = vpop.xlane.xlu1 %3448 }
 0xe11   : > { %v3463_v41 = vmul.f32 0.0078125, %v3449_v54  ;;  %v3478_v7 = vmul.f32 %v6234_v18, %v6234_v18 }
 0xe13   : > { %v6238_v13 = vsub.f32 %v3411_v8, %v3463_v41  ;;  %3486 = vadd.xlane.f32.xlu0 %v3478_v7 }
 0xe14   : > { %v3451_v19 = vpop.xlane.xlu0 %3450 }
 0xe15   : > { %v3464_v42 = vmul.f32 0.0078125, %v3451_v19  ;;  %v3479_v38 = vmul.f32 %v6238_v13, %v6238_v13 }
 0xe17   : > { %v6242_v6 = vsub.f32 %v3416_v63, %v3464_v42  ;;  %3488 = vadd.xlane.f32.xlu1 %v3479_v38 }
 0xe18   : > { %v3453_v24 = vpop.xlane.xlu1 %3452 }
 0xe19   : > { %v3465_v11 = vmul.f32 0.0078125, %v3453_v24  ;;  %v3480_v15 = vmul.f32 %v6242_v6, %v6242_v6 }
 0xe1b   : > { %v6246_v1 = vsub.f32 %v3421_v39, %v3465_v11  ;;  %3490 = vadd.xlane.f32.xlu0 %v3480_v15 }
 0xe1c   : > { %v3455_v31 = vpop.xlane.xlu0 %3454 }
 0xe1d   : > { %v3466_v17 = vmul.f32 0.0078125, %v3455_v31  ;;  %v3481_v14 = vmul.f32 %v6246_v1, %v6246_v1 }
 0xe1f   : > { %v6250_v35 = vsub.f32 %v3426_v5, %v3466_v17  ;;  %3492 = vadd.xlane.f32.xlu1 %v3481_v14 }
 0xe20   : > { %v3457_v27 = vpop.xlane.xlu1 %3456 }
 0xe21   : > { %v3467_v36 = vmul.f32 0.0078125, %v3457_v27  ;;  %v3482_v46 = vmul.f32 %v6250_v35, %v6250_v35 }
 0xe23   : > { %v6254_v32 = vsub.f32 %v3431_v57, %v3467_v36  ;;  %3494 = vadd.xlane.f32.xlu0 %v3482_v46  ;;  %v6276_v36 = vld [vmem:[%s691_s30] ss:$0 sm:$0xff]  ;;  %s6427_s30 = sld [smem:[#allocation10_spill]] }
 0xe24   : > { %v3459_v56 = vpop.xlane.xlu0 %3458 }
 0xe25   : > { %v3468_v47 = vmul.f32 0.0078125, %v3459_v56  ;;  %v3483_v50 = vmul.f32 %v6254_v32, %v6254_v32 }
 0xe27   : > { %v6258_v45 = vsub.f32 %v3436_v34, %v3468_v47  ;;  %3496 = vadd.xlane.f32.xlu1 %v3483_v50 }
 0xe28   : > { %v3461_v9 = vpop.xlane.xlu1 %3460 }
 0xe29   : > { %v3469_v49 = vmul.f32 0.0078125, %v3461_v9  ;;  %v3484_v25 = vmul.f32 %v6258_v45, %v6258_v45  ;;  %v3516_v9 = vmul.f32 %v6276_v36, %v6234_v18 }
 0xe2b   : > { %v6262_v23 = vsub.f32 %v3441_v48, %v3469_v49  ;;  %3498 = vadd.xlane.f32.xlu0 %v3484_v25 }
 0xe2d   : > { %v3485_v29 = vmul.f32 %v6262_v23, %v6262_v23 }
 0xe2f   : > { %3500 = vadd.xlane.f32.xlu1 %v3485_v29  ;;  %v6286_v29 = vld [vmem:[%s694_s8] ss:$0 sm:$0xff] }
 0xe9c   : > { %v3487_v8 = vpop.xlane.xlu0 %3486 }
 0xe9d   : > { %v3502_v59 = vmul.f32 0.007874016, %v3487_v8 }
 0xe9f   : > { %4786 = vrsqrt.f32 %v3502_v59  ;;  %vm3526_vm3 = vcmp.eq.f32.partialorder %v3502_v59, inf  ;;  %v3529_v5 = vand.u32 2147483648, %v3502_v59  ;;  %vm3528_vm4 = vcmp.eq.f32.partialorder %v3502_v59, 0.0 }
 0xea0   : > { %v3489_v30 = vpop.xlane.xlu1 %3488 }
 0xea1   : > { %v3503_v2 = vmul.f32 0.007874016, %v3489_v30 }
 0xea3   : > { %4788 = vrsqrt.f32 %v3503_v2  ;;  %vm3533_vm5 = vcmp.eq.f32.partialorder %v3503_v2, inf  ;;  %v3536_v34 = vand.u32 2147483648, %v3503_v2  ;;  %vm3535_vm6 = vcmp.eq.f32.partialorder %v3503_v2, 0.0 }
 0xea4   : > { %v3491_v63 = vpop.xlane.xlu0 %3490 }
 0xea5   : > { %v3504_v0 = vmul.f32 0.007874016, %v3491_v63  ;;  %v3517_v63 = vmul.f32 %v6276_v36, %v6238_v13  ;;  %v3518_v13 = vmul.f32 %v6276_v36, %v6242_v6 }
 0xea7   : > { %4790 = vrsqrt.f32 %v3504_v0  ;;  %vm3540_vm7 = vcmp.eq.f32.partialorder %v3504_v0, inf  ;;  %v3543_v7 = vand.u32 2147483648, %v3504_v0  ;;  %vm3542_vm8 = vcmp.eq.f32.partialorder %v3504_v0, 0.0 }
 0xea8   : > { %v3493_v20 = vpop.xlane.xlu1 %3492 }
 0xea9   : > { %v3505_v61 = vmul.f32 0.007874016, %v3493_v20 }
 0xeab   : > { %4792 = vrsqrt.f32 %v3505_v61  ;;  %vm3547_vm9 = vcmp.eq.f32.partialorder %v3505_v61, inf  ;;  %v3550_v17 = vand.u32 2147483648, %v3505_v61  ;;  %vm3549_vm10 = vcmp.eq.f32.partialorder %v3505_v61, 0.0 }
 0xeac   : > { %v4787_v39 = vpop.eup %4786  ;;  %v3495_v43 = vpop.xlane.xlu0 %3494 }
 0xead   : > { %v3525_v28 = vmul.f32 %v4787_v39, %v3502_v59  ;;  %v3506_v33 = vmul.f32 0.007874016, %v3495_v43 }
 0xeaf   : > { %v3527_v37 = vsel %vm3526_vm3, %v3502_v59, %v3525_v28  ;;  %4794 = vrsqrt.f32 %v3506_v33  ;;  %vm3554_vm11 = vcmp.eq.f32.partialorder %v3506_v33, inf  ;;  %v3557_v50 = vand.u32 2147483648, %v3506_v33 }
 0xeb0   : > { %v4789_v12 = vpop.eup %4788  ;;  %v3530_v16 = vsel %vm3528_vm4, %v3529_v5, %v3527_v37  ;;  %v3497_v57 = vpop.xlane.xlu1 %3496  ;;  %vm3556_vm12 = vcmp.eq.f32.partialorder %v3506_v33, 0.0 }
 0xeb1   : > { %v3580_v22 = vadd.f32 1e-06, %v3530_v16  ;;  %v3532_v53 = vmul.f32 %v4789_v12, %v3503_v2  ;;  %v3507_v58 = vmul.f32 0.007874016, %v3497_v57 }
 0xeb3   : > { %4796 = vrcp.f32 %v3580_v22  ;;  %v3534_v55 = vsel %vm3533_vm5, %v3503_v2, %v3532_v53  ;;  %vm3561_vm13 = vcmp.eq.f32.partialorder %v3507_v58, inf  ;;  %v3564_v20 = vand.u32 2147483648, %v3507_v58 }
 0xeb4   : > { %v4791_v10 = vpop.eup %4790  ;;  %v3537_v48 = vsel %vm3535_vm6, %v3536_v34, %v3534_v55  ;;  %4798 = vrsqrt.f32 %v3507_v58  ;;  %v3499_v3 = vpop.xlane.xlu0 %3498  ;;  %vm3563_vm14 = vcmp.eq.f32.partialorder %v3507_v58, 0.0 }
 0xeb5   : > { %v3581_v21 = vadd.f32 1e-06, %v3537_v48  ;;  %v3539_v54 = vmul.f32 %v4791_v10, %v3504_v0  ;;  %v6266_v41 = vmul.f32 0.007874016, %v3499_v3  ;;  %v3519_v48 = vmul.f32 %v6276_v36, %v6246_v1 }
 0xeb7   : > { %4800 = vrcp.f32 %v3581_v21  ;;  %v3541_v19 = vsel %vm3540_vm7, %v3504_v0, %v3539_v54  ;;  %vm3568_vm15 = vcmp.eq.f32.partialorder %v6266_v41, inf  ;;  %v3571_v57 = vand.u32 2147483648, %v6266_v41 }
 0xeb8   : > { %v4793_v42 = vpop.eup %4792  ;;  %v3544_v38 = vsel %vm3542_vm8, %v3543_v7, %v3541_v19  ;;  %4802 = vrsqrt.f32 %v6266_v41  ;;  %v3501_v24 = vpop.xlane.xlu1 %3500  ;;  %vm3570_vm0 = vcmp.eq.f32.partialorder %v6266_v41, 0.0 }
 0xeb9   : > { %v3582_v11 = vadd.f32 1e-06, %v3544_v38  ;;  %v3546_v15 = vmul.f32 %v4793_v42, %v3505_v61  ;;  %v6269_v31 = vmul.f32 0.007874016, %v3501_v24  ;;  %v3520_v42 = vmul.f32 %v6276_v36, %v6250_v35 }
 0xebb   : > { %4804 = vrcp.f32 %v3582_v11  ;;  %v3548_v14 = vsel %vm3547_vm9, %v3505_v61, %v3546_v15  ;;  %vm3575_vm1 = vcmp.eq.f32.partialorder %v6269_v31, inf  ;;  %v3578_v21 = vand.u32 2147483648, %v6269_v31 }
 0xebc   : > { %v4795_v27 = vpop.eup %4794  ;;  %v3551_v46 = vsel %vm3549_vm10, %v3550_v17, %v3548_v14  ;;  %4806 = vrsqrt.f32 %v6269_v31  ;;  %vm3577_vm2 = vcmp.eq.f32.partialorder %v6269_v31, 0.0 }
 0xebd   : > { %v3583_v56 = vadd.f32 1e-06, %v3551_v46  ;;  %v3553_v47 = vmul.f32 %v4795_v27, %v3506_v33  ;;  %v3522_v27 = vmul.f32 %v6276_v36, %v6258_v45 }
 0xebf   : > { %4808 = vrcp.f32 %v3583_v56  ;;  %v3555_v49 = vsel %vm3554_vm11, %v3506_v33, %v3553_v47 }
 0xec0   : > { %v4797_v25 = vpop.eup %4796  ;;  %v3558_v8 = vsel %vm3556_vm12, %v3557_v50, %v3555_v49 }
 0xec1   : > { %v4799_v59 = vpop.eup %4798  ;;  %v3589_v30 = vmul.f32 %v4797_v25, %v3516_v9  ;;  %v3584_v2 = vadd.f32 1e-06, %v3558_v8 }
 0xec2   : > { %v3560_v0 = vmul.f32 %v4799_v59, %v3507_v58 }
 0xec3   : > { %v3610_v18 = vadd.f32 %v6286_v29, %v3589_v30  ;;  %4810 = vrcp.f32 %v3584_v2 }
 0xec4   : > { %v4801_v61 = vpop.eup %4800  ;;  %v3562_v39 = vsel %vm3561_vm13, %v3507_v58, %v3560_v0 }
 0xec5   : > { %v4803_v43 = vpop.eup %4802  ;;  %v3618_v28 = vadd.f32 %v3610_v18, %v6175_v40  ;;  %v3591_v33 = vmul.f32 %v4801_v61, %v3517_v63  ;;  %v3565_v5 = vsel %vm3563_vm14, %v3564_v20, %v3562_v39 }
 0xec6   : > { %v3585_v37 = vadd.f32 1e-06, %v3565_v5  ;;  %v3567_v12 = vmul.f32 %v4803_v43, %v6266_v41 }
 0xec7   : > { %3626 = vst [vmem:[#allocation2 + $0x30] sm:$0xff] %v3618_v28  ;;  %3634 = vst [vmem:[%s6427_s30] sm:$0xff] %v3618_v28  ;;  %v3611_v16 = vadd.f32 %v6286_v29, %v3591_v33 }
 0xec8   : > { %v4805_v22 = vpop.eup %4804  ;;  %4812 = vrcp.f32 %v3585_v37  ;;  %v3569_v40 = vsel %vm3568_vm15, %v6266_v41, %v3567_v12 }
 0xec9   : > { %v4807_v53 = vpop.eup %4806  ;;  %v3619_v58 = vadd.f32 %v3611_v16, %v6181_v26  ;;  %v3593_v34 = vmul.f32 %v4805_v22, %v3518_v13  ;;  %v3572_v6 = vsel %vm3570_vm0, %v3571_v57, %v3569_v40 }
 0xeca   : > { %v3586_v55 = vadd.f32 1e-06, %v3572_v6  ;;  %v3574_v10 = vmul.f32 %v4807_v53, %v6269_v31 }
 0xecb   : > { %3627 = vst [vmem:[#allocation2] sm:$0xff] %v3619_v58  ;;  %3635 = vst [vmem:[%s6427_s30 + $0x8] sm:$0xff] %v3619_v58  ;;  %v3612_v3 = vadd.f32 %v6286_v29, %v3593_v34 }
 0xecc   : > { %v4809_v54 = vpop.eup %4808  ;;  %4814 = vrcp.f32 %v3586_v55  ;;  %v3576_v26 = vsel %vm3575_vm1, %v6269_v31, %v3574_v10  ;;  %v3521_v31 = vmul.f32 %v6276_v36, %v6254_v32  ;;  %v3523_v32 = vmul.f32 %v6276_v36, %v6262_v23 }
 0xecd   : > { %v3620_v41 = vadd.f32 %v3612_v3, %v6187_v4  ;;  %v3595_v7 = vmul.f32 %v4809_v54, %v3519_v48  ;;  %v3579_v1 = vsel %vm3577_vm2, %v3578_v21, %v3576_v26 }
 0xece   : > { %v3587_v19 = vadd.f32 1e-06, %v3579_v1 }
 0xecf   : > { %3628 = vst [vmem:[#allocation2 + $0x18] sm:$0xff] %v3620_v41  ;;  %3636 = vst [vmem:[%s6427_s30 + $0x10] sm:$0xff] %v3620_v41  ;;  %v3613_v38 = vadd.f32 %v6286_v29, %v3595_v7 }
 0xed0   : > { %v4811_v24 = vpop.eup %4810  ;;  %4816 = vrcp.f32 %v3587_v19 }
 0xed1   : > { %v3621_v11 = vadd.f32 %v3613_v38, %v6193_v52  ;;  %v3597_v15 = vmul.f32 %v4811_v24, %v3520_v42 }
 0xed3   : > { %3629 = vst [vmem:[#allocation2 + $0x10] sm:$0xff] %v3621_v11  ;;  %3637 = vst [vmem:[%s6427_s30 + $0x18] sm:$0xff] %v3621_v11  ;;  %v3614_v4 = vadd.f32 %v6286_v29, %v3597_v15 }
 0xed5   : > { %v4813_v17 = vpop.eup %4812  ;;  %v3622_v35 = vadd.f32 %v3614_v4, %v6199_v62 }
 0xed6   : > { %v3599_v14 = vmul.f32 %v4813_v17, %v3521_v31 }
 0xed7   : > { %3630 = vst [vmem:[#allocation2 + $0x8] sm:$0xff] %v3622_v35  ;;  %3638 = vst [vmem:[%s6427_s30 + $0x20] sm:$0xff] %v3622_v35 }
 0xed8   : > { %v3615_v52 = vadd.f32 %v6286_v29, %v3599_v14 }
 0xed9   : > { %v4815_v46 = vpop.eup %4814 }
 0xeda   : > { %v3623_v56 = vadd.f32 %v3615_v52, %v6205_v60  ;;  %v3601_v47 = vmul.f32 %v4815_v46, %v3522_v27 }
 0xedc   : > { %3631 = vst [vmem:[#allocation2 + $0x20] sm:$0xff] %v3623_v56  ;;  %3639 = vst [vmem:[%s6427_s30 + $0x28] sm:$0xff] %v3623_v56  ;;  %v3616_v62 = vadd.f32 %v6286_v29, %v3601_v47 }
 0xedd   : > { %v4817_v50 = vpop.eup %4816 }
 0xede   : > { %v3624_v9 = vadd.f32 %v3616_v62, %v6209_v44  ;;  %v3603_v49 = vmul.f32 %v4817_v50, %v3523_v32 }
 0xee0   : > { %3632 = vst [vmem:[#allocation2 + $0x28] sm:$0xff] %v3624_v9  ;;  %3640 = vst [vmem:[%s6427_s30 + $0x30] sm:$0xff] %v3624_v9  ;;  %v3617_v45 = vadd.f32 %v6286_v29, %v3603_v49 }
 0xee2   : > { %v3625_v25 = vadd.f32 %v3617_v45, %v6213_v51 }
 0xee4   : > { %3633 = vst [vmem:[#allocation2 + $0x38] sm:$0xff] %v3625_v25  ;;  %3641 = vst [vmem:[%s6427_s30 + $0x38] sm:$0xff] %v3625_v25 }
 0xee5 PF: > { %s6428_s8 = sld [smem:[#allocation5_spill]] }
 0xee6   : > { %s6429_s29 = sld [smem:[#allocation3_spill]] }
 0xee7   : > { %s6430_s30 = sld [smem:[#allocation4_spill]] }
 0xee8   : > { %s6431_s15 = sld [smem:[#allocation6_spill]] }
 0xee9   : > { %s6432_s16 = sld [smem:[#allocation7_spill]] }
 0xeeb   : > { %s24_s17 = sadd.s32 1, %s6428_s8  }
 0xeec   : > { %p21_p9 = scmp.ge.s32.totalorder %s24_s17, 6  }
 0xeee   :  { %23 = sbr.rel (!%p21_p9) target bundleno = 8 (0x8), region = 149 }

</bundles_post_ra>
